<compile_context>
chip_gen: v5e
topology: v5e:2x2
jax: 0.10.0
libtpu: 0.0.40
codegen_flags: <defaults>
</compile_context>

<pallas_src>
import functools
import math

import jax
import jax.numpy as jnp
from jax import lax
from jax.experimental import pallas as pl
from jax.experimental.pallas import tpu as pltpu

SEQ_PAD_IX = 0


# ----------------------------------------------------------------------------
# One bidirectional LSTM layer (runs inside the fused Pallas kernel)
# ----------------------------------------------------------------------------
def _bilstm_recurrence(x_ref, wih_ref, whh_ref, b_ref, seq_ref,
                       gin_scr, h_scr, c_scr, dirmask, *, H, T, B):
    """fwd + bwd LSTM over the padded sequence.

    Column layout of every 8H-wide gate tensor (W_ih, W_hh, bias, gin):
        [ i_f | i_b | f_f | f_b | o_f | o_b | g_f | g_b ]   (each H wide)
    so sigmoid runs on one contiguous 6H slab and tanh on one 2H slab, and the
    cell/hidden updates are lane-dense (B, 2H) elementwise ops.

    x_ref   : (T*B, D_in)  time-major, row t*B+b = x[t, b]
    wih_ref : (D_in, 8H)
    whh_ref : (2H, 8H)     block-structured: rows 0:H touch only *_f columns
    b_ref   : (1, 8H)
    seq_ref : (T*B, 2H)    out: [:, :H] = fwd h(t), [:, H:] = bwd h(t)
    gin_scr : (T*B, 8H)    precomputed input-projection gates
    h_scr   : (B, 2H)      carried [h_f | h_b]
    c_scr   : (B, 2H)      carried [c_f | c_b]
    dirmask : (B, 8H) bool True on fwd columns (hoisted, computed once)
    """
    h_scr[...] = jnp.zeros_like(h_scr)
    c_scr[...] = jnp.zeros_like(c_scr)

    # Input projection for ALL timesteps and both directions: one dense matmul
    # (256-wide RHS) off the serial critical path of the recurrence.
    gin_scr[...] = (jnp.dot(x_ref[...], wih_ref[...],
                            preferred_element_type=jnp.float32) + b_ref[...])

    def step(t, carry):
        tr = T - 1 - t                           # in-kernel time reversal for bwd
        rf = pl.multiple_of(t * B, B)
        rb = pl.multiple_of(tr * B, B)

        # Single block-diagonal recurrent matmul for both directions: (B,2H)@(2H,8H).
        # whh_ref is re-read from VMEM each step (cheap vld) instead of hoisted,
        # so the (2H,8H) weight never occupies ~16 live vregs across the unroll.
        rec = jnp.dot(h_scr[...], whh_ref[...],
                      preferred_element_type=jnp.float32)            # (B, 8H)

        # fwd direction consumes x[t]; bwd direction consumes x[T-1-t].  The
        # static column select assembles both in one 256-lane vsel + add.
        gin_f = gin_scr[pl.ds(rf, B), :]
        gin_b = gin_scr[pl.ds(rb, B), :]
        gates = rec + jnp.where(dirmask, gin_f, gin_b)

        sig = jax.nn.sigmoid(gates[:, 0:6 * H])                      # i,f,o: 192 lanes
        g = jnp.tanh(gates[:, 6 * H:8 * H])                          # g:      64 lanes
        i = sig[:, 0:2 * H]
        f = sig[:, 2 * H:4 * H]
        o = sig[:, 4 * H:6 * H]

        c = f * c_scr[...] + i * g                                   # (B, 2H) = [c_f|c_b]
        h = o * jnp.tanh(c)                                          # (B, 2H) = [h_f|h_b]

        c_scr[...] = c
        h_scr[...] = h
        seq_ref[pl.ds(rf, B), 0:H] = h[:, 0:H]                       # fwd h(t)
        seq_ref[pl.ds(rb, B), H:2 * H] = h[:, H:2 * H]               # bwd h(T-1-t)
        return carry

    # T is small & static: full unroll gives the scheduler cross-step visibility.
    lax.fori_loop(0, T, step, 0, unroll=True)
    # TODO(synk): on v6e/v7x, W_hh could be pinned in the MXU weight registers
    # across the unrolled loop (pltpu.matmul_push_rhs/acc_lhs/pop), and on v7x
    # the two directions could be split across the two TensorCores via
    # pl.core_map; kept portable jnp.dot / single-core here.


# ----------------------------------------------------------------------------
# Single fused kernel: all LSTM layers + tag head
# ----------------------------------------------------------------------------
def _fused_tagger_kernel(*refs, hidden_dim, seq_len, batch, num_layers):
    H, T, B = hidden_dim, seq_len, batch
    n_layer_refs = 3 * num_layers
    x_ref = refs[0]
    layer_refs = refs[1:1 + n_layer_refs]
    sel_ref, wout_ref, bout_ref = refs[1 + n_layer_refs:4 + n_layer_refs]
    scores_ref = refs[4 + n_layer_refs]
    seq_a, seq_b, gin_scr, h_scr, c_scr = refs[5 + n_layer_refs:]

    # Static per-column direction mask (fwd half / bwd half of each gate slab),
    # computed ONCE (JAX does not CSE broadcast_in_dim, so don't put it in the loop).
    dirmask = (lax.broadcasted_iota(jnp.int32, (B, 8 * H), 1) % (2 * H)) < H

    # Layer loop stays inside the kernel: inter-layer activations never leave VMEM.
    cur = x_ref
    seq_bufs = (seq_a, seq_b)
    for l in range(num_layers):
        w_ih, w_hh, b = layer_refs[3 * l:3 * l + 3]
        out_seq = seq_bufs[l % 2]
        _bilstm_recurrence(cur, w_ih, w_hh, b, out_seq,
                           gin_scr, h_scr, c_scr, dirmask, H=H, T=T, B=B)
        cur = out_seq

    # Last-valid-timestep gather as one (B, T*B) @ (T*B, 2H) one-hot matmul on
    # the otherwise-idle MXU, then hidden2tag Linear + log_softmax.
    h_last = jnp.dot(sel_ref[...], cur[...], preferred_element_type=jnp.float32)
    logits = jnp.dot(h_last, wout_ref[...],
                     preferred_element_type=jnp.float32) + bout_ref[...]
    m = jnp.max(logits, axis=-1, keepdims=True)
    s = logits - m
    lse = jnp.log(jnp.sum(jnp.exp(s), axis=-1, keepdims=True))
    scores_ref[...] = (s - lse).astype(scores_ref.dtype)


# ----------------------------------------------------------------------------
# BiLSTMTagger forward (glue in plain JAX, hot path = ONE pallas_call)
# ----------------------------------------------------------------------------
def bilstm_tagger_forward(chars, params, config):
    B, T = chars.shape
    H = config["hidden_dim"]
    L = config["lstm_layers"]
    B_pad = max(8, ((B + 7) // 8) * 8)       # pad batch to a sublane multiple
    TB = T * B_pad

    # lengths[b] = #non-pad tokens, matching torch.where(batch != SEQ_PAD_IX).
    lengths = jnp.sum(chars != SEQ_PAD_IX, axis=1)

    # TODO(synk): char-level Bernoulli dropout and nn.Dropout are RNG ops; both
    # rates are 0.0 here (deterministic/eval semantics), so they are identity.
    embeds = params["embed"][chars].astype(jnp.float32)            # (B, T, E)
    embeds = jnp.pad(embeds, ((0, B_pad - B), (0, 0), (0, 0)))     # (B_pad, T, E)

    # time-major + batch-flattened ONCE; this layout is kept across all layers.
    x2 = jnp.transpose(embeds, (1, 0, 2)).reshape(TB, -1)          # (T*B_pad, E)

    # one-hot row-selection: sel[b, t*B_pad + b] = 1 iff t == lengths[b]-1
    # (padded / zero-length rows never match -> zero row; they are dropped below).
    lengths_p = jnp.pad(lengths, (0, B_pad - B))
    b_idx = jnp.arange(B_pad)
    sel = ((jnp.arange(T)[None, :, None] == (lengths_p[:, None, None] - 1))
           & (b_idx[None, None, :] == b_idx[:, None, None]))
    sel = sel.astype(jnp.float32).reshape(B_pad, TB)

    layer_args = []
    for l in range(L):
        layer_args += [params[f"w_ih_{l}"], params[f"w_hh_{l}"], params[f"b_{l}"]]

    num_tags = params["w_out_t"].shape[1]
    kernel = functools.partial(_fused_tagger_kernel, hidden_dim=H, seq_len=T,
                               batch=B_pad, num_layers=L)
    n_in = 1 + 3 * L + 3
    scores = pl.pallas_call(
        kernel,
        out_shape=jax.ShapeDtypeStruct((B_pad, num_tags), jnp.float32),
        in_specs=[pl.BlockSpec(memory_space=pltpu.MemorySpace.VMEM)] * n_in,
        out_specs=pl.BlockSpec(memory_space=pltpu.MemorySpace.VMEM),
        scratch_shapes=[
            pltpu.VMEM((TB, 2 * H), jnp.float32),       # seq ping
            pltpu.VMEM((TB, 2 * H), jnp.float32),       # seq pong
            pltpu.VMEM((TB, 8 * H), jnp.float32),       # input-proj gates (reused/layer)
            pltpu.VMEM((B_pad, 2 * H), jnp.float32),    # h = [h_f | h_b]
            pltpu.VMEM((B_pad, 2 * H), jnp.float32),    # c = [c_f | c_b]
        ],
    )(x2, *layer_args, sel, params["w_out_t"], params["b_out"])
    return scores[:B]                                              # drop batch padding


# ----------------------------------------------------------------------------
# Deterministic parameters: raw (PyTorch layout) + fused kernel layout
# ----------------------------------------------------------------------------
def _split_ifgo(w, H):
    """Split a PyTorch-layout (4H, ...) gate tensor into (i, f, g, o) blocks."""
    return w[0:H], w[H:2 * H], w[2 * H:3 * H], w[3 * H:4 * H]


def init_params(key, config, vocab_size, num_tags):
    E, H, L = config["embed_dim"], config["hidden_dim"], config["lstm_layers"]
    raw = {}
    key, k = jax.random.split(key)
    raw["embed"] = jax.random.normal(k, (vocab_size, E), jnp.float32)

    k_lstm = 1.0 / math.sqrt(H)
    for l in range(L):
        d_in = E if l == 0 else 2 * H
        for tag in ("f", "b"):
            key, k1, k2, k3, k4 = jax.random.split(key, 5)
            raw[f"w_ih_{tag}{l}"] = jax.random.uniform(k1, (4 * H, d_in), jnp.float32, -k_lstm, k_lstm)
            raw[f"w_hh_{tag}{l}"] = jax.random.uniform(k2, (4 * H, H), jnp.float32, -k_lstm, k_lstm)
            raw[f"b_ih_{tag}{l}"] = jax.random.uniform(k3, (4 * H,), jnp.float32, -k_lstm, k_lstm)
            raw[f"b_hh_{tag}{l}"] = jax.random.uniform(k4, (4 * H,), jnp.float32, -k_lstm, k_lstm)

    k_lin = 1.0 / math.sqrt(2 * H)
    key, k1, k2 = jax.random.split(key, 3)
    raw["w_out"] = jax.random.uniform(k1, (num_tags, 2 * H), jnp.float32, -k_lin, k_lin)
    raw["b_out"] = jax.random.uniform(k2, (num_tags,), jnp.float32, -k_lin, k_lin)

    # ---- fused kernel-side layout: columns [i_f|i_b | f_f|f_b | o_f|o_b | g_f|g_b] ----
    params = {"embed": raw["embed"]}
    for l in range(L):
        i_f, f_f, g_f, o_f = _split_ifgo(raw[f"w_ih_f{l}"], H)
        i_b, f_b, g_b, o_b = _split_ifgo(raw[f"w_ih_b{l}"], H)
        params[f"w_ih_{l}"] = jnp.concatenate(
            [i_f, i_b, f_f, f_b, o_f, o_b, g_f, g_b], axis=0).T            # (d_in, 8H)

        bi_f, bf_f, bg_f, bo_f = _split_ifgo(raw[f"b_ih_f{l}"] + raw[f"b_hh_f{l}"], H)
        bi_b, bf_b, bg_b, bo_b = _split_ifgo(raw[f"b_ih_b{l}"] + raw[f"b_hh_b{l}"], H)
        params[f"b_{l}"] = jnp.concatenate(
            [bi_f, bi_b, bf_f, bf_b, bo_f, bo_b, bg_f, bg_b]).reshape(1, 8 * H)

        hi_f, hf_f, hg_f, ho_f = _split_ifgo(raw[f"w_hh_f{l}"], H)
        hi_b, hf_b, hg_b, ho_b = _split_ifgo(raw[f"w_hh_b{l}"], H)
        Z = jnp.zeros((H, H), jnp.float32)
        top = jnp.concatenate([hi_f.T, Z, hf_f.T, Z, ho_f.T, Z, hg_f.T, Z], axis=1)  # h_f rows
        bot = jnp.concatenate([Z, hi_b.T, Z, hf_b.T, Z, ho_b.T, Z, hg_b.T], axis=1)  # h_b rows
        params[f"w_hh_{l}"] = jnp.concatenate([top, bot], axis=0)           # (2H, 8H)

    params["w_out_t"] = raw["w_out"].T                                      # (2H, num_tags)
    params["b_out"] = raw["b_out"].reshape(1, num_tags)
    return raw, params


# ----------------------------------------------------------------------------
# Pure-JAX reference (padded-batch LSTM, same as PyTorch forward semantics)
# ----------------------------------------------------------------------------
def reference_forward(chars, raw, config):
    B, T = chars.shape
    H, L = config["hidden_dim"], config["lstm_layers"]
    hi = lax.Precision.HIGHEST
    x = raw["embed"][chars].astype(jnp.float32)                    # (B, T, E)
    for l in range(L):
        outs = []
        for tag in ("f", "b"):
            w_ih = raw[f"w_ih_{tag}{l}"]
            w_hh = raw[f"w_hh_{tag}{l}"]
            bias = raw[f"b_ih_{tag}{l}"] + raw[f"b_hh_{tag}{l}"]
            xs = x if tag == "f" else x[:, ::-1]
            h = jnp.zeros((B, H), jnp.float32)
            c = jnp.zeros((B, H), jnp.float32)
            hs = []
            for t in range(T):
                g = (jnp.dot(xs[:, t], w_ih.T, precision=hi)
                     + jnp.dot(h, w_hh.T, precision=hi) + bias)
                i = jax.nn.sigmoid(g[:, 0:H])
                f = jax.nn.sigmoid(g[:, H:2 * H])
                gg = jnp.tanh(g[:, 2 * H:3 * H])
                o = jax.nn.sigmoid(g[:, 3 * H:4 * H])
                c = f * c + i * gg
                h = o * jnp.tanh(c)
                hs.append(h)
            hs = jnp.stack(hs, axis=1)                             # (B, T, H)
            if tag == "b":
                hs = hs[:, ::-1]
            outs.append(hs)
        x = jnp.concatenate(outs, axis=-1)                         # (B, T, 2H)
    lengths = jnp.sum(chars != SEQ_PAD_IX, axis=1)
    h_last = x[jnp.arange(B), lengths - 1]                         # (B, 2H)
    logits = jnp.dot(h_last, raw["w_out"].T, precision=hi) + raw["b_out"]
    return jax.nn.log_softmax(logits, axis=-1)


if __name__ == "__main__":
    config = {
        "embed_dim": 16,
        "hidden_dim": 32,
        "lstm_layers": 2,
        "dropout": 0.0,
        "char_dropout": 0.0,
    }
    vocab_size = 20
    num_tags = 6
    B, T = 2, 8

    key = jax.random.PRNGKey(0)
    key, k_tok = jax.random.split(key)
    raw, params = init_params(key, config, vocab_size, num_tags)

    # deterministic input: random non-pad tokens, then trailing padding
    tokens = jax.random.randint(k_tok, (B, T), 1, vocab_size, dtype=jnp.int32)
    lens = jnp.array([T, 5], dtype=jnp.int32)
    pos = jnp.arange(T)[None, :]
    chars = jnp.where(pos < lens[:, None], tokens, SEQ_PAD_IX).astype(jnp.int32)

    fwd = jax.jit(lambda c, p: bilstm_tagger_forward(c, p, config))
    scores = jax.block_until_ready(fwd(chars, params))

    assert scores.shape == (B, num_tags)
    assert scores.dtype == jnp.float32
    # log_softmax rows should exp-sum to ~1
    assert bool(jnp.allclose(jnp.sum(jnp.exp(scores), axis=-1), 1.0, atol=1e-4))

    # check against a pure-JAX reference built from the raw (PyTorch-layout) weights
    ref = reference_forward(chars, raw, config)
    max_err = float(jnp.max(jnp.abs(scores - ref)))
    assert max_err < 1e-2, f"kernel vs reference max abs err = {max_err}"

    print("KERNEL_OK")
</pallas_src>

<mosaic_0001>
module attributes {stable_mosaic.version = 11 : i64} {
  func.func @_fused_tagger_kernel(%arg0: memref<64x16xf32, #tpu.memory_space<vmem>>, %arg1: memref<16x256xf32, #tpu.memory_space<vmem>>, %arg2: memref<64x256xf32, #tpu.memory_space<vmem>>, %arg3: memref<1x256xf32, #tpu.memory_space<vmem>>, %arg4: memref<64x256xf32, #tpu.memory_space<vmem>>, %arg5: memref<64x256xf32, #tpu.memory_space<vmem>>, %arg6: memref<1x256xf32, #tpu.memory_space<vmem>>, %arg7: memref<8x64xf32, #tpu.memory_space<vmem>>, %arg8: memref<64x6xf32, #tpu.memory_space<vmem>>, %arg9: memref<1x6xf32, #tpu.memory_space<vmem>>, %arg10: memref<8x6xf32, #tpu.memory_space<vmem>>, %arg11: memref<64x64xf32, #tpu.memory_space<vmem>>, %arg12: memref<64x64xf32, #tpu.memory_space<vmem>>, %arg13: memref<64x256xf32, #tpu.memory_space<vmem>>, %arg14: memref<8x64xf32, #tpu.memory_space<vmem>>, %arg15: memref<8x64xf32, #tpu.memory_space<vmem>>) attributes {dimension_semantics = [], scalar_prefetch = 0 : i64, scratch_operands = 5 : i64, tpu.core_type = #tpu.core_type<tc>} {
    %0 = tpu.iota {dimensions = array<i32: 1>} : vector<8x256xi32>
    %c64_i32 = arith.constant 64 : i32
    %c0_i32 = arith.constant 0 : i32
    %1 = arith.cmpi eq, %c64_i32, %c0_i32 : i32
    %c1_i32 = arith.constant 1 : i32
    %2 = arith.select %1, %c1_i32, %c64_i32 : i32
    %3 = vector.broadcast %2 : i32 to vector<8x256xi32>
    %4 = arith.remsi %0, %3 : vector<8x256xi32>
    %c0_i32_0 = arith.constant 0 : i32
    %5 = vector.broadcast %c0_i32_0 : i32 to vector<8x256xi32>
    %6 = arith.cmpi ne, %4, %5 : vector<8x256xi32>
    %c0_i32_1 = arith.constant 0 : i32
    %7 = vector.broadcast %c0_i32_1 : i32 to vector<8x256xi32>
    %8 = arith.cmpi slt, %4, %7 : vector<8x256xi32>
    %c0_i32_2 = arith.constant 0 : i32
    %9 = arith.cmpi slt, %2, %c0_i32_2 : i32
    %10 = vector.broadcast %9 : i1 to vector<8x256xi1>
    %11 = vector.broadcast %10 : vector<8x256xi1> to vector<8x256xi1>
    %12 = arith.xori %8, %11 : vector<8x256xi1>
    %13 = arith.andi %12, %6 : vector<8x256xi1>
    %14 = vector.broadcast %2 : i32 to vector<8x256xi32>
    %15 = arith.addi %4, %14 : vector<8x256xi32>
    %16 = arith.select %13, %15, %4 : vector<8x256xi1>, vector<8x256xi32>
    %c32_i32 = arith.constant 32 : i32
    %17 = vector.broadcast %c32_i32 : i32 to vector<8x256xi32>
    %18 = arith.cmpi slt, %16, %17 : vector<8x256xi32>
    %cst = arith.constant 0.000000e+00 : f32
    %19 = vector.broadcast %cst : f32 to vector<8x64xf32>
    %c0 = arith.constant 0 : index
    %c0_3 = arith.constant 0 : index
    %20 = vector.load %arg14[%c0, %c0_3] : memref<8x64xf32, #tpu.memory_space<vmem>>, vector<8x64xf32>
    tpu.vector_store %arg14[%c0, %c0_3], %19 {strides = array<i32>} : memref<8x64xf32, #tpu.memory_space<vmem>>, vector<8x64xf32>,
    %cst_4 = arith.constant 0.000000e+00 : f32
    %21 = vector.broadcast %cst_4 : f32 to vector<8x64xf32>
    %c0_5 = arith.constant 0 : index
    %c0_6 = arith.constant 0 : index
    %22 = vector.load %arg15[%c0_5, %c0_6] : memref<8x64xf32, #tpu.memory_space<vmem>>, vector<8x64xf32>
    tpu.vector_store %arg15[%c0_5, %c0_6], %21 {strides = array<i32>} : memref<8x64xf32, #tpu.memory_space<vmem>>, vector<8x64xf32>,
    %c0_7 = arith.constant 0 : index
    %c0_8 = arith.constant 0 : index
    %23 = vector.load %arg0[%c0_7, %c0_8] : memref<64x16xf32, #tpu.memory_space<vmem>>, vector<64x16xf32>
    %c0_9 = arith.constant 0 : index
    %c0_10 = arith.constant 0 : index
    %24 = vector.load %arg1[%c0_9, %c0_10] : memref<16x256xf32, #tpu.memory_space<vmem>>, vector<16x256xf32>
    %cst_11 = arith.constant dense<0.000000e+00> : vector<64x256xf32>
    %25 = tpu.matmul %23, %24, %cst_11 {dimension_numbers = #tpu.dot_dimension_numbers<[1], [0], [0], [1], [0, 0, 1, 1], [], []>} : vector<64x16xf32>, vector<16x256xf32>, vector<64x256xf32> -> vector<64x256xf32>
    %c0_12 = arith.constant 0 : index
    %c0_13 = arith.constant 0 : index
    %26 = vector.load %arg3[%c0_12, %c0_13] : memref<1x256xf32, #tpu.memory_space<vmem>>, vector<1x256xf32>
    %27 = vector.broadcast %26 : vector<1x256xf32> to vector<64x256xf32>
    %28 = arith.addf %25, %27 : vector<64x256xf32>
    %c0_14 = arith.constant 0 : index
    %c0_15 = arith.constant 0 : index
    %29 = vector.load %arg13[%c0_14, %c0_15] : memref<64x256xf32, #tpu.memory_space<vmem>>, vector<64x256xf32>
    tpu.vector_store %arg13[%c0_14, %c0_15], %28 {strides = array<i32>} : memref<64x256xf32, #tpu.memory_space<vmem>>, vector<64x256xf32>,
    %c0_i32_16 = arith.constant 0 : i32
    %c7_i32 = arith.constant 7 : i32
    %30 = arith.subi %c7_i32, %c0_i32_16 : i32
    %c8_i32 = arith.constant 8 : i32
    %31 = arith.muli %c0_i32_16, %c8_i32 : i32
    %32 = tpu.assume_multiple %31, 8 : i32
    %c8_i32_17 = arith.constant 8 : i32
    %33 = arith.muli %30, %c8_i32_17 : i32
    %34 = tpu.assume_multiple %33, 8 : i32
    %c0_18 = arith.constant 0 : index
    %c0_19 = arith.constant 0 : index
    %35 = vector.load %arg14[%c0_18, %c0_19] : memref<8x64xf32, #tpu.memory_space<vmem>>, vector<8x64xf32>
    %c0_20 = arith.constant 0 : index
    %c0_21 = arith.constant 0 : index
    %36 = vector.load %arg2[%c0_20, %c0_21] : memref<64x256xf32, #tpu.memory_space<vmem>>, vector<64x256xf32>
    %cst_22 = arith.constant dense<0.000000e+00> : vector<8x256xf32>
    %37 = tpu.matmul %35, %36, %cst_22 {dimension_numbers = #tpu.dot_dimension_numbers<[1], [0], [0], [1], [0, 0, 1, 1], [], []>} : vector<8x64xf32>, vector<64x256xf32>, vector<8x256xf32> -> vector<8x256xf32>
    %38 = arith.index_cast %32 : i32 to index
    %c0_23 = arith.constant 0 : index
    %39 = vector.load %arg13[%38, %c0_23] : memref<64x256xf32, #tpu.memory_space<vmem>>, vector<8x256xf32>
    %40 = arith.index_cast %34 : i32 to index
    %c0_24 = arith.constant 0 : index
    %41 = vector.load %arg13[%40, %c0_24] : memref<64x256xf32, #tpu.memory_space<vmem>>, vector<8x256xf32>
    %42 = arith.select %18, %39, %41 : vector<8x256xi1>, vector<8x256xf32>
    %43 = arith.addf %37, %42 : vector<8x256xf32>
    %44 = vector.extract_strided_slice %43 {offsets = [0, 0], sizes = [8, 192], strides = [1, 1]} : vector<8x256xf32> to vector<8x192xf32>
    %45 = arith.negf %44 : vector<8x192xf32>
    %46 = math.exp %45 : vector<8x192xf32>
    %cst_25 = arith.constant 1.000000e+00 : f32
    %47 = vector.broadcast %cst_25 : f32 to vector<8x192xf32>
    %48 = arith.addf %47, %46 : vector<8x192xf32>
    %49 = arith.divf %47, %48 : vector<8x192xf32>
    %50 = vector.extract_strided_slice %43 {offsets = [0, 192], sizes = [8, 64], strides = [1, 1]} : vector<8x256xf32> to vector<8x64xf32>
    %51 = math.tanh %50 : vector<8x64xf32>
    %52 = vector.extract_strided_slice %49 {offsets = [0, 0], sizes = [8, 64], strides = [1, 1]} : vector<8x192xf32> to vector<8x64xf32>
    %53 = vector.extract_strided_slice %49 {offsets = [0, 64], sizes = [8, 64], strides = [1, 1]} : vector<8x192xf32> to vector<8x64xf32>
    %54 = vector.extract_strided_slice %49 {offsets = [0, 128], sizes = [8, 64], strides = [1, 1]} : vector<8x192xf32> to vector<8x64xf32>
    %c0_26 = arith.constant 0 : index
    %c0_27 = arith.constant 0 : index
    %55 = vector.load %arg15[%c0_26, %c0_27] : memref<8x64xf32, #tpu.memory_space<vmem>>, vector<8x64xf32>
    %56 = arith.mulf %53, %55 : vector<8x64xf32>
    %57 = arith.mulf %52, %51 : vector<8x64xf32>
    %58 = arith.addf %56, %57 : vector<8x64xf32>
    %59 = math.tanh %58 : vector<8x64xf32>
    %60 = arith.mulf %54, %59 : vector<8x64xf32>
    %c0_28 = arith.constant 0 : index
    %c0_29 = arith.constant 0 : index
    %61 = vector.load %arg15[%c0_28, %c0_29] : memref<8x64xf32, #tpu.memory_space<vmem>>, vector<8x64xf32>
    tpu.vector_store %arg15[%c0_28, %c0_29], %58 {strides = array<i32>} : memref<8x64xf32, #tpu.memory_space<vmem>>, vector<8x64xf32>,
    %c0_30 = arith.constant 0 : index
    %c0_31 = arith.constant 0 : index
    %62 = vector.load %arg14[%c0_30, %c0_31] : memref<8x64xf32, #tpu.memory_space<vmem>>, vector<8x64xf32>
    tpu.vector_store %arg14[%c0_30, %c0_31], %60 {strides = array<i32>} : memref<8x64xf32, #tpu.memory_space<vmem>>, vector<8x64xf32>,
    %63 = vector.extract_strided_slice %60 {offsets = [0, 0], sizes = [8, 32], strides = [1, 1]} : vector<8x64xf32> to vector<8x32xf32>
    %64 = arith.index_cast %32 : i32 to index
    %c0_32 = arith.constant 0 : index
    %65 = vector.load %arg11[%64, %c0_32] : memref<64x64xf32, #tpu.memory_space<vmem>>, vector<8x32xf32>
    tpu.vector_store %arg11[%64, %c0_32], %63 {strides = array<i32>} : memref<64x64xf32, #tpu.memory_space<vmem>>, vector<8x32xf32>,
    %66 = vector.extract_strided_slice %60 {offsets = [0, 32], sizes = [8, 32], strides = [1, 1]} : vector<8x64xf32> to vector<8x32xf32>
    %67 = arith.index_cast %34 : i32 to index
    %c32 = arith.constant 32 : index
    %68 = vector.load %arg11[%67, %c32] : memref<64x64xf32, #tpu.memory_space<vmem>>, vector<8x32xf32>
    tpu.vector_store %arg11[%67, %c32], %66 {strides = array<i32>} : memref<64x64xf32, #tpu.memory_space<vmem>>, vector<8x32xf32>,
    %c1_i32_33 = arith.constant 1 : i32
    %c7_i32_34 = arith.constant 7 : i32
    %69 = arith.subi %c7_i32_34, %c1_i32_33 : i32
    %c8_i32_35 = arith.constant 8 : i32
    %70 = arith.muli %c1_i32_33, %c8_i32_35 : i32
    %71 = tpu.assume_multiple %70, 8 : i32
    %c8_i32_36 = arith.constant 8 : i32
    %72 = arith.muli %69, %c8_i32_36 : i32
    %73 = tpu.assume_multiple %72, 8 : i32
    %c0_37 = arith.constant 0 : index
    %c0_38 = arith.constant 0 : index
    %74 = vector.load %arg14[%c0_37, %c0_38] : memref<8x64xf32, #tpu.memory_space<vmem>>, vector<8x64xf32>
    %c0_39 = arith.constant 0 : index
    %c0_40 = arith.constant 0 : index
    %75 = vector.load %arg2[%c0_39, %c0_40] : memref<64x256xf32, #tpu.memory_space<vmem>>, vector<64x256xf32>
    %cst_41 = arith.constant dense<0.000000e+00> : vector<8x256xf32>
    %76 = tpu.matmul %74, %75, %cst_41 {dimension_numbers = #tpu.dot_dimension_numbers<[1], [0], [0], [1], [0, 0, 1, 1], [], []>} : vector<8x64xf32>, vector<64x256xf32>, vector<8x256xf32> -> vector<8x256xf32>
    %77 = arith.index_cast %71 : i32 to index
    %c0_42 = arith.constant 0 : index
    %78 = vector.load %arg13[%77, %c0_42] : memref<64x256xf32, #tpu.memory_space<vmem>>, vector<8x256xf32>
    %79 = arith.index_cast %73 : i32 to index
    %c0_43 = arith.constant 0 : index
    %80 = vector.load %arg13[%79, %c0_43] : memref<64x256xf32, #tpu.memory_space<vmem>>, vector<8x256xf32>
    %81 = arith.select %18, %78, %80 : vector<8x256xi1>, vector<8x256xf32>
    %82 = arith.addf %76, %81 : vector<8x256xf32>
    %83 = vector.extract_strided_slice %82 {offsets = [0, 0], sizes = [8, 192], strides = [1, 1]} : vector<8x256xf32> to vector<8x192xf32>
    %84 = arith.negf %83 : vector<8x192xf32>
    %85 = math.exp %84 : vector<8x192xf32>
    %cst_44 = arith.constant 1.000000e+00 : f32
    %86 = vector.broadcast %cst_44 : f32 to vector<8x192xf32>
    %87 = arith.addf %86, %85 : vector<8x192xf32>
    %88 = arith.divf %86, %87 : vector<8x192xf32>
    %89 = vector.extract_strided_slice %82 {offsets = [0, 192], sizes = [8, 64], strides = [1, 1]} : vector<8x256xf32> to vector<8x64xf32>
    %90 = math.tanh %89 : vector<8x64xf32>
    %91 = vector.extract_strided_slice %88 {offsets = [0, 0], sizes = [8, 64], strides = [1, 1]} : vector<8x192xf32> to vector<8x64xf32>
    %92 = vector.extract_strided_slice %88 {offsets = [0, 64], sizes = [8, 64], strides = [1, 1]} : vector<8x192xf32> to vector<8x64xf32>
    %93 = vector.extract_strided_slice %88 {offsets = [0, 128], sizes = [8, 64], strides = [1, 1]} : vector<8x192xf32> to vector<8x64xf32>
    %c0_45 = arith.constant 0 : index
    %c0_46 = arith.constant 0 : index
    %94 = vector.load %arg15[%c0_45, %c0_46] : memref<8x64xf32, #tpu.memory_space<vmem>>, vector<8x64xf32>
    %95 = arith.mulf %92, %94 : vector<8x64xf32>
    %96 = arith.mulf %91, %90 : vector<8x64xf32>
    %97 = arith.addf %95, %96 : vector<8x64xf32>
    %98 = math.tanh %97 : vector<8x64xf32>
    %99 = arith.mulf %93, %98 : vector<8x64xf32>
    %c0_47 = arith.constant 0 : index
    %c0_48 = arith.constant 0 : index
    %100 = vector.load %arg15[%c0_47, %c0_48] : memref<8x64xf32, #tpu.memory_space<vmem>>, vector<8x64xf32>
    tpu.vector_store %arg15[%c0_47, %c0_48], %97 {strides = array<i32>} : memref<8x64xf32, #tpu.memory_space<vmem>>, vector<8x64xf32>,
    %c0_49 = arith.constant 0 : index
    %c0_50 = arith.constant 0 : index
    %101 = vector.load %arg14[%c0_49, %c0_50] : memref<8x64xf32, #tpu.memory_space<vmem>>, vector<8x64xf32>
    tpu.vector_store %arg14[%c0_49, %c0_50], %99 {strides = array<i32>} : memref<8x64xf32, #tpu.memory_space<vmem>>, vector<8x64xf32>,
    %102 = vector.extract_strided_slice %99 {offsets = [0, 0], sizes = [8, 32], strides = [1, 1]} : vector<8x64xf32> to vector<8x32xf32>
    %103 = arith.index_cast %71 : i32 to index
    %c0_51 = arith.constant 0 : index
    %104 = vector.load %arg11[%103, %c0_51] : memref<64x64xf32, #tpu.memory_space<vmem>>, vector<8x32xf32>
    tpu.vector_store %arg11[%103, %c0_51], %102 {strides = array<i32>} : memref<64x64xf32, #tpu.memory_space<vmem>>, vector<8x32xf32>,
    %105 = vector.extract_strided_slice %99 {offsets = [0, 32], sizes = [8, 32], strides = [1, 1]} : vector<8x64xf32> to vector<8x32xf32>
    %106 = arith.index_cast %73 : i32 to index
    %c32_52 = arith.constant 32 : index
    %107 = vector.load %arg11[%106, %c32_52] : memref<64x64xf32, #tpu.memory_space<vmem>>, vector<8x32xf32>
    tpu.vector_store %arg11[%106, %c32_52], %105 {strides = array<i32>} : memref<64x64xf32, #tpu.memory_space<vmem>>, vector<8x32xf32>,
    %c2_i32 = arith.constant 2 : i32
    %c7_i32_53 = arith.constant 7 : i32
    %108 = arith.subi %c7_i32_53, %c2_i32 : i32
    %c8_i32_54 = arith.constant 8 : i32
    %109 = arith.muli %c2_i32, %c8_i32_54 : i32
    %110 = tpu.assume_multiple %109, 8 : i32
    %c8_i32_55 = arith.constant 8 : i32
    %111 = arith.muli %108, %c8_i32_55 : i32
    %112 = tpu.assume_multiple %111, 8 : i32
    %c0_56 = arith.constant 0 : index
    %c0_57 = arith.constant 0 : index
    %113 = vector.load %arg14[%c0_56, %c0_57] : memref<8x64xf32, #tpu.memory_space<vmem>>, vector<8x64xf32>
    %c0_58 = arith.constant 0 : index
    %c0_59 = arith.constant 0 : index
    %114 = vector.load %arg2[%c0_58, %c0_59] : memref<64x256xf32, #tpu.memory_space<vmem>>, vector<64x256xf32>
    %cst_60 = arith.constant dense<0.000000e+00> : vector<8x256xf32>
    %115 = tpu.matmul %113, %114, %cst_60 {dimension_numbers = #tpu.dot_dimension_numbers<[1], [0], [0], [1], [0, 0, 1, 1], [], []>} : vector<8x64xf32>, vector<64x256xf32>, vector<8x256xf32> -> vector<8x256xf32>
    %116 = arith.index_cast %110 : i32 to index
    %c0_61 = arith.constant 0 : index
    %117 = vector.load %arg13[%116, %c0_61] : memref<64x256xf32, #tpu.memory_space<vmem>>, vector<8x256xf32>
    %118 = arith.index_cast %112 : i32 to index
    %c0_62 = arith.constant 0 : index
    %119 = vector.load %arg13[%118, %c0_62] : memref<64x256xf32, #tpu.memory_space<vmem>>, vector<8x256xf32>
    %120 = arith.select %18, %117, %119 : vector<8x256xi1>, vector<8x256xf32>
    %121 = arith.addf %115, %120 : vector<8x256xf32>
    %122 = vector.extract_strided_slice %121 {offsets = [0, 0], sizes = [8, 192], strides = [1, 1]} : vector<8x256xf32> to vector<8x192xf32>
    %123 = arith.negf %122 : vector<8x192xf32>
    %124 = math.exp %123 : vector<8x192xf32>
    %cst_63 = arith.constant 1.000000e+00 : f32
    %125 = vector.broadcast %cst_63 : f32 to vector<8x192xf32>
    %126 = arith.addf %125, %124 : vector<8x192xf32>
    %127 = arith.divf %125, %126 : vector<8x192xf32>
    %128 = vector.extract_strided_slice %121 {offsets = [0, 192], sizes = [8, 64], strides = [1, 1]} : vector<8x256xf32> to vector<8x64xf32>
    %129 = math.tanh %128 : vector<8x64xf32>
    %130 = vector.extract_strided_slice %127 {offsets = [0, 0], sizes = [8, 64], strides = [1, 1]} : vector<8x192xf32> to vector<8x64xf32>
    %131 = vector.extract_strided_slice %127 {offsets = [0, 64], sizes = [8, 64], strides = [1, 1]} : vector<8x192xf32> to vector<8x64xf32>
    %132 = vector.extract_strided_slice %127 {offsets = [0, 128], sizes = [8, 64], strides = [1, 1]} : vector<8x192xf32> to vector<8x64xf32>
    %c0_64 = arith.constant 0 : index
    %c0_65 = arith.constant 0 : index
    %133 = vector.load %arg15[%c0_64, %c0_65] : memref<8x64xf32, #tpu.memory_space<vmem>>, vector<8x64xf32>
    %134 = arith.mulf %131, %133 : vector<8x64xf32>
    %135 = arith.mulf %130, %129 : vector<8x64xf32>
    %136 = arith.addf %134, %135 : vector<8x64xf32>
    %137 = math.tanh %136 : vector<8x64xf32>
    %138 = arith.mulf %132, %137 : vector<8x64xf32>
    %c0_66 = arith.constant 0 : index
    %c0_67 = arith.constant 0 : index
    %139 = vector.load %arg15[%c0_66, %c0_67] : memref<8x64xf32, #tpu.memory_space<vmem>>, vector<8x64xf32>
    tpu.vector_store %arg15[%c0_66, %c0_67], %136 {strides = array<i32>} : memref<8x64xf32, #tpu.memory_space<vmem>>, vector<8x64xf32>,
    %c0_68 = arith.constant 0 : index
    %c0_69 = arith.constant 0 : index
    %140 = vector.load %arg14[%c0_68, %c0_69] : memref<8x64xf32, #tpu.memory_space<vmem>>, vector<8x64xf32>
    tpu.vector_store %arg14[%c0_68, %c0_69], %138 {strides = array<i32>} : memref<8x64xf32, #tpu.memory_space<vmem>>, vector<8x64xf32>,
    %141 = vector.extract_strided_slice %138 {offsets = [0, 0], sizes = [8, 32], strides = [1, 1]} : vector<8x64xf32> to vector<8x32xf32>
    %142 = arith.index_cast %110 : i32 to index
    %c0_70 = arith.constant 0 : index
    %143 = vector.load %arg11[%142, %c0_70] : memref<64x64xf32, #tpu.memory_space<vmem>>, vector<8x32xf32>
    tpu.vector_store %arg11[%142, %c0_70], %141 {strides = array<i32>} : memref<64x64xf32, #tpu.memory_space<vmem>>, vector<8x32xf32>,
    %144 = vector.extract_strided_slice %138 {offsets = [0, 32], sizes = [8, 32], strides = [1, 1]} : vector<8x64xf32> to vector<8x32xf32>
    %145 = arith.index_cast %112 : i32 to index
    %c32_71 = arith.constant 32 : index
    %146 = vector.load %arg11[%145, %c32_71] : memref<64x64xf32, #tpu.memory_space<vmem>>, vector<8x32xf32>
    tpu.vector_store %arg11[%145, %c32_71], %144 {strides = array<i32>} : memref<64x64xf32, #tpu.memory_space<vmem>>, vector<8x32xf32>,
    %c3_i32 = arith.constant 3 : i32
    %c7_i32_72 = arith.constant 7 : i32
    %147 = arith.subi %c7_i32_72, %c3_i32 : i32
    %c8_i32_73 = arith.constant 8 : i32
    %148 = arith.muli %c3_i32, %c8_i32_73 : i32
    %149 = tpu.assume_multiple %148, 8 : i32
    %c8_i32_74 = arith.constant 8 : i32
    %150 = arith.muli %147, %c8_i32_74 : i32
    %151 = tpu.assume_multiple %150, 8 : i32
    %c0_75 = arith.constant 0 : index
    %c0_76 = arith.constant 0 : index
    %152 = vector.load %arg14[%c0_75, %c0_76] : memref<8x64xf32, #tpu.memory_space<vmem>>, vector<8x64xf32>
    %c0_77 = arith.constant 0 : index
    %c0_78 = arith.constant 0 : index
    %153 = vector.load %arg2[%c0_77, %c0_78] : memref<64x256xf32, #tpu.memory_space<vmem>>, vector<64x256xf32>
    %cst_79 = arith.constant dense<0.000000e+00> : vector<8x256xf32>
    %154 = tpu.matmul %152, %153, %cst_79 {dimension_numbers = #tpu.dot_dimension_numbers<[1], [0], [0], [1], [0, 0, 1, 1], [], []>} : vector<8x64xf32>, vector<64x256xf32>, vector<8x256xf32> -> vector<8x256xf32>
    %155 = arith.index_cast %149 : i32 to index
    %c0_80 = arith.constant 0 : index
    %156 = vector.load %arg13[%155, %c0_80] : memref<64x256xf32, #tpu.memory_space<vmem>>, vector<8x256xf32>
    %157 = arith.index_cast %151 : i32 to index
    %c0_81 = arith.constant 0 : index
    %158 = vector.load %arg13[%157, %c0_81] : memref<64x256xf32, #tpu.memory_space<vmem>>, vector<8x256xf32>
    %159 = arith.select %18, %156, %158 : vector<8x256xi1>, vector<8x256xf32>
    %160 = arith.addf %154, %159 : vector<8x256xf32>
    %161 = vector.extract_strided_slice %160 {offsets = [0, 0], sizes = [8, 192], strides = [1, 1]} : vector<8x256xf32> to vector<8x192xf32>
    %162 = arith.negf %161 : vector<8x192xf32>
    %163 = math.exp %162 : vector<8x192xf32>
    %cst_82 = arith.constant 1.000000e+00 : f32
    %164 = vector.broadcast %cst_82 : f32 to vector<8x192xf32>
    %165 = arith.addf %164, %163 : vector<8x192xf32>
    %166 = arith.divf %164, %165 : vector<8x192xf32>
    %167 = vector.extract_strided_slice %160 {offsets = [0, 192], sizes = [8, 64], strides = [1, 1]} : vector<8x256xf32> to vector<8x64xf32>
    %168 = math.tanh %167 : vector<8x64xf32>
    %169 = vector.extract_strided_slice %166 {offsets = [0, 0], sizes = [8, 64], strides = [1, 1]} : vector<8x192xf32> to vector<8x64xf32>
    %170 = vector.extract_strided_slice %166 {offsets = [0, 64], sizes = [8, 64], strides = [1, 1]} : vector<8x192xf32> to vector<8x64xf32>
    %171 = vector.extract_strided_slice %166 {offsets = [0, 128], sizes = [8, 64], strides = [1, 1]} : vector<8x192xf32> to vector<8x64xf32>
    %c0_83 = arith.constant 0 : index
    %c0_84 = arith.constant 0 : index
    %172 = vector.load %arg15[%c0_83, %c0_84] : memref<8x64xf32, #tpu.memory_space<vmem>>, vector<8x64xf32>
    %173 = arith.mulf %170, %172 : vector<8x64xf32>
    %174 = arith.mulf %169, %168 : vector<8x64xf32>
    %175 = arith.addf %173, %174 : vector<8x64xf32>
    %176 = math.tanh %175 : vector<8x64xf32>
    %177 = arith.mulf %171, %176 : vector<8x64xf32>
    %c0_85 = arith.constant 0 : index
    %c0_86 = arith.constant 0 : index
    %178 = vector.load %arg15[%c0_85, %c0_86] : memref<8x64xf32, #tpu.memory_space<vmem>>, vector<8x64xf32>
    tpu.vector_store %arg15[%c0_85, %c0_86], %175 {strides = array<i32>} : memref<8x64xf32, #tpu.memory_space<vmem>>, vector<8x64xf32>,
    %c0_87 = arith.constant 0 : index
    %c0_88 = arith.constant 0 : index
    %179 = vector.load %arg14[%c0_87, %c0_88] : memref<8x64xf32, #tpu.memory_space<vmem>>, vector<8x64xf32>
    tpu.vector_store %arg14[%c0_87, %c0_88], %177 {strides = array<i32>} : memref<8x64xf32, #tpu.memory_space<vmem>>, vector<8x64xf32>,
    %180 = vector.extract_strided_slice %177 {offsets = [0, 0], sizes = [8, 32], strides = [1, 1]} : vector<8x64xf32> to vector<8x32xf32>
    %181 = arith.index_cast %149 : i32 to index
    %c0_89 = arith.constant 0 : index
    %182 = vector.load %arg11[%181, %c0_89] : memref<64x64xf32, #tpu.memory_space<vmem>>, vector<8x32xf32>
    tpu.vector_store %arg11[%181, %c0_89], %180 {strides = array<i32>} : memref<64x64xf32, #tpu.memory_space<vmem>>, vector<8x32xf32>,
    %183 = vector.extract_strided_slice %177 {offsets = [0, 32], sizes = [8, 32], strides = [1, 1]} : vector<8x64xf32> to vector<8x32xf32>
    %184 = arith.index_cast %151 : i32 to index
    %c32_90 = arith.constant 32 : index
    %185 = vector.load %arg11[%184, %c32_90] : memref<64x64xf32, #tpu.memory_space<vmem>>, vector<8x32xf32>
    tpu.vector_store %arg11[%184, %c32_90], %183 {strides = array<i32>} : memref<64x64xf32, #tpu.memory_space<vmem>>, vector<8x32xf32>,
    %c4_i32 = arith.constant 4 : i32
    %c7_i32_91 = arith.constant 7 : i32
    %186 = arith.subi %c7_i32_91, %c4_i32 : i32
    %c8_i32_92 = arith.constant 8 : i32
    %187 = arith.muli %c4_i32, %c8_i32_92 : i32
    %188 = tpu.assume_multiple %187, 8 : i32
    %c8_i32_93 = arith.constant 8 : i32
    %189 = arith.muli %186, %c8_i32_93 : i32
    %190 = tpu.assume_multiple %189, 8 : i32
    %c0_94 = arith.constant 0 : index
    %c0_95 = arith.constant 0 : index
    %191 = vector.load %arg14[%c0_94, %c0_95] : memref<8x64xf32, #tpu.memory_space<vmem>>, vector<8x64xf32>
    %c0_96 = arith.constant 0 : index
    %c0_97 = arith.constant 0 : index
    %192 = vector.load %arg2[%c0_96, %c0_97] : memref<64x256xf32, #tpu.memory_space<vmem>>, vector<64x256xf32>
    %cst_98 = arith.constant dense<0.000000e+00> : vector<8x256xf32>
    %193 = tpu.matmul %191, %192, %cst_98 {dimension_numbers = #tpu.dot_dimension_numbers<[1], [0], [0], [1], [0, 0, 1, 1], [], []>} : vector<8x64xf32>, vector<64x256xf32>, vector<8x256xf32> -> vector<8x256xf32>
    %194 = arith.index_cast %188 : i32 to index
    %c0_99 = arith.constant 0 : index
    %195 = vector.load %arg13[%194, %c0_99] : memref<64x256xf32, #tpu.memory_space<vmem>>, vector<8x256xf32>
    %196 = arith.index_cast %190 : i32 to index
    %c0_100 = arith.constant 0 : index
    %197 = vector.load %arg13[%196, %c0_100] : memref<64x256xf32, #tpu.memory_space<vmem>>, vector<8x256xf32>
    %198 = arith.select %18, %195, %197 : vector<8x256xi1>, vector<8x256xf32>
    %199 = arith.addf %193, %198 : vector<8x256xf32>
    %200 = vector.extract_strided_slice %199 {offsets = [0, 0], sizes = [8, 192], strides = [1, 1]} : vector<8x256xf32> to vector<8x192xf32>
    %201 = arith.negf %200 : vector<8x192xf32>
    %202 = math.exp %201 : vector<8x192xf32>
    %cst_101 = arith.constant 1.000000e+00 : f32
    %203 = vector.broadcast %cst_101 : f32 to vector<8x192xf32>
    %204 = arith.addf %203, %202 : vector<8x192xf32>
    %205 = arith.divf %203, %204 : vector<8x192xf32>
    %206 = vector.extract_strided_slice %199 {offsets = [0, 192], sizes = [8, 64], strides = [1, 1]} : vector<8x256xf32> to vector<8x64xf32>
    %207 = math.tanh %206 : vector<8x64xf32>
    %208 = vector.extract_strided_slice %205 {offsets = [0, 0], sizes = [8, 64], strides = [1, 1]} : vector<8x192xf32> to vector<8x64xf32>
    %209 = vector.extract_strided_slice %205 {offsets = [0, 64], sizes = [8, 64], strides = [1, 1]} : vector<8x192xf32> to vector<8x64xf32>
    %210 = vector.extract_strided_slice %205 {offsets = [0, 128], sizes = [8, 64], strides = [1, 1]} : vector<8x192xf32> to vector<8x64xf32>
    %c0_102 = arith.constant 0 : index
    %c0_103 = arith.constant 0 : index
    %211 = vector.load %arg15[%c0_102, %c0_103] : memref<8x64xf32, #tpu.memory_space<vmem>>, vector<8x64xf32>
    %212 = arith.mulf %209, %211 : vector<8x64xf32>
    %213 = arith.mulf %208, %207 : vector<8x64xf32>
    %214 = arith.addf %212, %213 : vector<8x64xf32>
    %215 = math.tanh %214 : vector<8x64xf32>
    %216 = arith.mulf %210, %215 : vector<8x64xf32>
    %c0_104 = arith.constant 0 : index
    %c0_105 = arith.constant 0 : index
    %217 = vector.load %arg15[%c0_104, %c0_105] : memref<8x64xf32, #tpu.memory_space<vmem>>, vector<8x64xf32>
    tpu.vector_store %arg15[%c0_104, %c0_105], %214 {strides = array<i32>} : memref<8x64xf32, #tpu.memory_space<vmem>>, vector<8x64xf32>,
    %c0_106 = arith.constant 0 : index
    %c0_107 = arith.constant 0 : index
    %218 = vector.load %arg14[%c0_106, %c0_107] : memref<8x64xf32, #tpu.memory_space<vmem>>, vector<8x64xf32>
    tpu.vector_store %arg14[%c0_106, %c0_107], %216 {strides = array<i32>} : memref<8x64xf32, #tpu.memory_space<vmem>>, vector<8x64xf32>,
    %219 = vector.extract_strided_slice %216 {offsets = [0, 0], sizes = [8, 32], strides = [1, 1]} : vector<8x64xf32> to vector<8x32xf32>
    %220 = arith.index_cast %188 : i32 to index
    %c0_108 = arith.constant 0 : index
    %221 = vector.load %arg11[%220, %c0_108] : memref<64x64xf32, #tpu.memory_space<vmem>>, vector<8x32xf32>
    tpu.vector_store %arg11[%220, %c0_108], %219 {strides = array<i32>} : memref<64x64xf32, #tpu.memory_space<vmem>>, vector<8x32xf32>,
    %222 = vector.extract_strided_slice %216 {offsets = [0, 32], sizes = [8, 32], strides = [1, 1]} : vector<8x64xf32> to vector<8x32xf32>
    %223 = arith.index_cast %190 : i32 to index
    %c32_109 = arith.constant 32 : index
    %224 = vector.load %arg11[%223, %c32_109] : memref<64x64xf32, #tpu.memory_space<vmem>>, vector<8x32xf32>
    tpu.vector_store %arg11[%223, %c32_109], %222 {strides = array<i32>} : memref<64x64xf32, #tpu.memory_space<vmem>>, vector<8x32xf32>,
    %c5_i32 = arith.constant 5 : i32
    %c7_i32_110 = arith.constant 7 : i32
    %225 = arith.subi %c7_i32_110, %c5_i32 : i32
    %c8_i32_111 = arith.constant 8 : i32
    %226 = arith.muli %c5_i32, %c8_i32_111 : i32
    %227 = tpu.assume_multiple %226, 8 : i32
    %c8_i32_112 = arith.constant 8 : i32
    %228 = arith.muli %225, %c8_i32_112 : i32
    %229 = tpu.assume_multiple %228, 8 : i32
    %c0_113 = arith.constant 0 : index
    %c0_114 = arith.constant 0 : index
    %230 = vector.load %arg14[%c0_113, %c0_114] : memref<8x64xf32, #tpu.memory_space<vmem>>, vector<8x64xf32>
    %c0_115 = arith.constant 0 : index
    %c0_116 = arith.constant 0 : index
    %231 = vector.load %arg2[%c0_115, %c0_116] : memref<64x256xf32, #tpu.memory_space<vmem>>, vector<64x256xf32>
    %cst_117 = arith.constant dense<0.000000e+00> : vector<8x256xf32>
    %232 = tpu.matmul %230, %231, %cst_117 {dimension_numbers = #tpu.dot_dimension_numbers<[1], [0], [0], [1], [0, 0, 1, 1], [], []>} : vector<8x64xf32>, vector<64x256xf32>, vector<8x256xf32> -> vector<8x256xf32>
    %233 = arith.index_cast %227 : i32 to index
    %c0_118 = arith.constant 0 : index
    %234 = vector.load %arg13[%233, %c0_118] : memref<64x256xf32, #tpu.memory_space<vmem>>, vector<8x256xf32>
    %235 = arith.index_cast %229 : i32 to index
    %c0_119 = arith.constant 0 : index
    %236 = vector.load %arg13[%235, %c0_119] : memref<64x256xf32, #tpu.memory_space<vmem>>, vector<8x256xf32>
    %237 = arith.select %18, %234, %236 : vector<8x256xi1>, vector<8x256xf32>
    %238 = arith.addf %232, %237 : vector<8x256xf32>
    %239 = vector.extract_strided_slice %238 {offsets = [0, 0], sizes = [8, 192], strides = [1, 1]} : vector<8x256xf32> to vector<8x192xf32>
    %240 = arith.negf %239 : vector<8x192xf32>
    %241 = math.exp %240 : vector<8x192xf32>
    %cst_120 = arith.constant 1.000000e+00 : f32
    %242 = vector.broadcast %cst_120 : f32 to vector<8x192xf32>
    %243 = arith.addf %242, %241 : vector<8x192xf32>
    %244 = arith.divf %242, %243 : vector<8x192xf32>
    %245 = vector.extract_strided_slice %238 {offsets = [0, 192], sizes = [8, 64], strides = [1, 1]} : vector<8x256xf32> to vector<8x64xf32>
    %246 = math.tanh %245 : vector<8x64xf32>
    %247 = vector.extract_strided_slice %244 {offsets = [0, 0], sizes = [8, 64], strides = [1, 1]} : vector<8x192xf32> to vector<8x64xf32>
    %248 = vector.extract_strided_slice %244 {offsets = [0, 64], sizes = [8, 64], strides = [1, 1]} : vector<8x192xf32> to vector<8x64xf32>
    %249 = vector.extract_strided_slice %244 {offsets = [0, 128], sizes = [8, 64], strides = [1, 1]} : vector<8x192xf32> to vector<8x64xf32>
    %c0_121 = arith.constant 0 : index
    %c0_122 = arith.constant 0 : index
    %250 = vector.load %arg15[%c0_121, %c0_122] : memref<8x64xf32, #tpu.memory_space<vmem>>, vector<8x64xf32>
    %251 = arith.mulf %248, %250 : vector<8x64xf32>
    %252 = arith.mulf %247, %246 : vector<8x64xf32>
    %253 = arith.addf %251, %252 : vector<8x64xf32>
    %254 = math.tanh %253 : vector<8x64xf32>
    %255 = arith.mulf %249, %254 : vector<8x64xf32>
    %c0_123 = arith.constant 0 : index
    %c0_124 = arith.constant 0 : index
    %256 = vector.load %arg15[%c0_123, %c0_124] : memref<8x64xf32, #tpu.memory_space<vmem>>, vector<8x64xf32>
    tpu.vector_store %arg15[%c0_123, %c0_124], %253 {strides = array<i32>} : memref<8x64xf32, #tpu.memory_space<vmem>>, vector<8x64xf32>,
    %c0_125 = arith.constant 0 : index
    %c0_126 = arith.constant 0 : index
    %257 = vector.load %arg14[%c0_125, %c0_126] : memref<8x64xf32, #tpu.memory_space<vmem>>, vector<8x64xf32>
    tpu.vector_store %arg14[%c0_125, %c0_126], %255 {strides = array<i32>} : memref<8x64xf32, #tpu.memory_space<vmem>>, vector<8x64xf32>,
    %258 = vector.extract_strided_slice %255 {offsets = [0, 0], sizes = [8, 32], strides = [1, 1]} : vector<8x64xf32> to vector<8x32xf32>
    %259 = arith.index_cast %227 : i32 to index
    %c0_127 = arith.constant 0 : index
    %260 = vector.load %arg11[%259, %c0_127] : memref<64x64xf32, #tpu.memory_space<vmem>>, vector<8x32xf32>
    tpu.vector_store %arg11[%259, %c0_127], %258 {strides = array<i32>} : memref<64x64xf32, #tpu.memory_space<vmem>>, vector<8x32xf32>,
    %261 = vector.extract_strided_slice %255 {offsets = [0, 32], sizes = [8, 32], strides = [1, 1]} : vector<8x64xf32> to vector<8x32xf32>
    %262 = arith.index_cast %229 : i32 to index
    %c32_128 = arith.constant 32 : index
    %263 = vector.load %arg11[%262, %c32_128] : memref<64x64xf32, #tpu.memory_space<vmem>>, vector<8x32xf32>
    tpu.vector_store %arg11[%262, %c32_128], %261 {strides = array<i32>} : memref<64x64xf32, #tpu.memory_space<vmem>>, vector<8x32xf32>,
    %c6_i32 = arith.constant 6 : i32
    %c7_i32_129 = arith.constant 7 : i32
    %264 = arith.subi %c7_i32_129, %c6_i32 : i32
    %c8_i32_130 = arith.constant 8 : i32
    %265 = arith.muli %c6_i32, %c8_i32_130 : i32
    %266 = tpu.assume_multiple %265, 8 : i32
    %c8_i32_131 = arith.constant 8 : i32
    %267 = arith.muli %264, %c8_i32_131 : i32
    %268 = tpu.assume_multiple %267, 8 : i32
    %c0_132 = arith.constant 0 : index
    %c0_133 = arith.constant 0 : index
    %269 = vector.load %arg14[%c0_132, %c0_133] : memref<8x64xf32, #tpu.memory_space<vmem>>, vector<8x64xf32>
    %c0_134 = arith.constant 0 : index
    %c0_135 = arith.constant 0 : index
    %270 = vector.load %arg2[%c0_134, %c0_135] : memref<64x256xf32, #tpu.memory_space<vmem>>, vector<64x256xf32>
    %cst_136 = arith.constant dense<0.000000e+00> : vector<8x256xf32>
    %271 = tpu.matmul %269, %270, %cst_136 {dimension_numbers = #tpu.dot_dimension_numbers<[1], [0], [0], [1], [0, 0, 1, 1], [], []>} : vector<8x64xf32>, vector<64x256xf32>, vector<8x256xf32> -> vector<8x256xf32>
    %272 = arith.index_cast %266 : i32 to index
    %c0_137 = arith.constant 0 : index
    %273 = vector.load %arg13[%272, %c0_137] : memref<64x256xf32, #tpu.memory_space<vmem>>, vector<8x256xf32>
    %274 = arith.index_cast %268 : i32 to index
    %c0_138 = arith.constant 0 : index
    %275 = vector.load %arg13[%274, %c0_138] : memref<64x256xf32, #tpu.memory_space<vmem>>, vector<8x256xf32>
    %276 = arith.select %18, %273, %275 : vector<8x256xi1>, vector<8x256xf32>
    %277 = arith.addf %271, %276 : vector<8x256xf32>
    %278 = vector.extract_strided_slice %277 {offsets = [0, 0], sizes = [8, 192], strides = [1, 1]} : vector<8x256xf32> to vector<8x192xf32>
    %279 = arith.negf %278 : vector<8x192xf32>
    %280 = math.exp %279 : vector<8x192xf32>
    %cst_139 = arith.constant 1.000000e+00 : f32
    %281 = vector.broadcast %cst_139 : f32 to vector<8x192xf32>
    %282 = arith.addf %281, %280 : vector<8x192xf32>
    %283 = arith.divf %281, %282 : vector<8x192xf32>
    %284 = vector.extract_strided_slice %277 {offsets = [0, 192], sizes = [8, 64], strides = [1, 1]} : vector<8x256xf32> to vector<8x64xf32>
    %285 = math.tanh %284 : vector<8x64xf32>
    %286 = vector.extract_strided_slice %283 {offsets = [0, 0], sizes = [8, 64], strides = [1, 1]} : vector<8x192xf32> to vector<8x64xf32>
    %287 = vector.extract_strided_slice %283 {offsets = [0, 64], sizes = [8, 64], strides = [1, 1]} : vector<8x192xf32> to vector<8x64xf32>
    %288 = vector.extract_strided_slice %283 {offsets = [0, 128], sizes = [8, 64], strides = [1, 1]} : vector<8x192xf32> to vector<8x64xf32>
    %c0_140 = arith.constant 0 : index
    %c0_141 = arith.constant 0 : index
    %289 = vector.load %arg15[%c0_140, %c0_141] : memref<8x64xf32, #tpu.memory_space<vmem>>, vector<8x64xf32>
    %290 = arith.mulf %287, %289 : vector<8x64xf32>
    %291 = arith.mulf %286, %285 : vector<8x64xf32>
    %292 = arith.addf %290, %291 : vector<8x64xf32>
    %293 = math.tanh %292 : vector<8x64xf32>
    %294 = arith.mulf %288, %293 : vector<8x64xf32>
    %c0_142 = arith.constant 0 : index
    %c0_143 = arith.constant 0 : index
    %295 = vector.load %arg15[%c0_142, %c0_143] : memref<8x64xf32, #tpu.memory_space<vmem>>, vector<8x64xf32>
    tpu.vector_store %arg15[%c0_142, %c0_143], %292 {strides = array<i32>} : memref<8x64xf32, #tpu.memory_space<vmem>>, vector<8x64xf32>,
    %c0_144 = arith.constant 0 : index
    %c0_145 = arith.constant 0 : index
    %296 = vector.load %arg14[%c0_144, %c0_145] : memref<8x64xf32, #tpu.memory_space<vmem>>, vector<8x64xf32>
    tpu.vector_store %arg14[%c0_144, %c0_145], %294 {strides = array<i32>} : memref<8x64xf32, #tpu.memory_space<vmem>>, vector<8x64xf32>,
    %297 = vector.extract_strided_slice %294 {offsets = [0, 0], sizes = [8, 32], strides = [1, 1]} : vector<8x64xf32> to vector<8x32xf32>
    %298 = arith.index_cast %266 : i32 to index
    %c0_146 = arith.constant 0 : index
    %299 = vector.load %arg11[%298, %c0_146] : memref<64x64xf32, #tpu.memory_space<vmem>>, vector<8x32xf32>
    tpu.vector_store %arg11[%298, %c0_146], %297 {strides = array<i32>} : memref<64x64xf32, #tpu.memory_space<vmem>>, vector<8x32xf32>,
    %300 = vector.extract_strided_slice %294 {offsets = [0, 32], sizes = [8, 32], strides = [1, 1]} : vector<8x64xf32> to vector<8x32xf32>
    %301 = arith.index_cast %268 : i32 to index
    %c32_147 = arith.constant 32 : index
    %302 = vector.load %arg11[%301, %c32_147] : memref<64x64xf32, #tpu.memory_space<vmem>>, vector<8x32xf32>
    tpu.vector_store %arg11[%301, %c32_147], %300 {strides = array<i32>} : memref<64x64xf32, #tpu.memory_space<vmem>>, vector<8x32xf32>,
    %c7_i32_148 = arith.constant 7 : i32
    %c7_i32_149 = arith.constant 7 : i32
    %303 = arith.subi %c7_i32_149, %c7_i32_148 : i32
    %c8_i32_150 = arith.constant 8 : i32
    %304 = arith.muli %c7_i32_148, %c8_i32_150 : i32
    %305 = tpu.assume_multiple %304, 8 : i32
    %c8_i32_151 = arith.constant 8 : i32
    %306 = arith.muli %303, %c8_i32_151 : i32
    %307 = tpu.assume_multiple %306, 8 : i32
    %c0_152 = arith.constant 0 : index
    %c0_153 = arith.constant 0 : index
    %308 = vector.load %arg14[%c0_152, %c0_153] : memref<8x64xf32, #tpu.memory_space<vmem>>, vector<8x64xf32>
    %c0_154 = arith.constant 0 : index
    %c0_155 = arith.constant 0 : index
    %309 = vector.load %arg2[%c0_154, %c0_155] : memref<64x256xf32, #tpu.memory_space<vmem>>, vector<64x256xf32>
    %cst_156 = arith.constant dense<0.000000e+00> : vector<8x256xf32>
    %310 = tpu.matmul %308, %309, %cst_156 {dimension_numbers = #tpu.dot_dimension_numbers<[1], [0], [0], [1], [0, 0, 1, 1], [], []>} : vector<8x64xf32>, vector<64x256xf32>, vector<8x256xf32> -> vector<8x256xf32>
    %311 = arith.index_cast %305 : i32 to index
    %c0_157 = arith.constant 0 : index
    %312 = vector.load %arg13[%311, %c0_157] : memref<64x256xf32, #tpu.memory_space<vmem>>, vector<8x256xf32>
    %313 = arith.index_cast %307 : i32 to index
    %c0_158 = arith.constant 0 : index
    %314 = vector.load %arg13[%313, %c0_158] : memref<64x256xf32, #tpu.memory_space<vmem>>, vector<8x256xf32>
    %315 = arith.select %18, %312, %314 : vector<8x256xi1>, vector<8x256xf32>
    %316 = arith.addf %310, %315 : vector<8x256xf32>
    %317 = vector.extract_strided_slice %316 {offsets = [0, 0], sizes = [8, 192], strides = [1, 1]} : vector<8x256xf32> to vector<8x192xf32>
    %318 = arith.negf %317 : vector<8x192xf32>
    %319 = math.exp %318 : vector<8x192xf32>
    %cst_159 = arith.constant 1.000000e+00 : f32
    %320 = vector.broadcast %cst_159 : f32 to vector<8x192xf32>
    %321 = arith.addf %320, %319 : vector<8x192xf32>
    %322 = arith.divf %320, %321 : vector<8x192xf32>
    %323 = vector.extract_strided_slice %316 {offsets = [0, 192], sizes = [8, 64], strides = [1, 1]} : vector<8x256xf32> to vector<8x64xf32>
    %324 = math.tanh %323 : vector<8x64xf32>
    %325 = vector.extract_strided_slice %322 {offsets = [0, 0], sizes = [8, 64], strides = [1, 1]} : vector<8x192xf32> to vector<8x64xf32>
    %326 = vector.extract_strided_slice %322 {offsets = [0, 64], sizes = [8, 64], strides = [1, 1]} : vector<8x192xf32> to vector<8x64xf32>
    %327 = vector.extract_strided_slice %322 {offsets = [0, 128], sizes = [8, 64], strides = [1, 1]} : vector<8x192xf32> to vector<8x64xf32>
    %c0_160 = arith.constant 0 : index
    %c0_161 = arith.constant 0 : index
    %328 = vector.load %arg15[%c0_160, %c0_161] : memref<8x64xf32, #tpu.memory_space<vmem>>, vector<8x64xf32>
    %329 = arith.mulf %326, %328 : vector<8x64xf32>
    %330 = arith.mulf %325, %324 : vector<8x64xf32>
    %331 = arith.addf %329, %330 : vector<8x64xf32>
    %332 = math.tanh %331 : vector<8x64xf32>
    %333 = arith.mulf %327, %332 : vector<8x64xf32>
    %c0_162 = arith.constant 0 : index
    %c0_163 = arith.constant 0 : index
    %334 = vector.load %arg15[%c0_162, %c0_163] : memref<8x64xf32, #tpu.memory_space<vmem>>, vector<8x64xf32>
    tpu.vector_store %arg15[%c0_162, %c0_163], %331 {strides = array<i32>} : memref<8x64xf32, #tpu.memory_space<vmem>>, vector<8x64xf32>,
    %c0_164 = arith.constant 0 : index
    %c0_165 = arith.constant 0 : index
    %335 = vector.load %arg14[%c0_164, %c0_165] : memref<8x64xf32, #tpu.memory_space<vmem>>, vector<8x64xf32>
    tpu.vector_store %arg14[%c0_164, %c0_165], %333 {strides = array<i32>} : memref<8x64xf32, #tpu.memory_space<vmem>>, vector<8x64xf32>,
    %336 = vector.extract_strided_slice %333 {offsets = [0, 0], sizes = [8, 32], strides = [1, 1]} : vector<8x64xf32> to vector<8x32xf32>
    %337 = arith.index_cast %305 : i32 to index
    %c0_166 = arith.constant 0 : index
    %338 = vector.load %arg11[%337, %c0_166] : memref<64x64xf32, #tpu.memory_space<vmem>>, vector<8x32xf32>
    tpu.vector_store %arg11[%337, %c0_166], %336 {strides = array<i32>} : memref<64x64xf32, #tpu.memory_space<vmem>>, vector<8x32xf32>,
    %339 = vector.extract_strided_slice %333 {offsets = [0, 32], sizes = [8, 32], strides = [1, 1]} : vector<8x64xf32> to vector<8x32xf32>
    %340 = arith.index_cast %307 : i32 to index
    %c32_167 = arith.constant 32 : index
    %341 = vector.load %arg11[%340, %c32_167] : memref<64x64xf32, #tpu.memory_space<vmem>>, vector<8x32xf32>
    tpu.vector_store %arg11[%340, %c32_167], %339 {strides = array<i32>} : memref<64x64xf32, #tpu.memory_space<vmem>>, vector<8x32xf32>,
    %c8_i32_168 = arith.constant 8 : i32
    %cst_169 = arith.constant 0.000000e+00 : f32
    %342 = vector.broadcast %cst_169 : f32 to vector<8x64xf32>
    %c0_170 = arith.constant 0 : index
    %c0_171 = arith.constant 0 : index
    %343 = vector.load %arg14[%c0_170, %c0_171] : memref<8x64xf32, #tpu.memory_space<vmem>>, vector<8x64xf32>
    tpu.vector_store %arg14[%c0_170, %c0_171], %342 {strides = array<i32>} : memref<8x64xf32, #tpu.memory_space<vmem>>, vector<8x64xf32>,
    %cst_172 = arith.constant 0.000000e+00 : f32
    %344 = vector.broadcast %cst_172 : f32 to vector<8x64xf32>
    %c0_173 = arith.constant 0 : index
    %c0_174 = arith.constant 0 : index
    %345 = vector.load %arg15[%c0_173, %c0_174] : memref<8x64xf32, #tpu.memory_space<vmem>>, vector<8x64xf32>
    tpu.vector_store %arg15[%c0_173, %c0_174], %344 {strides = array<i32>} : memref<8x64xf32, #tpu.memory_space<vmem>>, vector<8x64xf32>,
    %c0_175 = arith.constant 0 : index
    %c0_176 = arith.constant 0 : index
    %346 = vector.load %arg11[%c0_175, %c0_176] : memref<64x64xf32, #tpu.memory_space<vmem>>, vector<64x64xf32>
    %c0_177 = arith.constant 0 : index
    %c0_178 = arith.constant 0 : index
    %347 = vector.load %arg4[%c0_177, %c0_178] : memref<64x256xf32, #tpu.memory_space<vmem>>, vector<64x256xf32>
    %cst_179 = arith.constant dense<0.000000e+00> : vector<64x256xf32>
    %348 = tpu.matmul %346, %347, %cst_179 {dimension_numbers = #tpu.dot_dimension_numbers<[1], [0], [0], [1], [0, 0, 1, 1], [], []>} : vector<64x64xf32>, vector<64x256xf32>, vector<64x256xf32> -> vector<64x256xf32>
    %c0_180 = arith.constant 0 : index
    %c0_181 = arith.constant 0 : index
    %349 = vector.load %arg6[%c0_180, %c0_181] : memref<1x256xf32, #tpu.memory_space<vmem>>, vector<1x256xf32>
    %350 = vector.broadcast %349 : vector<1x256xf32> to vector<64x256xf32>
    %351 = arith.addf %348, %350 : vector<64x256xf32>
    %c0_182 = arith.constant 0 : index
    %c0_183 = arith.constant 0 : index
    %352 = vector.load %arg13[%c0_182, %c0_183] : memref<64x256xf32, #tpu.memory_space<vmem>>, vector<64x256xf32>
    tpu.vector_store %arg13[%c0_182, %c0_183], %351 {strides = array<i32>} : memref<64x256xf32, #tpu.memory_space<vmem>>, vector<64x256xf32>,
    %c0_i32_184 = arith.constant 0 : i32
    %c7_i32_185 = arith.constant 7 : i32
    %353 = arith.subi %c7_i32_185, %c0_i32_184 : i32
    %c8_i32_186 = arith.constant 8 : i32
    %354 = arith.muli %c0_i32_184, %c8_i32_186 : i32
    %355 = tpu.assume_multiple %354, 8 : i32
    %c8_i32_187 = arith.constant 8 : i32
    %356 = arith.muli %353, %c8_i32_187 : i32
    %357 = tpu.assume_multiple %356, 8 : i32
    %c0_188 = arith.constant 0 : index
    %c0_189 = arith.constant 0 : index
    %358 = vector.load %arg14[%c0_188, %c0_189] : memref<8x64xf32, #tpu.memory_space<vmem>>, vector<8x64xf32>
    %c0_190 = arith.constant 0 : index
    %c0_191 = arith.constant 0 : index
    %359 = vector.load %arg5[%c0_190, %c0_191] : memref<64x256xf32, #tpu.memory_space<vmem>>, vector<64x256xf32>
    %cst_192 = arith.constant dense<0.000000e+00> : vector<8x256xf32>
    %360 = tpu.matmul %358, %359, %cst_192 {dimension_numbers = #tpu.dot_dimension_numbers<[1], [0], [0], [1], [0, 0, 1, 1], [], []>} : vector<8x64xf32>, vector<64x256xf32>, vector<8x256xf32> -> vector<8x256xf32>
    %361 = arith.index_cast %355 : i32 to index
    %c0_193 = arith.constant 0 : index
    %362 = vector.load %arg13[%361, %c0_193] : memref<64x256xf32, #tpu.memory_space<vmem>>, vector<8x256xf32>
    %363 = arith.index_cast %357 : i32 to index
    %c0_194 = arith.constant 0 : index
    %364 = vector.load %arg13[%363, %c0_194] : memref<64x256xf32, #tpu.memory_space<vmem>>, vector<8x256xf32>
    %365 = arith.select %18, %362, %364 : vector<8x256xi1>, vector<8x256xf32>
    %366 = arith.addf %360, %365 : vector<8x256xf32>
    %367 = vector.extract_strided_slice %366 {offsets = [0, 0], sizes = [8, 192], strides = [1, 1]} : vector<8x256xf32> to vector<8x192xf32>
    %368 = arith.negf %367 : vector<8x192xf32>
    %369 = math.exp %368 : vector<8x192xf32>
    %cst_195 = arith.constant 1.000000e+00 : f32
    %370 = vector.broadcast %cst_195 : f32 to vector<8x192xf32>
    %371 = arith.addf %370, %369 : vector<8x192xf32>
    %372 = arith.divf %370, %371 : vector<8x192xf32>
    %373 = vector.extract_strided_slice %366 {offsets = [0, 192], sizes = [8, 64], strides = [1, 1]} : vector<8x256xf32> to vector<8x64xf32>
    %374 = math.tanh %373 : vector<8x64xf32>
    %375 = vector.extract_strided_slice %372 {offsets = [0, 0], sizes = [8, 64], strides = [1, 1]} : vector<8x192xf32> to vector<8x64xf32>
    %376 = vector.extract_strided_slice %372 {offsets = [0, 64], sizes = [8, 64], strides = [1, 1]} : vector<8x192xf32> to vector<8x64xf32>
    %377 = vector.extract_strided_slice %372 {offsets = [0, 128], sizes = [8, 64], strides = [1, 1]} : vector<8x192xf32> to vector<8x64xf32>
    %c0_196 = arith.constant 0 : index
    %c0_197 = arith.constant 0 : index
    %378 = vector.load %arg15[%c0_196, %c0_197] : memref<8x64xf32, #tpu.memory_space<vmem>>, vector<8x64xf32>
    %379 = arith.mulf %376, %378 : vector<8x64xf32>
    %380 = arith.mulf %375, %374 : vector<8x64xf32>
    %381 = arith.addf %379, %380 : vector<8x64xf32>
    %382 = math.tanh %381 : vector<8x64xf32>
    %383 = arith.mulf %377, %382 : vector<8x64xf32>
    %c0_198 = arith.constant 0 : index
    %c0_199 = arith.constant 0 : index
    %384 = vector.load %arg15[%c0_198, %c0_199] : memref<8x64xf32, #tpu.memory_space<vmem>>, vector<8x64xf32>
    tpu.vector_store %arg15[%c0_198, %c0_199], %381 {strides = array<i32>} : memref<8x64xf32, #tpu.memory_space<vmem>>, vector<8x64xf32>,
    %c0_200 = arith.constant 0 : index
    %c0_201 = arith.constant 0 : index
    %385 = vector.load %arg14[%c0_200, %c0_201] : memref<8x64xf32, #tpu.memory_space<vmem>>, vector<8x64xf32>
    tpu.vector_store %arg14[%c0_200, %c0_201], %383 {strides = array<i32>} : memref<8x64xf32, #tpu.memory_space<vmem>>, vector<8x64xf32>,
    %386 = vector.extract_strided_slice %383 {offsets = [0, 0], sizes = [8, 32], strides = [1, 1]} : vector<8x64xf32> to vector<8x32xf32>
    %387 = arith.index_cast %355 : i32 to index
    %c0_202 = arith.constant 0 : index
    %388 = vector.load %arg12[%387, %c0_202] : memref<64x64xf32, #tpu.memory_space<vmem>>, vector<8x32xf32>
    tpu.vector_store %arg12[%387, %c0_202], %386 {strides = array<i32>} : memref<64x64xf32, #tpu.memory_space<vmem>>, vector<8x32xf32>,
    %389 = vector.extract_strided_slice %383 {offsets = [0, 32], sizes = [8, 32], strides = [1, 1]} : vector<8x64xf32> to vector<8x32xf32>
    %390 = arith.index_cast %357 : i32 to index
    %c32_203 = arith.constant 32 : index
    %391 = vector.load %arg12[%390, %c32_203] : memref<64x64xf32, #tpu.memory_space<vmem>>, vector<8x32xf32>
    tpu.vector_store %arg12[%390, %c32_203], %389 {strides = array<i32>} : memref<64x64xf32, #tpu.memory_space<vmem>>, vector<8x32xf32>,
    %c1_i32_204 = arith.constant 1 : i32
    %c7_i32_205 = arith.constant 7 : i32
    %392 = arith.subi %c7_i32_205, %c1_i32_204 : i32
    %c8_i32_206 = arith.constant 8 : i32
    %393 = arith.muli %c1_i32_204, %c8_i32_206 : i32
    %394 = tpu.assume_multiple %393, 8 : i32
    %c8_i32_207 = arith.constant 8 : i32
    %395 = arith.muli %392, %c8_i32_207 : i32
    %396 = tpu.assume_multiple %395, 8 : i32
    %c0_208 = arith.constant 0 : index
    %c0_209 = arith.constant 0 : index
    %397 = vector.load %arg14[%c0_208, %c0_209] : memref<8x64xf32, #tpu.memory_space<vmem>>, vector<8x64xf32>
    %c0_210 = arith.constant 0 : index
    %c0_211 = arith.constant 0 : index
    %398 = vector.load %arg5[%c0_210, %c0_211] : memref<64x256xf32, #tpu.memory_space<vmem>>, vector<64x256xf32>
    %cst_212 = arith.constant dense<0.000000e+00> : vector<8x256xf32>
    %399 = tpu.matmul %397, %398, %cst_212 {dimension_numbers = #tpu.dot_dimension_numbers<[1], [0], [0], [1], [0, 0, 1, 1], [], []>} : vector<8x64xf32>, vector<64x256xf32>, vector<8x256xf32> -> vector<8x256xf32>
    %400 = arith.index_cast %394 : i32 to index
    %c0_213 = arith.constant 0 : index
    %401 = vector.load %arg13[%400, %c0_213] : memref<64x256xf32, #tpu.memory_space<vmem>>, vector<8x256xf32>
    %402 = arith.index_cast %396 : i32 to index
    %c0_214 = arith.constant 0 : index
    %403 = vector.load %arg13[%402, %c0_214] : memref<64x256xf32, #tpu.memory_space<vmem>>, vector<8x256xf32>
    %404 = arith.select %18, %401, %403 : vector<8x256xi1>, vector<8x256xf32>
    %405 = arith.addf %399, %404 : vector<8x256xf32>
    %406 = vector.extract_strided_slice %405 {offsets = [0, 0], sizes = [8, 192], strides = [1, 1]} : vector<8x256xf32> to vector<8x192xf32>
    %407 = arith.negf %406 : vector<8x192xf32>
    %408 = math.exp %407 : vector<8x192xf32>
    %cst_215 = arith.constant 1.000000e+00 : f32
    %409 = vector.broadcast %cst_215 : f32 to vector<8x192xf32>
    %410 = arith.addf %409, %408 : vector<8x192xf32>
    %411 = arith.divf %409, %410 : vector<8x192xf32>
    %412 = vector.extract_strided_slice %405 {offsets = [0, 192], sizes = [8, 64], strides = [1, 1]} : vector<8x256xf32> to vector<8x64xf32>
    %413 = math.tanh %412 : vector<8x64xf32>
    %414 = vector.extract_strided_slice %411 {offsets = [0, 0], sizes = [8, 64], strides = [1, 1]} : vector<8x192xf32> to vector<8x64xf32>
    %415 = vector.extract_strided_slice %411 {offsets = [0, 64], sizes = [8, 64], strides = [1, 1]} : vector<8x192xf32> to vector<8x64xf32>
    %416 = vector.extract_strided_slice %411 {offsets = [0, 128], sizes = [8, 64], strides = [1, 1]} : vector<8x192xf32> to vector<8x64xf32>
    %c0_216 = arith.constant 0 : index
    %c0_217 = arith.constant 0 : index
    %417 = vector.load %arg15[%c0_216, %c0_217] : memref<8x64xf32, #tpu.memory_space<vmem>>, vector<8x64xf32>
    %418 = arith.mulf %415, %417 : vector<8x64xf32>
    %419 = arith.mulf %414, %413 : vector<8x64xf32>
    %420 = arith.addf %418, %419 : vector<8x64xf32>
    %421 = math.tanh %420 : vector<8x64xf32>
    %422 = arith.mulf %416, %421 : vector<8x64xf32>
    %c0_218 = arith.constant 0 : index
    %c0_219 = arith.constant 0 : index
    %423 = vector.load %arg15[%c0_218, %c0_219] : memref<8x64xf32, #tpu.memory_space<vmem>>, vector<8x64xf32>
    tpu.vector_store %arg15[%c0_218, %c0_219], %420 {strides = array<i32>} : memref<8x64xf32, #tpu.memory_space<vmem>>, vector<8x64xf32>,
    %c0_220 = arith.constant 0 : index
    %c0_221 = arith.constant 0 : index
    %424 = vector.load %arg14[%c0_220, %c0_221] : memref<8x64xf32, #tpu.memory_space<vmem>>, vector<8x64xf32>
    tpu.vector_store %arg14[%c0_220, %c0_221], %422 {strides = array<i32>} : memref<8x64xf32, #tpu.memory_space<vmem>>, vector<8x64xf32>,
    %425 = vector.extract_strided_slice %422 {offsets = [0, 0], sizes = [8, 32], strides = [1, 1]} : vector<8x64xf32> to vector<8x32xf32>
    %426 = arith.index_cast %394 : i32 to index
    %c0_222 = arith.constant 0 : index
    %427 = vector.load %arg12[%426, %c0_222] : memref<64x64xf32, #tpu.memory_space<vmem>>, vector<8x32xf32>
    tpu.vector_store %arg12[%426, %c0_222], %425 {strides = array<i32>} : memref<64x64xf32, #tpu.memory_space<vmem>>, vector<8x32xf32>,
    %428 = vector.extract_strided_slice %422 {offsets = [0, 32], sizes = [8, 32], strides = [1, 1]} : vector<8x64xf32> to vector<8x32xf32>
    %429 = arith.index_cast %396 : i32 to index
    %c32_223 = arith.constant 32 : index
    %430 = vector.load %arg12[%429, %c32_223] : memref<64x64xf32, #tpu.memory_space<vmem>>, vector<8x32xf32>
    tpu.vector_store %arg12[%429, %c32_223], %428 {strides = array<i32>} : memref<64x64xf32, #tpu.memory_space<vmem>>, vector<8x32xf32>,
    %c2_i32_224 = arith.constant 2 : i32
    %c7_i32_225 = arith.constant 7 : i32
    %431 = arith.subi %c7_i32_225, %c2_i32_224 : i32
    %c8_i32_226 = arith.constant 8 : i32
    %432 = arith.muli %c2_i32_224, %c8_i32_226 : i32
    %433 = tpu.assume_multiple %432, 8 : i32
    %c8_i32_227 = arith.constant 8 : i32
    %434 = arith.muli %431, %c8_i32_227 : i32
    %435 = tpu.assume_multiple %434, 8 : i32
    %c0_228 = arith.constant 0 : index
    %c0_229 = arith.constant 0 : index
    %436 = vector.load %arg14[%c0_228, %c0_229] : memref<8x64xf32, #tpu.memory_space<vmem>>, vector<8x64xf32>
    %c0_230 = arith.constant 0 : index
    %c0_231 = arith.constant 0 : index
    %437 = vector.load %arg5[%c0_230, %c0_231] : memref<64x256xf32, #tpu.memory_space<vmem>>, vector<64x256xf32>
    %cst_232 = arith.constant dense<0.000000e+00> : vector<8x256xf32>
    %438 = tpu.matmul %436, %437, %cst_232 {dimension_numbers = #tpu.dot_dimension_numbers<[1], [0], [0], [1], [0, 0, 1, 1], [], []>} : vector<8x64xf32>, vector<64x256xf32>, vector<8x256xf32> -> vector<8x256xf32>
    %439 = arith.index_cast %433 : i32 to index
    %c0_233 = arith.constant 0 : index
    %440 = vector.load %arg13[%439, %c0_233] : memref<64x256xf32, #tpu.memory_space<vmem>>, vector<8x256xf32>
    %441 = arith.index_cast %435 : i32 to index
    %c0_234 = arith.constant 0 : index
    %442 = vector.load %arg13[%441, %c0_234] : memref<64x256xf32, #tpu.memory_space<vmem>>, vector<8x256xf32>
    %443 = arith.select %18, %440, %442 : vector<8x256xi1>, vector<8x256xf32>
    %444 = arith.addf %438, %443 : vector<8x256xf32>
    %445 = vector.extract_strided_slice %444 {offsets = [0, 0], sizes = [8, 192], strides = [1, 1]} : vector<8x256xf32> to vector<8x192xf32>
    %446 = arith.negf %445 : vector<8x192xf32>
    %447 = math.exp %446 : vector<8x192xf32>
    %cst_235 = arith.constant 1.000000e+00 : f32
    %448 = vector.broadcast %cst_235 : f32 to vector<8x192xf32>
    %449 = arith.addf %448, %447 : vector<8x192xf32>
    %450 = arith.divf %448, %449 : vector<8x192xf32>
    %451 = vector.extract_strided_slice %444 {offsets = [0, 192], sizes = [8, 64], strides = [1, 1]} : vector<8x256xf32> to vector<8x64xf32>
    %452 = math.tanh %451 : vector<8x64xf32>
    %453 = vector.extract_strided_slice %450 {offsets = [0, 0], sizes = [8, 64], strides = [1, 1]} : vector<8x192xf32> to vector<8x64xf32>
    %454 = vector.extract_strided_slice %450 {offsets = [0, 64], sizes = [8, 64], strides = [1, 1]} : vector<8x192xf32> to vector<8x64xf32>
    %455 = vector.extract_strided_slice %450 {offsets = [0, 128], sizes = [8, 64], strides = [1, 1]} : vector<8x192xf32> to vector<8x64xf32>
    %c0_236 = arith.constant 0 : index
    %c0_237 = arith.constant 0 : index
    %456 = vector.load %arg15[%c0_236, %c0_237] : memref<8x64xf32, #tpu.memory_space<vmem>>, vector<8x64xf32>
    %457 = arith.mulf %454, %456 : vector<8x64xf32>
    %458 = arith.mulf %453, %452 : vector<8x64xf32>
    %459 = arith.addf %457, %458 : vector<8x64xf32>
    %460 = math.tanh %459 : vector<8x64xf32>
    %461 = arith.mulf %455, %460 : vector<8x64xf32>
    %c0_238 = arith.constant 0 : index
    %c0_239 = arith.constant 0 : index
    %462 = vector.load %arg15[%c0_238, %c0_239] : memref<8x64xf32, #tpu.memory_space<vmem>>, vector<8x64xf32>
    tpu.vector_store %arg15[%c0_238, %c0_239], %459 {strides = array<i32>} : memref<8x64xf32, #tpu.memory_space<vmem>>, vector<8x64xf32>,
    %c0_240 = arith.constant 0 : index
    %c0_241 = arith.constant 0 : index
    %463 = vector.load %arg14[%c0_240, %c0_241] : memref<8x64xf32, #tpu.memory_space<vmem>>, vector<8x64xf32>
    tpu.vector_store %arg14[%c0_240, %c0_241], %461 {strides = array<i32>} : memref<8x64xf32, #tpu.memory_space<vmem>>, vector<8x64xf32>,
    %464 = vector.extract_strided_slice %461 {offsets = [0, 0], sizes = [8, 32], strides = [1, 1]} : vector<8x64xf32> to vector<8x32xf32>
    %465 = arith.index_cast %433 : i32 to index
    %c0_242 = arith.constant 0 : index
    %466 = vector.load %arg12[%465, %c0_242] : memref<64x64xf32, #tpu.memory_space<vmem>>, vector<8x32xf32>
    tpu.vector_store %arg12[%465, %c0_242], %464 {strides = array<i32>} : memref<64x64xf32, #tpu.memory_space<vmem>>, vector<8x32xf32>,
    %467 = vector.extract_strided_slice %461 {offsets = [0, 32], sizes = [8, 32], strides = [1, 1]} : vector<8x64xf32> to vector<8x32xf32>
    %468 = arith.index_cast %435 : i32 to index
    %c32_243 = arith.constant 32 : index
    %469 = vector.load %arg12[%468, %c32_243] : memref<64x64xf32, #tpu.memory_space<vmem>>, vector<8x32xf32>
    tpu.vector_store %arg12[%468, %c32_243], %467 {strides = array<i32>} : memref<64x64xf32, #tpu.memory_space<vmem>>, vector<8x32xf32>,
    %c3_i32_244 = arith.constant 3 : i32
    %c7_i32_245 = arith.constant 7 : i32
    %470 = arith.subi %c7_i32_245, %c3_i32_244 : i32
    %c8_i32_246 = arith.constant 8 : i32
    %471 = arith.muli %c3_i32_244, %c8_i32_246 : i32
    %472 = tpu.assume_multiple %471, 8 : i32
    %c8_i32_247 = arith.constant 8 : i32
    %473 = arith.muli %470, %c8_i32_247 : i32
    %474 = tpu.assume_multiple %473, 8 : i32
    %c0_248 = arith.constant 0 : index
    %c0_249 = arith.constant 0 : index
    %475 = vector.load %arg14[%c0_248, %c0_249] : memref<8x64xf32, #tpu.memory_space<vmem>>, vector<8x64xf32>
    %c0_250 = arith.constant 0 : index
    %c0_251 = arith.constant 0 : index
    %476 = vector.load %arg5[%c0_250, %c0_251] : memref<64x256xf32, #tpu.memory_space<vmem>>, vector<64x256xf32>
    %cst_252 = arith.constant dense<0.000000e+00> : vector<8x256xf32>
    %477 = tpu.matmul %475, %476, %cst_252 {dimension_numbers = #tpu.dot_dimension_numbers<[1], [0], [0], [1], [0, 0, 1, 1], [], []>} : vector<8x64xf32>, vector<64x256xf32>, vector<8x256xf32> -> vector<8x256xf32>
    %478 = arith.index_cast %472 : i32 to index
    %c0_253 = arith.constant 0 : index
    %479 = vector.load %arg13[%478, %c0_253] : memref<64x256xf32, #tpu.memory_space<vmem>>, vector<8x256xf32>
    %480 = arith.index_cast %474 : i32 to index
    %c0_254 = arith.constant 0 : index
    %481 = vector.load %arg13[%480, %c0_254] : memref<64x256xf32, #tpu.memory_space<vmem>>, vector<8x256xf32>
    %482 = arith.select %18, %479, %481 : vector<8x256xi1>, vector<8x256xf32>
    %483 = arith.addf %477, %482 : vector<8x256xf32>
    %484 = vector.extract_strided_slice %483 {offsets = [0, 0], sizes = [8, 192], strides = [1, 1]} : vector<8x256xf32> to vector<8x192xf32>
    %485 = arith.negf %484 : vector<8x192xf32>
    %486 = math.exp %485 : vector<8x192xf32>
    %cst_255 = arith.constant 1.000000e+00 : f32
    %487 = vector.broadcast %cst_255 : f32 to vector<8x192xf32>
    %488 = arith.addf %487, %486 : vector<8x192xf32>
    %489 = arith.divf %487, %488 : vector<8x192xf32>
    %490 = vector.extract_strided_slice %483 {offsets = [0, 192], sizes = [8, 64], strides = [1, 1]} : vector<8x256xf32> to vector<8x64xf32>
    %491 = math.tanh %490 : vector<8x64xf32>
    %492 = vector.extract_strided_slice %489 {offsets = [0, 0], sizes = [8, 64], strides = [1, 1]} : vector<8x192xf32> to vector<8x64xf32>
    %493 = vector.extract_strided_slice %489 {offsets = [0, 64], sizes = [8, 64], strides = [1, 1]} : vector<8x192xf32> to vector<8x64xf32>
    %494 = vector.extract_strided_slice %489 {offsets = [0, 128], sizes = [8, 64], strides = [1, 1]} : vector<8x192xf32> to vector<8x64xf32>
    %c0_256 = arith.constant 0 : index
    %c0_257 = arith.constant 0 : index
    %495 = vector.load %arg15[%c0_256, %c0_257] : memref<8x64xf32, #tpu.memory_space<vmem>>, vector<8x64xf32>
    %496 = arith.mulf %493, %495 : vector<8x64xf32>
    %497 = arith.mulf %492, %491 : vector<8x64xf32>
    %498 = arith.addf %496, %497 : vector<8x64xf32>
    %499 = math.tanh %498 : vector<8x64xf32>
    %500 = arith.mulf %494, %499 : vector<8x64xf32>
    %c0_258 = arith.constant 0 : index
    %c0_259 = arith.constant 0 : index
    %501 = vector.load %arg15[%c0_258, %c0_259] : memref<8x64xf32, #tpu.memory_space<vmem>>, vector<8x64xf32>
    tpu.vector_store %arg15[%c0_258, %c0_259], %498 {strides = array<i32>} : memref<8x64xf32, #tpu.memory_space<vmem>>, vector<8x64xf32>,
    %c0_260 = arith.constant 0 : index
    %c0_261 = arith.constant 0 : index
    %502 = vector.load %arg14[%c0_260, %c0_261] : memref<8x64xf32, #tpu.memory_space<vmem>>, vector<8x64xf32>
    tpu.vector_store %arg14[%c0_260, %c0_261], %500 {strides = array<i32>} : memref<8x64xf32, #tpu.memory_space<vmem>>, vector<8x64xf32>,
    %503 = vector.extract_strided_slice %500 {offsets = [0, 0], sizes = [8, 32], strides = [1, 1]} : vector<8x64xf32> to vector<8x32xf32>
    %504 = arith.index_cast %472 : i32 to index
    %c0_262 = arith.constant 0 : index
    %505 = vector.load %arg12[%504, %c0_262] : memref<64x64xf32, #tpu.memory_space<vmem>>, vector<8x32xf32>
    tpu.vector_store %arg12[%504, %c0_262], %503 {strides = array<i32>} : memref<64x64xf32, #tpu.memory_space<vmem>>, vector<8x32xf32>,
    %506 = vector.extract_strided_slice %500 {offsets = [0, 32], sizes = [8, 32], strides = [1, 1]} : vector<8x64xf32> to vector<8x32xf32>
    %507 = arith.index_cast %474 : i32 to index
    %c32_263 = arith.constant 32 : index
    %508 = vector.load %arg12[%507, %c32_263] : memref<64x64xf32, #tpu.memory_space<vmem>>, vector<8x32xf32>
    tpu.vector_store %arg12[%507, %c32_263], %506 {strides = array<i32>} : memref<64x64xf32, #tpu.memory_space<vmem>>, vector<8x32xf32>,
    %c4_i32_264 = arith.constant 4 : i32
    %c7_i32_265 = arith.constant 7 : i32
    %509 = arith.subi %c7_i32_265, %c4_i32_264 : i32
    %c8_i32_266 = arith.constant 8 : i32
    %510 = arith.muli %c4_i32_264, %c8_i32_266 : i32
    %511 = tpu.assume_multiple %510, 8 : i32
    %c8_i32_267 = arith.constant 8 : i32
    %512 = arith.muli %509, %c8_i32_267 : i32
    %513 = tpu.assume_multiple %512, 8 : i32
    %c0_268 = arith.constant 0 : index
    %c0_269 = arith.constant 0 : index
    %514 = vector.load %arg14[%c0_268, %c0_269] : memref<8x64xf32, #tpu.memory_space<vmem>>, vector<8x64xf32>
    %c0_270 = arith.constant 0 : index
    %c0_271 = arith.constant 0 : index
    %515 = vector.load %arg5[%c0_270, %c0_271] : memref<64x256xf32, #tpu.memory_space<vmem>>, vector<64x256xf32>
    %cst_272 = arith.constant dense<0.000000e+00> : vector<8x256xf32>
    %516 = tpu.matmul %514, %515, %cst_272 {dimension_numbers = #tpu.dot_dimension_numbers<[1], [0], [0], [1], [0, 0, 1, 1], [], []>} : vector<8x64xf32>, vector<64x256xf32>, vector<8x256xf32> -> vector<8x256xf32>
    %517 = arith.index_cast %511 : i32 to index
    %c0_273 = arith.constant 0 : index
    %518 = vector.load %arg13[%517, %c0_273] : memref<64x256xf32, #tpu.memory_space<vmem>>, vector<8x256xf32>
    %519 = arith.index_cast %513 : i32 to index
    %c0_274 = arith.constant 0 : index
    %520 = vector.load %arg13[%519, %c0_274] : memref<64x256xf32, #tpu.memory_space<vmem>>, vector<8x256xf32>
    %521 = arith.select %18, %518, %520 : vector<8x256xi1>, vector<8x256xf32>
    %522 = arith.addf %516, %521 : vector<8x256xf32>
    %523 = vector.extract_strided_slice %522 {offsets = [0, 0], sizes = [8, 192], strides = [1, 1]} : vector<8x256xf32> to vector<8x192xf32>
    %524 = arith.negf %523 : vector<8x192xf32>
    %525 = math.exp %524 : vector<8x192xf32>
    %cst_275 = arith.constant 1.000000e+00 : f32
    %526 = vector.broadcast %cst_275 : f32 to vector<8x192xf32>
    %527 = arith.addf %526, %525 : vector<8x192xf32>
    %528 = arith.divf %526, %527 : vector<8x192xf32>
    %529 = vector.extract_strided_slice %522 {offsets = [0, 192], sizes = [8, 64], strides = [1, 1]} : vector<8x256xf32> to vector<8x64xf32>
    %530 = math.tanh %529 : vector<8x64xf32>
    %531 = vector.extract_strided_slice %528 {offsets = [0, 0], sizes = [8, 64], strides = [1, 1]} : vector<8x192xf32> to vector<8x64xf32>
    %532 = vector.extract_strided_slice %528 {offsets = [0, 64], sizes = [8, 64], strides = [1, 1]} : vector<8x192xf32> to vector<8x64xf32>
    %533 = vector.extract_strided_slice %528 {offsets = [0, 128], sizes = [8, 64], strides = [1, 1]} : vector<8x192xf32> to vector<8x64xf32>
    %c0_276 = arith.constant 0 : index
    %c0_277 = arith.constant 0 : index
    %534 = vector.load %arg15[%c0_276, %c0_277] : memref<8x64xf32, #tpu.memory_space<vmem>>, vector<8x64xf32>
    %535 = arith.mulf %532, %534 : vector<8x64xf32>
    %536 = arith.mulf %531, %530 : vector<8x64xf32>
    %537 = arith.addf %535, %536 : vector<8x64xf32>
    %538 = math.tanh %537 : vector<8x64xf32>
    %539 = arith.mulf %533, %538 : vector<8x64xf32>
    %c0_278 = arith.constant 0 : index
    %c0_279 = arith.constant 0 : index
    %540 = vector.load %arg15[%c0_278, %c0_279] : memref<8x64xf32, #tpu.memory_space<vmem>>, vector<8x64xf32>
    tpu.vector_store %arg15[%c0_278, %c0_279], %537 {strides = array<i32>} : memref<8x64xf32, #tpu.memory_space<vmem>>, vector<8x64xf32>,
    %c0_280 = arith.constant 0 : index
    %c0_281 = arith.constant 0 : index
    %541 = vector.load %arg14[%c0_280, %c0_281] : memref<8x64xf32, #tpu.memory_space<vmem>>, vector<8x64xf32>
    tpu.vector_store %arg14[%c0_280, %c0_281], %539 {strides = array<i32>} : memref<8x64xf32, #tpu.memory_space<vmem>>, vector<8x64xf32>,
    %542 = vector.extract_strided_slice %539 {offsets = [0, 0], sizes = [8, 32], strides = [1, 1]} : vector<8x64xf32> to vector<8x32xf32>
    %543 = arith.index_cast %511 : i32 to index
    %c0_282 = arith.constant 0 : index
    %544 = vector.load %arg12[%543, %c0_282] : memref<64x64xf32, #tpu.memory_space<vmem>>, vector<8x32xf32>
    tpu.vector_store %arg12[%543, %c0_282], %542 {strides = array<i32>} : memref<64x64xf32, #tpu.memory_space<vmem>>, vector<8x32xf32>,
    %545 = vector.extract_strided_slice %539 {offsets = [0, 32], sizes = [8, 32], strides = [1, 1]} : vector<8x64xf32> to vector<8x32xf32>
    %546 = arith.index_cast %513 : i32 to index
    %c32_283 = arith.constant 32 : index
    %547 = vector.load %arg12[%546, %c32_283] : memref<64x64xf32, #tpu.memory_space<vmem>>, vector<8x32xf32>
    tpu.vector_store %arg12[%546, %c32_283], %545 {strides = array<i32>} : memref<64x64xf32, #tpu.memory_space<vmem>>, vector<8x32xf32>,
    %c5_i32_284 = arith.constant 5 : i32
    %c7_i32_285 = arith.constant 7 : i32
    %548 = arith.subi %c7_i32_285, %c5_i32_284 : i32
    %c8_i32_286 = arith.constant 8 : i32
    %549 = arith.muli %c5_i32_284, %c8_i32_286 : i32
    %550 = tpu.assume_multiple %549, 8 : i32
    %c8_i32_287 = arith.constant 8 : i32
    %551 = arith.muli %548, %c8_i32_287 : i32
    %552 = tpu.assume_multiple %551, 8 : i32
    %c0_288 = arith.constant 0 : index
    %c0_289 = arith.constant 0 : index
    %553 = vector.load %arg14[%c0_288, %c0_289] : memref<8x64xf32, #tpu.memory_space<vmem>>, vector<8x64xf32>
    %c0_290 = arith.constant 0 : index
    %c0_291 = arith.constant 0 : index
    %554 = vector.load %arg5[%c0_290, %c0_291] : memref<64x256xf32, #tpu.memory_space<vmem>>, vector<64x256xf32>
    %cst_292 = arith.constant dense<0.000000e+00> : vector<8x256xf32>
    %555 = tpu.matmul %553, %554, %cst_292 {dimension_numbers = #tpu.dot_dimension_numbers<[1], [0], [0], [1], [0, 0, 1, 1], [], []>} : vector<8x64xf32>, vector<64x256xf32>, vector<8x256xf32> -> vector<8x256xf32>
    %556 = arith.index_cast %550 : i32 to index
    %c0_293 = arith.constant 0 : index
    %557 = vector.load %arg13[%556, %c0_293] : memref<64x256xf32, #tpu.memory_space<vmem>>, vector<8x256xf32>
    %558 = arith.index_cast %552 : i32 to index
    %c0_294 = arith.constant 0 : index
    %559 = vector.load %arg13[%558, %c0_294] : memref<64x256xf32, #tpu.memory_space<vmem>>, vector<8x256xf32>
    %560 = arith.select %18, %557, %559 : vector<8x256xi1>, vector<8x256xf32>
    %561 = arith.addf %555, %560 : vector<8x256xf32>
    %562 = vector.extract_strided_slice %561 {offsets = [0, 0], sizes = [8, 192], strides = [1, 1]} : vector<8x256xf32> to vector<8x192xf32>
    %563 = arith.negf %562 : vector<8x192xf32>
    %564 = math.exp %563 : vector<8x192xf32>
    %cst_295 = arith.constant 1.000000e+00 : f32
    %565 = vector.broadcast %cst_295 : f32 to vector<8x192xf32>
    %566 = arith.addf %565, %564 : vector<8x192xf32>
    %567 = arith.divf %565, %566 : vector<8x192xf32>
    %568 = vector.extract_strided_slice %561 {offsets = [0, 192], sizes = [8, 64], strides = [1, 1]} : vector<8x256xf32> to vector<8x64xf32>
    %569 = math.tanh %568 : vector<8x64xf32>
    %570 = vector.extract_strided_slice %567 {offsets = [0, 0], sizes = [8, 64], strides = [1, 1]} : vector<8x192xf32> to vector<8x64xf32>
    %571 = vector.extract_strided_slice %567 {offsets = [0, 64], sizes = [8, 64], strides = [1, 1]} : vector<8x192xf32> to vector<8x64xf32>
    %572 = vector.extract_strided_slice %567 {offsets = [0, 128], sizes = [8, 64], strides = [1, 1]} : vector<8x192xf32> to vector<8x64xf32>
    %c0_296 = arith.constant 0 : index
    %c0_297 = arith.constant 0 : index
    %573 = vector.load %arg15[%c0_296, %c0_297] : memref<8x64xf32, #tpu.memory_space<vmem>>, vector<8x64xf32>
    %574 = arith.mulf %571, %573 : vector<8x64xf32>
    %575 = arith.mulf %570, %569 : vector<8x64xf32>
    %576 = arith.addf %574, %575 : vector<8x64xf32>
    %577 = math.tanh %576 : vector<8x64xf32>
    %578 = arith.mulf %572, %577 : vector<8x64xf32>
    %c0_298 = arith.constant 0 : index
    %c0_299 = arith.constant 0 : index
    %579 = vector.load %arg15[%c0_298, %c0_299] : memref<8x64xf32, #tpu.memory_space<vmem>>, vector<8x64xf32>
    tpu.vector_store %arg15[%c0_298, %c0_299], %576 {strides = array<i32>} : memref<8x64xf32, #tpu.memory_space<vmem>>, vector<8x64xf32>,
    %c0_300 = arith.constant 0 : index
    %c0_301 = arith.constant 0 : index
    %580 = vector.load %arg14[%c0_300, %c0_301] : memref<8x64xf32, #tpu.memory_space<vmem>>, vector<8x64xf32>
    tpu.vector_store %arg14[%c0_300, %c0_301], %578 {strides = array<i32>} : memref<8x64xf32, #tpu.memory_space<vmem>>, vector<8x64xf32>,
    %581 = vector.extract_strided_slice %578 {offsets = [0, 0], sizes = [8, 32], strides = [1, 1]} : vector<8x64xf32> to vector<8x32xf32>
    %582 = arith.index_cast %550 : i32 to index
    %c0_302 = arith.constant 0 : index
    %583 = vector.load %arg12[%582, %c0_302] : memref<64x64xf32, #tpu.memory_space<vmem>>, vector<8x32xf32>
    tpu.vector_store %arg12[%582, %c0_302], %581 {strides = array<i32>} : memref<64x64xf32, #tpu.memory_space<vmem>>, vector<8x32xf32>,
    %584 = vector.extract_strided_slice %578 {offsets = [0, 32], sizes = [8, 32], strides = [1, 1]} : vector<8x64xf32> to vector<8x32xf32>
    %585 = arith.index_cast %552 : i32 to index
    %c32_303 = arith.constant 32 : index
    %586 = vector.load %arg12[%585, %c32_303] : memref<64x64xf32, #tpu.memory_space<vmem>>, vector<8x32xf32>
    tpu.vector_store %arg12[%585, %c32_303], %584 {strides = array<i32>} : memref<64x64xf32, #tpu.memory_space<vmem>>, vector<8x32xf32>,
    %c6_i32_304 = arith.constant 6 : i32
    %c7_i32_305 = arith.constant 7 : i32
    %587 = arith.subi %c7_i32_305, %c6_i32_304 : i32
    %c8_i32_306 = arith.constant 8 : i32
    %588 = arith.muli %c6_i32_304, %c8_i32_306 : i32
    %589 = tpu.assume_multiple %588, 8 : i32
    %c8_i32_307 = arith.constant 8 : i32
    %590 = arith.muli %587, %c8_i32_307 : i32
    %591 = tpu.assume_multiple %590, 8 : i32
    %c0_308 = arith.constant 0 : index
    %c0_309 = arith.constant 0 : index
    %592 = vector.load %arg14[%c0_308, %c0_309] : memref<8x64xf32, #tpu.memory_space<vmem>>, vector<8x64xf32>
    %c0_310 = arith.constant 0 : index
    %c0_311 = arith.constant 0 : index
    %593 = vector.load %arg5[%c0_310, %c0_311] : memref<64x256xf32, #tpu.memory_space<vmem>>, vector<64x256xf32>
    %cst_312 = arith.constant dense<0.000000e+00> : vector<8x256xf32>
    %594 = tpu.matmul %592, %593, %cst_312 {dimension_numbers = #tpu.dot_dimension_numbers<[1], [0], [0], [1], [0, 0, 1, 1], [], []>} : vector<8x64xf32>, vector<64x256xf32>, vector<8x256xf32> -> vector<8x256xf32>
    %595 = arith.index_cast %589 : i32 to index
    %c0_313 = arith.constant 0 : index
    %596 = vector.load %arg13[%595, %c0_313] : memref<64x256xf32, #tpu.memory_space<vmem>>, vector<8x256xf32>
    %597 = arith.index_cast %591 : i32 to index
    %c0_314 = arith.constant 0 : index
    %598 = vector.load %arg13[%597, %c0_314] : memref<64x256xf32, #tpu.memory_space<vmem>>, vector<8x256xf32>
    %599 = arith.select %18, %596, %598 : vector<8x256xi1>, vector<8x256xf32>
    %600 = arith.addf %594, %599 : vector<8x256xf32>
    %601 = vector.extract_strided_slice %600 {offsets = [0, 0], sizes = [8, 192], strides = [1, 1]} : vector<8x256xf32> to vector<8x192xf32>
    %602 = arith.negf %601 : vector<8x192xf32>
    %603 = math.exp %602 : vector<8x192xf32>
    %cst_315 = arith.constant 1.000000e+00 : f32
    %604 = vector.broadcast %cst_315 : f32 to vector<8x192xf32>
    %605 = arith.addf %604, %603 : vector<8x192xf32>
    %606 = arith.divf %604, %605 : vector<8x192xf32>
    %607 = vector.extract_strided_slice %600 {offsets = [0, 192], sizes = [8, 64], strides = [1, 1]} : vector<8x256xf32> to vector<8x64xf32>
    %608 = math.tanh %607 : vector<8x64xf32>
    %609 = vector.extract_strided_slice %606 {offsets = [0, 0], sizes = [8, 64], strides = [1, 1]} : vector<8x192xf32> to vector<8x64xf32>
    %610 = vector.extract_strided_slice %606 {offsets = [0, 64], sizes = [8, 64], strides = [1, 1]} : vector<8x192xf32> to vector<8x64xf32>
    %611 = vector.extract_strided_slice %606 {offsets = [0, 128], sizes = [8, 64], strides = [1, 1]} : vector<8x192xf32> to vector<8x64xf32>
    %c0_316 = arith.constant 0 : index
    %c0_317 = arith.constant 0 : index
    %612 = vector.load %arg15[%c0_316, %c0_317] : memref<8x64xf32, #tpu.memory_space<vmem>>, vector<8x64xf32>
    %613 = arith.mulf %610, %612 : vector<8x64xf32>
    %614 = arith.mulf %609, %608 : vector<8x64xf32>
    %615 = arith.addf %613, %614 : vector<8x64xf32>
    %616 = math.tanh %615 : vector<8x64xf32>
    %617 = arith.mulf %611, %616 : vector<8x64xf32>
    %c0_318 = arith.constant 0 : index
    %c0_319 = arith.constant 0 : index
    %618 = vector.load %arg15[%c0_318, %c0_319] : memref<8x64xf32, #tpu.memory_space<vmem>>, vector<8x64xf32>
    tpu.vector_store %arg15[%c0_318, %c0_319], %615 {strides = array<i32>} : memref<8x64xf32, #tpu.memory_space<vmem>>, vector<8x64xf32>,
    %c0_320 = arith.constant 0 : index
    %c0_321 = arith.constant 0 : index
    %619 = vector.load %arg14[%c0_320, %c0_321] : memref<8x64xf32, #tpu.memory_space<vmem>>, vector<8x64xf32>
    tpu.vector_store %arg14[%c0_320, %c0_321], %617 {strides = array<i32>} : memref<8x64xf32, #tpu.memory_space<vmem>>, vector<8x64xf32>,
    %620 = vector.extract_strided_slice %617 {offsets = [0, 0], sizes = [8, 32], strides = [1, 1]} : vector<8x64xf32> to vector<8x32xf32>
    %621 = arith.index_cast %589 : i32 to index
    %c0_322 = arith.constant 0 : index
    %622 = vector.load %arg12[%621, %c0_322] : memref<64x64xf32, #tpu.memory_space<vmem>>, vector<8x32xf32>
    tpu.vector_store %arg12[%621, %c0_322], %620 {strides = array<i32>} : memref<64x64xf32, #tpu.memory_space<vmem>>, vector<8x32xf32>,
    %623 = vector.extract_strided_slice %617 {offsets = [0, 32], sizes = [8, 32], strides = [1, 1]} : vector<8x64xf32> to vector<8x32xf32>
    %624 = arith.index_cast %591 : i32 to index
    %c32_323 = arith.constant 32 : index
    %625 = vector.load %arg12[%624, %c32_323] : memref<64x64xf32, #tpu.memory_space<vmem>>, vector<8x32xf32>
    tpu.vector_store %arg12[%624, %c32_323], %623 {strides = array<i32>} : memref<64x64xf32, #tpu.memory_space<vmem>>, vector<8x32xf32>,
    %c7_i32_324 = arith.constant 7 : i32
    %c7_i32_325 = arith.constant 7 : i32
    %626 = arith.subi %c7_i32_325, %c7_i32_324 : i32
    %c8_i32_326 = arith.constant 8 : i32
    %627 = arith.muli %c7_i32_324, %c8_i32_326 : i32
    %628 = tpu.assume_multiple %627, 8 : i32
    %c8_i32_327 = arith.constant 8 : i32
    %629 = arith.muli %626, %c8_i32_327 : i32
    %630 = tpu.assume_multiple %629, 8 : i32
    %c0_328 = arith.constant 0 : index
    %c0_329 = arith.constant 0 : index
    %631 = vector.load %arg14[%c0_328, %c0_329] : memref<8x64xf32, #tpu.memory_space<vmem>>, vector<8x64xf32>
    %c0_330 = arith.constant 0 : index
    %c0_331 = arith.constant 0 : index
    %632 = vector.load %arg5[%c0_330, %c0_331] : memref<64x256xf32, #tpu.memory_space<vmem>>, vector<64x256xf32>
    %cst_332 = arith.constant dense<0.000000e+00> : vector<8x256xf32>
    %633 = tpu.matmul %631, %632, %cst_332 {dimension_numbers = #tpu.dot_dimension_numbers<[1], [0], [0], [1], [0, 0, 1, 1], [], []>} : vector<8x64xf32>, vector<64x256xf32>, vector<8x256xf32> -> vector<8x256xf32>
    %634 = arith.index_cast %628 : i32 to index
    %c0_333 = arith.constant 0 : index
    %635 = vector.load %arg13[%634, %c0_333] : memref<64x256xf32, #tpu.memory_space<vmem>>, vector<8x256xf32>
    %636 = arith.index_cast %630 : i32 to index
    %c0_334 = arith.constant 0 : index
    %637 = vector.load %arg13[%636, %c0_334] : memref<64x256xf32, #tpu.memory_space<vmem>>, vector<8x256xf32>
    %638 = arith.select %18, %635, %637 : vector<8x256xi1>, vector<8x256xf32>
    %639 = arith.addf %633, %638 : vector<8x256xf32>
    %640 = vector.extract_strided_slice %639 {offsets = [0, 0], sizes = [8, 192], strides = [1, 1]} : vector<8x256xf32> to vector<8x192xf32>
    %641 = arith.negf %640 : vector<8x192xf32>
    %642 = math.exp %641 : vector<8x192xf32>
    %cst_335 = arith.constant 1.000000e+00 : f32
    %643 = vector.broadcast %cst_335 : f32 to vector<8x192xf32>
    %644 = arith.addf %643, %642 : vector<8x192xf32>
    %645 = arith.divf %643, %644 : vector<8x192xf32>
    %646 = vector.extract_strided_slice %639 {offsets = [0, 192], sizes = [8, 64], strides = [1, 1]} : vector<8x256xf32> to vector<8x64xf32>
    %647 = math.tanh %646 : vector<8x64xf32>
    %648 = vector.extract_strided_slice %645 {offsets = [0, 0], sizes = [8, 64], strides = [1, 1]} : vector<8x192xf32> to vector<8x64xf32>
    %649 = vector.extract_strided_slice %645 {offsets = [0, 64], sizes = [8, 64], strides = [1, 1]} : vector<8x192xf32> to vector<8x64xf32>
    %650 = vector.extract_strided_slice %645 {offsets = [0, 128], sizes = [8, 64], strides = [1, 1]} : vector<8x192xf32> to vector<8x64xf32>
    %c0_336 = arith.constant 0 : index
    %c0_337 = arith.constant 0 : index
    %651 = vector.load %arg15[%c0_336, %c0_337] : memref<8x64xf32, #tpu.memory_space<vmem>>, vector<8x64xf32>
    %652 = arith.mulf %649, %651 : vector<8x64xf32>
    %653 = arith.mulf %648, %647 : vector<8x64xf32>
    %654 = arith.addf %652, %653 : vector<8x64xf32>
    %655 = math.tanh %654 : vector<8x64xf32>
    %656 = arith.mulf %650, %655 : vector<8x64xf32>
    %c0_338 = arith.constant 0 : index
    %c0_339 = arith.constant 0 : index
    %657 = vector.load %arg15[%c0_338, %c0_339] : memref<8x64xf32, #tpu.memory_space<vmem>>, vector<8x64xf32>
    tpu.vector_store %arg15[%c0_338, %c0_339], %654 {strides = array<i32>} : memref<8x64xf32, #tpu.memory_space<vmem>>, vector<8x64xf32>,
    %c0_340 = arith.constant 0 : index
    %c0_341 = arith.constant 0 : index
    %658 = vector.load %arg14[%c0_340, %c0_341] : memref<8x64xf32, #tpu.memory_space<vmem>>, vector<8x64xf32>
    tpu.vector_store %arg14[%c0_340, %c0_341], %656 {strides = array<i32>} : memref<8x64xf32, #tpu.memory_space<vmem>>, vector<8x64xf32>,
    %659 = vector.extract_strided_slice %656 {offsets = [0, 0], sizes = [8, 32], strides = [1, 1]} : vector<8x64xf32> to vector<8x32xf32>
    %660 = arith.index_cast %628 : i32 to index
    %c0_342 = arith.constant 0 : index
    %661 = vector.load %arg12[%660, %c0_342] : memref<64x64xf32, #tpu.memory_space<vmem>>, vector<8x32xf32>
    tpu.vector_store %arg12[%660, %c0_342], %659 {strides = array<i32>} : memref<64x64xf32, #tpu.memory_space<vmem>>, vector<8x32xf32>,
    %662 = vector.extract_strided_slice %656 {offsets = [0, 32], sizes = [8, 32], strides = [1, 1]} : vector<8x64xf32> to vector<8x32xf32>
    %663 = arith.index_cast %630 : i32 to index
    %c32_343 = arith.constant 32 : index
    %664 = vector.load %arg12[%663, %c32_343] : memref<64x64xf32, #tpu.memory_space<vmem>>, vector<8x32xf32>
    tpu.vector_store %arg12[%663, %c32_343], %662 {strides = array<i32>} : memref<64x64xf32, #tpu.memory_space<vmem>>, vector<8x32xf32>,
    %c8_i32_344 = arith.constant 8 : i32
    %c0_345 = arith.constant 0 : index
    %c0_346 = arith.constant 0 : index
    %665 = vector.load %arg7[%c0_345, %c0_346] : memref<8x64xf32, #tpu.memory_space<vmem>>, vector<8x64xf32>
    %c0_347 = arith.constant 0 : index
    %c0_348 = arith.constant 0 : index
    %666 = vector.load %arg12[%c0_347, %c0_348] : memref<64x64xf32, #tpu.memory_space<vmem>>, vector<64x64xf32>
    %cst_349 = arith.constant dense<0.000000e+00> : vector<8x64xf32>
    %667 = tpu.matmul %665, %666, %cst_349 {dimension_numbers = #tpu.dot_dimension_numbers<[1], [0], [0], [1], [0, 0, 1, 1], [], []>} : vector<8x64xf32>, vector<64x64xf32>, vector<8x64xf32> -> vector<8x64xf32>
    %c0_350 = arith.constant 0 : index
    %c0_351 = arith.constant 0 : index
    %668 = vector.load %arg8[%c0_350, %c0_351] : memref<64x6xf32, #tpu.memory_space<vmem>>, vector<64x6xf32>
    %cst_352 = arith.constant dense<0.000000e+00> : vector<8x6xf32>
    %669 = tpu.matmul %667, %668, %cst_352 {dimension_numbers = #tpu.dot_dimension_numbers<[1], [0], [0], [1], [0, 0, 1, 1], [], []>} : vector<8x64xf32>, vector<64x6xf32>, vector<8x6xf32> -> vector<8x6xf32>
    %c0_353 = arith.constant 0 : index
    %c0_354 = arith.constant 0 : index
    %670 = vector.load %arg9[%c0_353, %c0_354] : memref<1x6xf32, #tpu.memory_space<vmem>>, vector<1x6xf32>
    %671 = vector.broadcast %670 : vector<1x6xf32> to vector<8x6xf32>
    %672 = arith.addf %669, %671 : vector<8x6xf32>
    %cst_355 = arith.constant dense<0xFF800000> : vector<8xf32>
    %673 = vector.multi_reduction <maximumf>, %672, %cst_355 [1] : vector<8x6xf32> to vector<8xf32>
    %674 = vector.shape_cast %673 : vector<8xf32> to vector<8x1xf32>
    %675 = vector.broadcast %674 : vector<8x1xf32> to vector<8x6xf32>
    %676 = arith.subf %672, %675 : vector<8x6xf32>
    %677 = math.exp %676 : vector<8x6xf32>
    %cst_356 = arith.constant dense<0.000000e+00> : vector<8xf32>
    %678 = vector.multi_reduction <add>, %677, %cst_356 [1] : vector<8x6xf32> to vector<8xf32>
    %679 = vector.shape_cast %678 : vector<8xf32> to vector<8x1xf32>
    %680 = math.log %679 : vector<8x1xf32>
    %681 = vector.broadcast %680 : vector<8x1xf32> to vector<8x6xf32>
    %682 = arith.subf %676, %681 : vector<8x6xf32>
    %c0_357 = arith.constant 0 : index
    %c0_358 = arith.constant 0 : index
    %683 = vector.load %arg10[%c0_357, %c0_358] : memref<8x6xf32, #tpu.memory_space<vmem>>, vector<8x6xf32>
    tpu.vector_store %arg10[%c0_357, %c0_358], %682 {strides = array<i32>} : memref<8x6xf32, #tpu.memory_space<vmem>>, vector<8x6xf32>,
    return
  }
}

</mosaic_0001>

<bundles_post_ra>
// kernel: _lambda_.1
= control target key start
LH: loop header
LB: loop body
LE: loop exit
PB: predicated region body
PF: predicated region fallthrough
CT: control target
= control target key end

     0   :  { %vm85_vm0 = vcmask 130048   ;;  %vm64_vm1 = vcmask 523264   ;;  %v4207_v12 = vmov 0.0   ;;  %v35_v40 = vlaneseq  ;;  %s4196_s1 = inlined_call_operand.vmem [shape: f32[16,256], index: 1, kind: input, shape index: {}]   ;;  %s4197_s0 = inlined_call_operand.vmem [shape: f32[64,16], index: 0, kind: input, shape index: {}]   ;;  %s4198_s2 = inlined_call_operand.vmem [shape: f32[64,256], index: 2, kind: input, shape index: {}]   ;;  %s4199_s3 = inlined_call_operand.vmem [shape: f32[1,256], index: 3, kind: input, shape index: {}]   ;;  %s4200_s4 = inlined_call_operand.vmem [shape: f32[64,256], index: 4, kind: input, shape index: {}]   ;;  %s4201_s5 = inlined_call_operand.vmem [shape: f32[64,256], index: 5, kind: input, shape index: {}]   ;;  %s4202_s6 = inlined_call_operand.vmem [shape: f32[1,256], index: 6, kind: input, shape index: {}]   ;;  %s4203_s8 = inlined_call_operand.vmem [shape: f32[64,6], index: 8, kind: input, shape index: {}]   ;;  %s4204_s7 = inlined_call_operand.vmem [shape: f32[8,64], index: 7, kind: input, shape index: {}]   ;;  %s4205_s9 = inlined_call_operand.vmem [shape: f32[1,6], index: 9, kind: input, shape index: {}]   ;;  %s4206_s10 = inlined_call_operand.vmem [shape: f32[8,6], index: 10, kind: output, shape index: {}]  }
   0x1   :  { %v78_v0 = vld [vmem:[%s4196_s1 + $0x18] sm:$0xff]  ;;  %v76_v1 = vld [vmem:[%s4196_s1 + $0x8] sm:$0xff]  ;;  %v67_v2 = vld [vmem:[%s4197_s0] sm:$0xff]  ;;  %65 = vst.msk [vmem:[#allocation5] sm:$0xff] %vm64_vm1, %v4207_v12  ;;  %vm347_vm12 = vcmask 261120   ;;  %vm350_vm13 = vcmask 523520  }
   0x2   :  { %165 = vmatpush.msra.mxu1 %v78_v0  ;;  %v77_v3 = vld [vmem:[%s4196_s1 + $0x10] sm:$0xff]  ;;  %v75_v4 = vld [vmem:[%s4196_s1] sm:$0xff]  ;;  %v3027_v5 = vld [vmem:[%s4198_s2 + $0x78] sm:$0xff]  ;;  %66 = vst.msk [vmem:[#allocation6] sm:$0xff] %vm64_vm1, %v4207_v12  ;;  %v36_v44 = vand.u32 127, %v35_v40 }
   0x3   :  { %124 = vmatpush.msra.mxu0 %v77_v3  ;;  %268 = vmatpush.msra.mxu3 %v3027_v5  ;;  %v68_v6 = vld [vmem:[%s4197_s0 + $0x8] sm:$0xff]  ;;  %v3045_v8 = vld [vmem:[%s4198_s2 + $0x58] sm:$0xff]  ;;  %v69_v11 = vld [vmem:[%s4197_s0 + $0x10] sm:$0xff] }
   0x4   :  { %166 = vmatpush.msra.mxu1 %v76_v1  ;;  %v3038_v7 = vld [vmem:[%s4198_s2 + $0x68] sm:$0xff]  ;;  %v3058_v10 = vld [vmem:[%s4198_s2 + $0x38] sm:$0xff]  ;;  %v3104_v18 = vld [vmem:[%s4198_s2 + $0x70] sm:$0xff]  ;;  %v37_v46 = vadd.s32 128, %v36_v44 }
   0x5   :  { %2662 = vmatmul.msk.f32.vlgmr.msra.gmra.mxu1 %vm85_vm0, %v67_v2  ;;  %125 = vmatpush.msra.mxu0 %v75_v4  ;;  %v3051_v9 = vld [vmem:[%s4198_s2 + $0x48] sm:$0xff]  ;;  %v3082_v14 = vld [vmem:[%s4198_s2 + $0x18] sm:$0xff]  ;;  %v3109_v19 = vld [vmem:[%s4198_s2 + $0x60] sm:$0xff] }
   0x6   :  { %2654 = vmatmul.msk.f32.vlgmr.msra.gmra.mxu0 %vm85_vm0, %v67_v2  ;;  %835 = vmatpush.msrb.mxu1 %v3027_v5  ;;  %v3074_v13 = vld [vmem:[%s4198_s2 + $0x28] sm:$0xff]  ;;  %v70_v17 = vld [vmem:[%s4197_s0 + $0x18] sm:$0xff]  ;;  %v3117_v20 = vld [vmem:[%s4198_s2 + $0x50] sm:$0xff]  ;;  %v49_v50 = vand.u32 63, %v37_v46 }
   0x7   :  { %269 = vmatpush.msra.mxu3 %v3038_v7  ;;  %v3088_v15 = vld [vmem:[%s4198_s2 + $0x8] sm:$0xff]  ;;  %248 = vmatpush.msra.mxu2 %v3104_v18  ;;  %v3125_v21 = vld [vmem:[%s4198_s2 + $0x40] sm:$0xff]  ;;  %v3136_v23 = vld [vmem:[%s4198_s2 + $0x30] sm:$0xff] }
   0x8   :  { %836 = vmatpush.msrb.mxu1 %v3038_v7  ;;  %v208_v16 = vld [vmem:[#allocation5] sm:$0xff]  ;;  %815 = vmatpush.msrb.mxu0 %v3104_v18  ;;  %v3153_v25 = vld [vmem:[%s4198_s2 + $0x10] sm:$0xff]  ;;  %v72_v27 = vld [vmem:[%s4197_s0 + $0x28] sm:$0xff]  ;;  %vm3225_vm2 = vcmp.lt.s32.totalorder %v49_v50, 32 }
   0x9   :  { %270 = vmatpush.msra.mxu3 %v3045_v8  ;;  %249 = vmatpush.msra.mxu2 %v3109_v19  ;;  %v71_v22 = vld [vmem:[%s4197_s0 + $0x20] sm:$0xff]  ;;  %v73_v28 = vld [vmem:[%s4197_s0 + $0x30] sm:$0xff]  ;;  %v74_v29 = vld [vmem:[%s4197_s0 + $0x38] sm:$0xff] }
   0xa   :  { %837 = vmatpush.msrb.mxu1 %v3045_v8  ;;  %816 = vmatpush.msrb.mxu0 %v3109_v19  ;;  %v3145_v24 = vld [vmem:[%s4198_s2 + $0x20] sm:$0xff] }
   0xb   :  { %271 = vmatpush.msra.mxu3 %v3051_v9  ;;  %250 = vmatpush.msra.mxu2 %v3117_v20  ;;  %v3161_v26 = vld [vmem:[%s4198_s2] sm:$0xff] }
   0xc   :  { %838 = vmatpush.msrb.mxu1 %v3051_v9  ;;  %817 = vmatpush.msrb.mxu0 %v3117_v20  ;;  %v79_v32 = vld [vmem:[%s4199_s3] sm:$0x3]  ;;  %s2952_s3 = smov 64  }
   0xd   :  { %2663 = vmatmul.msk.f32.gmra.mxu1 %vm85_vm0, %v68_v6  ;;  %272 = vmatpush.msra.mxu3 %v3058_v10  ;;  %v82_v33 = vperm.slane %v79_v32, 1  ;;  %v81_v35 = vperm.slane %v79_v32, 0  ;;  %v42_v32 = vand.u32 63, %v36_v44 }
   0xe   :  { %2655 = vmatmul.msk.f32.gmra.mxu0 %vm85_vm0, %v68_v6  ;;  %839 = vmatpush.msrb.mxu1 %v3058_v10 }
   0xf   :  { %273 = vmatpush.msra.mxu3 %v3074_v13  ;;  %251 = vmatpush.msra.mxu2 %v3125_v21  ;;  %vm3281_vm3 = vcmp.lt.s32.totalorder %v42_v32, 32 }
  0x10   :  { %840 = vmatpush.msrb.mxu1 %v3074_v13  ;;  %818 = vmatpush.msrb.mxu0 %v3125_v21 }
  0x11   :  { %274 = vmatpush.msra.mxu3 %v3082_v14  ;;  %252 = vmatpush.msra.mxu2 %v3136_v23 }
  0x12   :  { %841 = vmatpush.msrb.mxu1 %v3082_v14  ;;  %819 = vmatpush.msrb.mxu0 %v3136_v23 }
  0x13   :  { %275 = vmatpush.msra.mxu3 %v3088_v15  ;;  %253 = vmatpush.msra.mxu2 %v3145_v24 }
  0x14   :  { %2671 = vmatmul.msk.f32.vlgmr.msra.gmra.mxu3 %vm64_vm1, %v208_v16  ;;  %842 = vmatpush.msrb.mxu1 %v3088_v15 }
  0x15   :  { %2664 = vmatmul.msk.f32.gmra.mxu1 %vm85_vm0, %v69_v11  ;;  %412 = vmatpush.msrb.mxu3 %v3027_v5 }
  0x16   :  { %2656 = vmatmul.msk.f32.gmra.mxu0 %vm85_vm0, %v69_v11  ;;  %254 = vmatpush.msra.mxu2 %v3153_v25 }
  0x17   :  { %413 = vmatpush.msrb.mxu3 %v3038_v7  ;;  %820 = vmatpush.msrb.mxu0 %v3145_v24 }
  0x18   :  { %255 = vmatpush.msra.mxu2 %v3161_v26 }
  0x19   :  { %414 = vmatpush.msrb.mxu3 %v3045_v8  ;;  %2670 = vmatmul.msk.f32.vlgmr.msra.gmra.mxu2 %vm64_vm1, %v208_v16 }
  0x1a   :  { %392 = vmatpush.msrb.mxu2 %v3104_v18  ;;  %821 = vmatpush.msrb.mxu0 %v3153_v25 }
  0x1b   :  { %415 = vmatpush.msrb.mxu3 %v3051_v9 }
  0x1c   :  { %393 = vmatpush.msrb.mxu2 %v3109_v19  ;;  %822 = vmatpush.msrb.mxu0 %v3161_v26 }
  0x1d   :  { %2665 = vmatmul.msk.f32.gmra.mxu1 %vm85_vm0, %v70_v17  ;;  %416 = vmatpush.msrb.mxu3 %v3058_v10 }
  0x1e   :  { %2657 = vmatmul.msk.f32.gmra.mxu0 %vm85_vm0, %v70_v17  ;;  %394 = vmatpush.msrb.mxu2 %v3117_v20 }
  0x1f   :  { %417 = vmatpush.msrb.mxu3 %v3074_v13 }
  0x20   :  { %395 = vmatpush.msrb.mxu2 %v3125_v21 }
  0x21   :  { %418 = vmatpush.msrb.mxu3 %v3082_v14 }
  0x22   :  { %396 = vmatpush.msrb.mxu2 %v3136_v23 }
  0x23   :  { %419 = vmatpush.msrb.mxu3 %v3088_v15 }
  0x24   :  { %397 = vmatpush.msrb.mxu2 %v3145_v24 }
  0x25   :  { %2666 = vmatmul.msk.f32.gmra.mxu1 %vm85_vm0, %v71_v22  ;;  %555 = vmatpush.msra.mxu3 %v3027_v5 }
  0x26   :  { %2658 = vmatmul.msk.f32.gmra.mxu0 %vm85_vm0, %v71_v22  ;;  %398 = vmatpush.msrb.mxu2 %v3153_v25 }
  0x27   :  { %556 = vmatpush.msra.mxu3 %v3038_v7 }
  0x28   :  { %399 = vmatpush.msrb.mxu2 %v3161_v26 }
  0x29   :  { %557 = vmatpush.msra.mxu3 %v3045_v8 }
  0x2a   :  { %535 = vmatpush.msra.mxu2 %v3104_v18 }
  0x2b   :  { %558 = vmatpush.msra.mxu3 %v3051_v9 }
  0x2c   :  { %536 = vmatpush.msra.mxu2 %v3109_v19 }
  0x2d   :  { %2667 = vmatmul.msk.f32.gmra.mxu1 %vm85_vm0, %v72_v27  ;;  %559 = vmatpush.msra.mxu3 %v3058_v10 }
  0x2e   :  { %2659 = vmatmul.msk.f32.gmra.mxu0 %vm85_vm0, %v72_v27  ;;  %537 = vmatpush.msra.mxu2 %v3117_v20 }
  0x2f   :  { %560 = vmatpush.msra.mxu3 %v3074_v13 }
  0x30   :  { %538 = vmatpush.msra.mxu2 %v3125_v21 }
  0x31   :  { %561 = vmatpush.msra.mxu3 %v3082_v14 }
  0x32   :  { %539 = vmatpush.msra.mxu2 %v3136_v23 }
  0x33   :  { %562 = vmatpush.msra.mxu3 %v3088_v15 }
  0x34   :  { %540 = vmatpush.msra.mxu2 %v3145_v24 }
  0x35   :  { %2668 = vmatmul.msk.f32.gmra.mxu1 %vm85_vm0, %v73_v28 }
  0x36   :  { %2660 = vmatmul.msk.f32.gmra.mxu0 %vm85_vm0, %v73_v28  ;;  %541 = vmatpush.msra.mxu2 %v3153_v25 }
  0x38   :  { %542 = vmatpush.msra.mxu2 %v3161_v26 }
  0x3d   :  { %2669 = vmatmul.msk.f32.gmra.mxu1 %vm85_vm0, %v74_v29 }
  0x3e   :  { %2661 = vmatmul.msk.f32.gmra.mxu0 %vm85_vm0, %v74_v29 }
  0x82   :  { %v168_v30 = vpop.f32.mrf.mxu1 }
  0x83   :  { %v127_v31 = vpop.f32.mrf.mxu0  ;;  %v3265_v16 = vadd.f32 %v168_v30, %v82_v33 }
  0x8a   :  { %v171_v34 = vpop.f32.mrf.mxu1 }
  0x8b   :  { %v3213_v36 = vadd.f32 %v171_v34, %v82_v33  ;;  %v130_v37 = vpop.f32.mrf.mxu0 }
  0x8c   :  { %v3215_v38 = vadd.f32 %v130_v37, %v81_v35  ;;  %v3277_v37 = vadd.f32 %v127_v31, %v81_v35 }
  0x92   :  { %v174_v39 = vpop.f32.mrf.mxu1 }
  0x93   :  { %v3217_v41 = vadd.f32 %v174_v39, %v82_v33  ;;  %v133_v42 = vpop.f32.mrf.mxu0 }
  0x94   :  { %v3219_v43 = vadd.f32 %v133_v42, %v81_v35  ;;  %v319_v42 = vld [vmem:[#allocation6] sm:$0xff] }
  0x97   :  { %v277_v22 = vpop.f32.mrf.mxu3 }
  0x9a   :  { %v177_v45 = vpop.f32.mrf.mxu1 }
  0x9b   :  { %v3221_v47 = vadd.f32 %v177_v45, %v82_v33  ;;  %v136_v48 = vpop.f32.mrf.mxu0 }
  0x9c   :  { %v3223_v49 = vadd.f32 %v136_v48, %v81_v35 }
  0xa2   :  { %v180_v51 = vpop.f32.mrf.mxu1 }
  0xa3   :  { %v3229_v53 = vadd.f32 %v180_v51, %v82_v33  ;;  %v139_v54 = vpop.f32.mrf.mxu0  ;;  %v257_v51 = vpop.f32.mrf.mxu2 }
  0xa4   :  { %v3231_v55 = vadd.f32 %v139_v54, %v81_v35 }
  0xa5   :  { %v666_v56 = vsel %vm3225_vm2, %v3221_v47, %v3229_v53  ;;  %v803_v57 = vsel %vm3225_vm2, %v3229_v53, %v3221_v47 }
  0xa6   :  { %v665_v46 = vsel %vm3281_vm3, %v3223_v49, %v3231_v55  ;;  %v802_v48 = vsel %vm3281_vm3, %v3231_v55, %v3223_v49 }
  0xaa   :  { %v183_v58 = vpop.f32.mrf.mxu1 }
  0xab   :  { %v3241_v59 = vadd.f32 %v183_v58, %v82_v33  ;;  %v142_v60 = vpop.f32.mrf.mxu0 }
  0xac   :  { %v3243_v61 = vadd.f32 %v142_v60, %v81_v35 }
  0xad   :  { %v523_v62 = vsel %vm3225_vm2, %v3217_v41, %v3241_v59  ;;  %v938_v63 = vsel %vm3225_vm2, %v3241_v59, %v3217_v41 }
  0xae   :  { %v522_v44 = vsel %vm3281_vm3, %v3219_v43, %v3243_v61  ;;  %v937_v45 = vsel %vm3281_vm3, %v3243_v61, %v3219_v43 }
  0xb2   :  { %v186_v0 = vpop.f32.mrf.mxu1 }
  0xb3   :  { %v3253_v1 = vadd.f32 %v186_v0, %v82_v33  ;;  %v145_v2 = vpop.f32.mrf.mxu0 }
  0xb4   :  { %v3255_v3 = vadd.f32 %v145_v2, %v81_v35 }
  0xb5   :  { %v380_v4 = vsel %vm3225_vm2, %v3213_v36, %v3253_v1  ;;  %v1073_v6 = vsel %vm3225_vm2, %v3253_v1, %v3213_v36 }
  0xb6   :  { %v379_v31 = vsel %vm3281_vm3, %v3215_v38, %v3255_v3 }
  0xba   :  { %v189_v11 = vpop.f32.mrf.mxu1 }
  0xbb   :  { %v3267_v17 = vadd.f32 %v189_v11, %v82_v33  ;;  %v148_v34 = vpop.f32.mrf.mxu0 }
  0xbc   :  { %v3279_v30 = vadd.f32 %v148_v34, %v81_v35  ;;  %v1072_v35 = vsel %vm3281_vm3, %v3255_v3, %v3215_v38 }
  0xbd   :  { %v236_v27 = vsel %vm3225_vm2, %v3265_v16, %v3267_v17 }
  0xbe   :  { %v278_v29 = vadd.f32 %v277_v22, %v236_v27  ;;  %v235_v50 = vsel %vm3281_vm3, %v3277_v37, %v3279_v30 }
  0xbf   :  { %v258_v54 = vadd.f32 %v257_v51, %v235_v50 }
  0xc0   :  { %2755 = vtanh.f32 %v278_v29 }
  0xc1   :  { %v2672_v58 = vmul.f32 -1.442695, %v258_v54 }
  0xc3   :  { %2757 = vpow2.f32 %v2672_v58 }
  0xc6   :  { %v2756_v40 = vpop.eup %2755 }
  0xc7   :  { %326 = vrot.lane.b32.xlu0 %v2756_v40, %s2952_s3 }
  0xc9   :  { %v2758_v60 = vpop.eup %2757 }
  0xca   :  { %v286_v0 = vadd.f32 1.0, %v2758_v60 }
  0xcc   :  { %2759 = vrcp.f32 %v286_v0  ;;  %vm293_vm4 = vweird.f32 %v286_v0  ;;  %v299_v32 = vand.u32 2147483648, %v286_v0  ;;  %v297_v40 = vand.u32 2147483647, %v286_v0 }
  0xce   :  { %vm298_vm7 = vcmp.eq.f32.partialorder %v297_v40, 8.507059e+37 }
  0xcf   :  { %321 = vrot.lane.b32.xlu0 %v319_v42, %s2952_s3  ;;  %v300_v42 = vor.u32 1.1754944e-38, %v299_v32 }
  0xd2   :  { %v2760_v2 = vpop.eup %2759 }
  0xd3   :  { %v289_v11 = vmul.f32 %v2760_v2, %v286_v0  ;;  %vm294_vm5 = vweird.f32 %v2760_v2  ;;  %v2673_v0 = vmul.f32 -1.442695, %v278_v29 }
  0xd4   :  { %vm295_vm6 = vmor %vm293_vm4, %vm294_vm5 }
  0xd5   :  { %v290_v22 = vsub.f32 1.0, %v289_v11 }
  0xd7   :  { %v291_v27 = vmul.f32 %v2760_v2, %v290_v22 }
  0xd9   :  { %v292_v34 = vadd.f32 %v2760_v2, %v291_v27 }
  0xdb   :  { %v296_v12 = vsel %vm295_vm6, %v2760_v2, %v292_v34 }
  0xdc   :  { %v301_v50 = vsel %vm298_vm7, %v300_v42, %v296_v12 }
 0x139   :  { %v327_v39 = vpop.permute.xlu0 %326 }
 0x13a   :  { %v329_v51 = vmul.f32 %v327_v39, %v301_v50 }
 0x13c   :  { %331 = vrot.lane.b32.xlu1 %v329_v51, %s2952_s3 }
 0x141   :  { %v322_v54 = vpop.permute.xlu0 %321 }
 0x142   :  { %v324_v58 = vmul.f32 %v322_v54, %v301_v50 }
 0x1ae   :  { %v332_v60 = vpop.permute.xlu1 %331 }
 0x1af   :  { %v334_v28 = vadd.f32 %v332_v60, %v324_v58 }
 0x1b1   :  { %2761 = vtanh.f32 %v334_v28  ;;  %342 = vrot.lane.b32.xlu2 %v334_v28, %s2952_s3 }
 0x1b2   :  { %2763 = vpow2.f32 %v2673_v0 }
 0x1b7   :  { %v2762_v11 = vpop.eup %2761 }
 0x1b8   :  { %337 = vrot.lane.b32.xlu1 %v2762_v11, %s2952_s3  ;;  %v2764_v22 = vpop.eup %2763 }
 0x1b9   :  { %v287_v2 = vadd.f32 1.0, %v2764_v22 }
 0x1bb   :  { %2765 = vrcp.f32 %v287_v2  ;;  %v314_v28 = vand.u32 2147483648, %v287_v2  ;;  %vm308_vm9 = vweird.f32 %v287_v2  ;;  %v312_v50 = vand.u32 2147483647, %v287_v2 }
 0x1bd   :  { %v315_v51 = vor.u32 1.1754944e-38, %v314_v28  ;;  %vm313_vm11 = vcmp.eq.f32.partialorder %v312_v50, 8.507059e+37 }
 0x1c1   :  { %v2766_v39 = vpop.eup %2765 }
 0x1c2   :  { %v304_v32 = vmul.f32 %v2766_v39, %v287_v2  ;;  %vm309_vm8 = vweird.f32 %v2766_v39 }
 0x1c3   :  { %vm310_vm10 = vmor %vm308_vm9, %vm309_vm8 }
 0x1c4   :  { %v305_v34 = vsub.f32 1.0, %v304_v32 }
 0x1c6   :  { %v306_v40 = vmul.f32 %v2766_v39, %v305_v34 }
 0x1c8   :  { %v307_v42 = vadd.f32 %v2766_v39, %v306_v40 }
 0x1ca   :  { %v311_v29 = vsel %vm310_vm10, %v2766_v39, %v307_v42 }
 0x1cb   :  { %v316_v54 = vsel %vm313_vm11, %v315_v51, %v311_v29 }
 0x20b   :  { %v343_v27 = vpop.permute.xlu2 %342 }
 0x20c   :  { %345 = vst.msk [vmem:[#allocation6] sm:$0xff] %vm64_vm1, %v343_v27 }
 0x213   :  { %v463_v12 = vld [vmem:[#allocation6] sm:$0xff] }
 0x214   :  { %465 = vrot.lane.b32.xlu0 %v463_v12, %s2952_s3 }
 0x22a   :  { %v338_v58 = vpop.permute.xlu1 %337 }
 0x22b   :  { %v340_v60 = vmul.f32 %v338_v58, %v316_v54 }
 0x22d   :  { %346 = vst.msk [vmem:[#allocation5] sm:$0xff] %vm64_vm1, %v340_v60 }
 0x22e   :  { %348 = vst.msk [vmem:[#allocation2] sm:$0xff] %vm347_vm12, %v340_v60 }
 0x22f   :  { %351 = vst.msk [vmem:[#allocation2 + $0x38] sm:$0xff] %vm350_vm13, %v340_v60 }
 0x234   :  { %v352_v11 = vld [vmem:[#allocation5] sm:$0xff] }
 0x235   :  { %2674 = vmatmul.msk.f32.vlgmr.msrb.gmra.mxu2 %vm64_vm1, %v352_v11  ;;  %2675 = vmatmul.msk.f32.vlgmr.msrb.gmra.mxu3 %vm64_vm1, %v352_v11 }
 0x236   :  { %678 = vmatpush.msrb.mxu2 %v3104_v18  ;;  %698 = vmatpush.msrb.mxu3 %v3027_v5 }
 0x238   :  { %679 = vmatpush.msrb.mxu2 %v3109_v19  ;;  %699 = vmatpush.msrb.mxu3 %v3038_v7 }
 0x23a   :  { %680 = vmatpush.msrb.mxu2 %v3117_v20  ;;  %700 = vmatpush.msrb.mxu3 %v3045_v8 }
 0x23c   :  { %681 = vmatpush.msrb.mxu2 %v3125_v21  ;;  %701 = vmatpush.msrb.mxu3 %v3051_v9 }
 0x23e   :  { %682 = vmatpush.msrb.mxu2 %v3136_v23  ;;  %702 = vmatpush.msrb.mxu3 %v3058_v10 }
 0x240   :  { %683 = vmatpush.msrb.mxu2 %v3145_v24  ;;  %703 = vmatpush.msrb.mxu3 %v3074_v13 }
 0x242   :  { %684 = vmatpush.msrb.mxu2 %v3153_v25  ;;  %704 = vmatpush.msrb.mxu3 %v3082_v14 }
 0x244   :  { %685 = vmatpush.msrb.mxu2 %v3161_v26  ;;  %705 = vmatpush.msrb.mxu3 %v3088_v15 }
 0x286   :  { %v466_v39 = vpop.permute.xlu0 %465 }
 0x2b8   :  { %v421_v5 = vpop.f32.mrf.mxu3  ;;  %v401_v9 = vpop.f32.mrf.mxu2 }
 0x2b9   :  { %v422_v7 = vadd.f32 %v421_v5, %v380_v4  ;;  %v402_v10 = vadd.f32 %v401_v9, %v379_v31 }
 0x2bb   :  { %2767 = vtanh.f32 %v422_v7  ;;  %v2676_v13 = vmul.f32 -1.442695, %v402_v10  ;;  %v2677_v28 = vmul.f32 -1.442695, %v422_v7 }
 0x2bd   :  { %2769 = vpow2.f32 %v2676_v13 }
 0x2c1   :  { %v2768_v8 = vpop.eup %2767 }
 0x2c2   :  { %470 = vrot.lane.b32.xlu2 %v2768_v8, %s2952_s3 }
 0x2c3   :  { %v2770_v14 = vpop.eup %2769 }
 0x2c4   :  { %v430_v15 = vadd.f32 1.0, %v2770_v14 }
 0x2c6   :  { %2771 = vrcp.f32 %v430_v15  ;;  %v443_v4 = vand.u32 2147483648, %v430_v15  ;;  %vm437_vm15 = vweird.f32 %v430_v15  ;;  %v441_v0 = vand.u32 2147483647, %v430_v15 }
 0x2c8   :  { %v444_v2 = vor.u32 1.1754944e-38, %v443_v4  ;;  %vm442_vm4 = vcmp.eq.f32.partialorder %v441_v0, 8.507059e+37 }
 0x2cc   :  { %v2772_v21 = vpop.eup %2771 }
 0x2cd   :  { %v433_v23 = vmul.f32 %v2772_v21, %v430_v15  ;;  %vm438_vm14 = vweird.f32 %v2772_v21 }
 0x2ce   :  { %vm439_vm0 = vmor %vm437_vm15, %vm438_vm14 }
 0x2cf   :  { %v434_v24 = vsub.f32 1.0, %v433_v23 }
 0x2d1   :  { %v435_v25 = vmul.f32 %v2772_v21, %v434_v24 }
 0x2d3   :  { %v436_v26 = vadd.f32 %v2772_v21, %v435_v25 }
 0x2d5   :  { %v440_v22 = vsel %vm439_vm0, %v2772_v21, %v436_v26 }
 0x2d6   :  { %v445_v31 = vsel %vm442_vm4, %v444_v2, %v440_v22 }
 0x2d7   :  { %v468_v32 = vmul.f32 %v466_v39, %v445_v31 }
 0x31c   :  { %v471_v27 = vpop.permute.xlu2 %470 }
 0x31d   :  { %v473_v12 = vmul.f32 %v471_v27, %v445_v31 }
 0x31f   :  { %475 = vrot.lane.b32.xlu1 %v473_v12, %s2952_s3 }
 0x391   :  { %v476_v34 = vpop.permute.xlu1 %475 }
 0x392   :  { %v478_v40 = vadd.f32 %v476_v34, %v468_v32 }
 0x394   :  { %2773 = vtanh.f32 %v478_v40  ;;  %486 = vrot.lane.b32.xlu0 %v478_v40, %s2952_s3 }
 0x395   :  { %2775 = vpow2.f32 %v2677_v28 }
 0x39a   :  { %v2774_v42 = vpop.eup %2773 }
 0x39b   :  { %481 = vrot.lane.b32.xlu2 %v2774_v42, %s2952_s3  ;;  %v2776_v50 = vpop.eup %2775 }
 0x39c   :  { %v431_v29 = vadd.f32 1.0, %v2776_v50 }
 0x39e   :  { %2777 = vrcp.f32 %v431_v29  ;;  %v458_v5 = vand.u32 2147483648, %v431_v29  ;;  %vm452_vm6 = vweird.f32 %v431_v29  ;;  %v456_v8 = vand.u32 2147483647, %v431_v29 }
 0x3a0   :  { %v459_v10 = vor.u32 1.1754944e-38, %v458_v5  ;;  %vm457_vm8 = vcmp.eq.f32.partialorder %v456_v8, 8.507059e+37 }
 0x3a4   :  { %v2778_v51 = vpop.eup %2777 }
 0x3a5   :  { %v448_v54 = vmul.f32 %v2778_v51, %v431_v29  ;;  %vm453_vm5 = vweird.f32 %v2778_v51 }
 0x3a6   :  { %vm454_vm7 = vmor %vm452_vm6, %vm453_vm5 }
 0x3a7   :  { %v449_v58 = vsub.f32 1.0, %v448_v54 }
 0x3a9   :  { %v450_v60 = vmul.f32 %v2778_v51, %v449_v58 }
 0x3ab   :  { %v451_v11 = vadd.f32 %v2778_v51, %v450_v60 }
 0x3ad   :  { %v455_v9 = vsel %vm454_vm7, %v2778_v51, %v451_v11 }
 0x3ae   :  { %v460_v13 = vsel %vm457_vm8, %v459_v10, %v455_v9 }
 0x3f5   :  { %v482_v14 = vpop.permute.xlu2 %481 }
 0x3f6   :  { %v484_v7 = vmul.f32 %v482_v14, %v460_v13 }
 0x3f8   :  { %490 = vst.msk [vmem:[#allocation5] sm:$0xff] %vm64_vm1, %v484_v7 }
 0x3f9   :  { %492 = vst.msk [vmem:[#allocation2 + $0x8] sm:$0xff] %vm347_vm12, %v484_v7 }
 0x3fa   :  { %494 = vst.msk [vmem:[#allocation2 + $0x30] sm:$0xff] %vm350_vm13, %v484_v7 }
 0x3ff   :  { %v495_v15 = vld [vmem:[#allocation5] sm:$0xff] }
 0x400   :  { %2678 = vmatmul.msk.f32.vlgmr.msra.gmra.mxu2 %vm64_vm1, %v495_v15  ;;  %2679 = vmatmul.msk.f32.vlgmr.msra.gmra.mxu3 %vm64_vm1, %v495_v15 }
 0x401   :  { %950 = vmatpush.msra.mxu2 %v3104_v18 }
 0x403   :  { %951 = vmatpush.msra.mxu2 %v3109_v19 }
 0x405   :  { %952 = vmatpush.msra.mxu2 %v3117_v20 }
 0x406   :  { %v487_v21 = vpop.permute.xlu0 %486 }
 0x407   :  { %489 = vst.msk [vmem:[#allocation6] sm:$0xff] %vm64_vm1, %v487_v21 }
 0x40e   :  { %v606_v23 = vld [vmem:[#allocation6] sm:$0xff] }
 0x40f   :  { %608 = vrot.lane.b32.xlu2 %v606_v23, %s2952_s3 }
 0x469   :  { %v609_v28 = vpop.permute.xlu2 %608 }
 0x483   :  { %v564_v24 = vpop.f32.mrf.mxu3  ;;  %v544_v18 = vpop.f32.mrf.mxu2 }
 0x484   :  { %v565_v25 = vadd.f32 %v564_v24, %v523_v62  ;;  %v545_v19 = vadd.f32 %v544_v18, %v522_v44 }
 0x486   :  { %2779 = vtanh.f32 %v565_v25  ;;  %v2680_v20 = vmul.f32 -1.442695, %v545_v19  ;;  %v2681_v58 = vmul.f32 -1.442695, %v565_v25 }
 0x488   :  { %2781 = vpow2.f32 %v2680_v20 }
 0x48c   :  { %v2780_v26 = vpop.eup %2779 }
 0x48d   :  { %613 = vrot.lane.b32.xlu1 %v2780_v26, %s2952_s3 }
 0x48e   :  { %v2782_v4 = vpop.eup %2781 }
 0x48f   :  { %v573_v0 = vadd.f32 1.0, %v2782_v4 }
 0x491   :  { %2783 = vrcp.f32 %v573_v0  ;;  %v586_v12 = vand.u32 2147483648, %v573_v0  ;;  %vm580_vm10 = vweird.f32 %v573_v0  ;;  %v584_v39 = vand.u32 2147483647, %v573_v0 }
 0x493   :  { %v587_v34 = vor.u32 1.1754944e-38, %v586_v12  ;;  %vm585_vm14 = vcmp.eq.f32.partialorder %v584_v39, 8.507059e+37 }
 0x497   :  { %v2784_v22 = vpop.eup %2783 }
 0x498   :  { %v576_v2 = vmul.f32 %v2784_v22, %v573_v0  ;;  %vm581_vm9 = vweird.f32 %v2784_v22 }
 0x499   :  { %vm582_vm11 = vmor %vm580_vm10, %vm581_vm9 }
 0x49a   :  { %v577_v27 = vsub.f32 1.0, %v576_v2 }
 0x49c   :  { %v578_v62 = vmul.f32 %v2784_v22, %v577_v27 }
 0x49e   :  { %v579_v31 = vadd.f32 %v2784_v22, %v578_v62 }
 0x4a0   :  { %v583_v32 = vsel %vm582_vm11, %v2784_v22, %v579_v31 }
 0x4a1   :  { %v588_v44 = vsel %vm585_vm14, %v587_v34, %v583_v32 }
 0x4a2   :  { %v611_v50 = vmul.f32 %v609_v28, %v588_v44 }
 0x4ff   :  { %v614_v40 = vpop.permute.xlu1 %613 }
 0x500   :  { %v616_v42 = vmul.f32 %v614_v40, %v588_v44 }
 0x502   :  { %618 = vrot.lane.b32.xlu0 %v616_v42, %s2952_s3 }
 0x574   :  { %v619_v29 = vpop.permute.xlu0 %618 }
 0x575   :  { %v621_v51 = vadd.f32 %v619_v29, %v611_v50 }
 0x577   :  { %2785 = vtanh.f32 %v621_v51  ;;  %629 = vrot.lane.b32.xlu2 %v621_v51, %s2952_s3 }
 0x578   :  { %2787 = vpow2.f32 %v2681_v58 }
 0x57d   :  { %v2786_v54 = vpop.eup %2785 }
 0x57e   :  { %624 = vrot.lane.b32.xlu1 %v2786_v54, %s2952_s3  ;;  %v2788_v60 = vpop.eup %2787 }
 0x57f   :  { %v574_v11 = vadd.f32 1.0, %v2788_v60 }
 0x581   :  { %2789 = vrcp.f32 %v574_v11  ;;  %v601_v15 = vand.u32 2147483648, %v574_v11  ;;  %vm595_vm0 = vweird.f32 %v574_v11  ;;  %v599_v21 = vand.u32 2147483647, %v574_v11 }
 0x583   :  { %v602_v24 = vor.u32 1.1754944e-38, %v601_v15  ;;  %vm600_vm5 = vcmp.eq.f32.partialorder %v599_v21, 8.507059e+37 }
 0x587   :  { %v2790_v9 = vpop.eup %2789 }
 0x588   :  { %v591_v10 = vmul.f32 %v2790_v9, %v574_v11  ;;  %vm596_vm15 = vweird.f32 %v2790_v9 }
 0x589   :  { %vm597_vm4 = vmor %vm595_vm0, %vm596_vm15 }
 0x58a   :  { %v592_v13 = vsub.f32 1.0, %v591_v10 }
 0x58c   :  { %v593_v14 = vmul.f32 %v2790_v9, %v592_v13 }
 0x58e   :  { %v594_v7 = vadd.f32 %v2790_v9, %v593_v14 }
 0x590   :  { %v598_v23 = vsel %vm597_vm4, %v2790_v9, %v594_v7 }
 0x591   :  { %v603_v25 = vsel %vm600_vm5, %v602_v24, %v598_v23 }
 0x5d1   :  { %v630_v5 = vpop.permute.xlu2 %629 }
 0x5d2   :  { %632 = vst.msk [vmem:[#allocation6] sm:$0xff] %vm64_vm1, %v630_v5 }
 0x5d9   :  { %v749_v8 = vld [vmem:[#allocation6] sm:$0xff] }
 0x5da   :  { %751 = vrot.lane.b32.xlu1 %v749_v8, %s2952_s3 }
 0x5f0   :  { %v625_v26 = vpop.permute.xlu1 %624 }
 0x5f1   :  { %v627_v18 = vmul.f32 %v625_v26, %v603_v25 }
 0x5f3   :  { %633 = vst.msk [vmem:[#allocation5] sm:$0xff] %vm64_vm1, %v627_v18 }
 0x5f4   :  { %635 = vst.msk [vmem:[#allocation2 + $0x10] sm:$0xff] %vm347_vm12, %v627_v18 }
 0x5f5   :  { %637 = vst.msk [vmem:[#allocation2 + $0x28] sm:$0xff] %vm350_vm13, %v627_v18 }
 0x5fa   :  { %v638_v19 = vld [vmem:[#allocation5] sm:$0xff] }
 0x5fb   :  { %2682 = vmatmul.msk.f32.vlgmr.msrb.gmra.mxu2 %vm64_vm1, %v638_v19  ;;  %2683 = vmatmul.msk.f32.vlgmr.msrb.gmra.mxu3 %vm64_vm1, %v638_v19 }
 0x64c   :  { %v752_v51 = vpop.permute.xlu1 %751 }
 0x67e   :  { %v707_v20 = vpop.f32.mrf.mxu3  ;;  %v687_v22 = vpop.f32.mrf.mxu2 }
 0x67f   :  { %v708_v4 = vadd.f32 %v707_v20, %v666_v56  ;;  %v688_v2 = vadd.f32 %v687_v22, %v665_v46 }
 0x681   :  { %2791 = vtanh.f32 %v708_v4  ;;  %v2684_v27 = vmul.f32 -1.442695, %v688_v2  ;;  %v2685_v5 = vmul.f32 -1.442695, %v708_v4 }
 0x683   :  { %2793 = vpow2.f32 %v2684_v27 }
 0x687   :  { %v2792_v0 = vpop.eup %2791 }
 0x688   :  { %756 = vrot.lane.b32.xlu0 %v2792_v0, %s2952_s3 }
 0x689   :  { %v2794_v62 = vpop.eup %2793 }
 0x68a   :  { %v716_v31 = vadd.f32 1.0, %v2794_v62 }
 0x68c   :  { %2795 = vrcp.f32 %v716_v31  ;;  %v729_v40 = vand.u32 2147483648, %v716_v31  ;;  %vm723_vm7 = vweird.f32 %v716_v31  ;;  %v727_v44 = vand.u32 2147483647, %v716_v31 }
 0x68e   :  { %v730_v28 = vor.u32 1.1754944e-38, %v729_v40  ;;  %vm728_vm9 = vcmp.eq.f32.partialorder %v727_v44, 8.507059e+37 }
 0x692   :  { %v2796_v12 = vpop.eup %2795 }
 0x693   :  { %v719_v39 = vmul.f32 %v2796_v12, %v716_v31  ;;  %vm724_vm6 = vweird.f32 %v2796_v12 }
 0x694   :  { %vm725_vm8 = vmor %vm723_vm7, %vm724_vm6 }
 0x695   :  { %v720_v32 = vsub.f32 1.0, %v719_v39 }
 0x697   :  { %v721_v56 = vmul.f32 %v2796_v12, %v720_v32 }
 0x699   :  { %v722_v34 = vadd.f32 %v2796_v12, %v721_v56 }
 0x69b   :  { %v726_v42 = vsel %vm725_vm8, %v2796_v12, %v722_v34 }
 0x69c   :  { %v731_v46 = vsel %vm728_vm9, %v730_v28, %v726_v42 }
 0x69d   :  { %v754_v54 = vmul.f32 %v752_v51, %v731_v46 }
 0x6fa   :  { %v757_v50 = vpop.permute.xlu0 %756 }
 0x6fb   :  { %v759_v29 = vmul.f32 %v757_v50, %v731_v46  ;;  %v932_v50 = vld [vmem:[%s4198_s2 + $0x78] sm:$0xff]  ;;  %v930_v46 = vld [vmem:[%s4198_s2 + $0x68] sm:$0xff] }
 0x6fc   :  { %970 = vmatpush.msra.mxu3 %v932_v50  ;;  %1105 = vmatpush.msra.mxu1 %v932_v50 }
 0x6fd   :  { %761 = vrot.lane.b32.xlu2 %v759_v29, %s2952_s3  ;;  %v928_v29 = vld [vmem:[%s4198_s2 + $0x58] sm:$0xff] }
 0x6fe   :  { %971 = vmatpush.msra.mxu3 %v930_v46  ;;  %1106 = vmatpush.msra.mxu1 %v930_v46 }
 0x700   :  { %972 = vmatpush.msra.mxu3 %v928_v29  ;;  %1107 = vmatpush.msra.mxu1 %v928_v29 }
 0x757   :  { %v762_v58 = vpop.permute.xlu2 %761 }
 0x758   :  { %v764_v60 = vadd.f32 %v762_v58, %v754_v54 }
 0x75a   :  { %2797 = vtanh.f32 %v764_v60  ;;  %772 = vrot.lane.b32.xlu1 %v764_v60, %s2952_s3 }
 0x75b   :  { %2799 = vpow2.f32 %v2685_v5 }
 0x760   :  { %v2798_v11 = vpop.eup %2797 }
 0x761   :  { %767 = vrot.lane.b32.xlu0 %v2798_v11, %s2952_s3  ;;  %v2800_v8 = vpop.eup %2799 }
 0x762   :  { %v717_v9 = vadd.f32 1.0, %v2800_v8 }
 0x764   :  { %2801 = vrcp.f32 %v717_v9  ;;  %v744_v23 = vand.u32 2147483648, %v717_v9  ;;  %vm738_vm11 = vweird.f32 %v717_v9  ;;  %v742_v24 = vand.u32 2147483647, %v717_v9 }
 0x766   :  { %v745_v26 = vor.u32 1.1754944e-38, %v744_v23  ;;  %vm743_vm15 = vcmp.eq.f32.partialorder %v742_v24, 8.507059e+37  ;;  %v3463_v23 = vld [vmem:[%s4198_s2 + $0x10] sm:$0xff]  ;;  %v920_v24 = vld [vmem:[%s4198_s2 + $0x18] sm:$0xff] }
 0x76a   :  { %v2802_v10 = vpop.eup %2801 }
 0x76b   :  { %v734_v13 = vmul.f32 %v2802_v10, %v717_v9  ;;  %vm739_vm10 = vweird.f32 %v2802_v10 }
 0x76c   :  { %vm740_vm14 = vmor %vm738_vm11, %vm739_vm10 }
 0x76d   :  { %v735_v14 = vsub.f32 1.0, %v734_v13  ;;  %v926_v13 = vld [vmem:[%s4198_s2 + $0x48] sm:$0xff] }
 0x76e   :  { %973 = vmatpush.msra.mxu3 %v926_v13  ;;  %1108 = vmatpush.msra.mxu1 %v926_v13 }
 0x76f   :  { %v736_v7 = vmul.f32 %v2802_v10, %v735_v14  ;;  %v3446_v14 = vld [vmem:[%s4198_s2 + $0x30] sm:$0xff] }
 0x771   :  { %v737_v21 = vadd.f32 %v2802_v10, %v736_v7  ;;  %v924_v7 = vld [vmem:[%s4198_s2 + $0x38] sm:$0xff] }
 0x772   :  { %974 = vmatpush.msra.mxu3 %v924_v7  ;;  %1109 = vmatpush.msra.mxu1 %v924_v7 }
 0x773   :  { %v741_v25 = vsel %vm740_vm14, %v2802_v10, %v737_v21  ;;  %v3437_v10 = vld [vmem:[%s4198_s2 + $0x40] sm:$0xff]  ;;  %v922_v21 = vld [vmem:[%s4198_s2 + $0x28] sm:$0xff] }
 0x774   :  { %v746_v18 = vsel %vm743_vm15, %v745_v26, %v741_v25  ;;  %953 = vmatpush.msra.mxu2 %v3437_v10  ;;  %975 = vmatpush.msra.mxu3 %v922_v21  ;;  %v3472_v25 = vld [vmem:[%s4198_s2] sm:$0xff]  ;;  %v918_v26 = vld [vmem:[%s4198_s2 + $0x8] sm:$0xff] }
 0x775   :  { %1110 = vmatpush.msra.mxu1 %v922_v21 }
 0x776   :  { %954 = vmatpush.msra.mxu2 %v3446_v14  ;;  %976 = vmatpush.msra.mxu3 %v920_v24 }
 0x777   :  { %1111 = vmatpush.msra.mxu1 %v920_v24 }
 0x778   :  { %977 = vmatpush.msra.mxu3 %v918_v26 }
 0x779   :  { %1112 = vmatpush.msra.mxu1 %v918_v26 }
 0x77a   :  { %1240 = vmatpush.msrb.mxu3 %v932_v50 }
 0x77c   :  { %1241 = vmatpush.msrb.mxu3 %v930_v46 }
 0x77e   :  { %1242 = vmatpush.msrb.mxu3 %v928_v29 }
 0x780   :  { %1243 = vmatpush.msrb.mxu3 %v926_v13  ;;  %v1062_v13 = vld [vmem:[%s4198_s2 + $0x50] sm:$0xff] }
 0x782   :  { %1244 = vmatpush.msrb.mxu3 %v924_v7 }
 0x784   :  { %1245 = vmatpush.msrb.mxu3 %v922_v21 }
 0x786   :  { %1246 = vmatpush.msrb.mxu3 %v920_v24 }
 0x788   :  { %1247 = vmatpush.msrb.mxu3 %v918_v26 }
 0x7cc   :  { %v773_v15 = vpop.permute.xlu1 %772 }
 0x7cd   :  { %775 = vst.msk [vmem:[#allocation6] sm:$0xff] %vm64_vm1, %v773_v15  ;;  %v3454_v15 = vld [vmem:[%s4198_s2 + $0x20] sm:$0xff] }
 0x7ce   :  { %955 = vmatpush.msra.mxu2 %v3454_v15 }
 0x7d0   :  { %956 = vmatpush.msra.mxu2 %v3463_v23 }
 0x7d2   :  { %957 = vmatpush.msra.mxu2 %v3472_v25 }
 0x7d3   :  { %v768_v19 = vpop.permute.xlu0 %767 }
 0x7d4   :  { %v770_v20 = vmul.f32 %v768_v19, %v746_v18  ;;  %v886_v4 = vld [vmem:[#allocation6] sm:$0xff] }
 0x7d5   :  { %888 = vrot.lane.b32.xlu0 %v886_v4, %s2952_s3 }
 0x7d6   :  { %776 = vst.msk [vmem:[#allocation5] sm:$0xff] %vm64_vm1, %v770_v20 }
 0x7d7   :  { %778 = vst.msk [vmem:[#allocation2 + $0x18] sm:$0xff] %vm347_vm12, %v770_v20 }
 0x7d8   :  { %780 = vst.msk [vmem:[#allocation2 + $0x20] sm:$0xff] %vm350_vm13, %v770_v20 }
 0x7dd   :  { %v781_v0 = vld [vmem:[#allocation5] sm:$0xff] }
 0x7de   :  { %2686 = vmatmul.msk.f32.vlgmr.msrb.gmra.mxu0 %vm64_vm1, %v781_v0  ;;  %2687 = vmatmul.msk.f32.vlgmr.msrb.gmra.mxu1 %vm64_vm1, %v781_v0 }
 0x847   :  { %v889_v51 = vpop.permute.xlu0 %888 }
 0x85b   :  { %v844_v22 = vpop.f32.mrf.mxu1  ;;  %v824_v62 = vpop.f32.mrf.mxu0 }
 0x85c   :  { %v845_v2 = vadd.f32 %v844_v22, %v803_v57  ;;  %v825_v31 = vadd.f32 %v824_v62, %v802_v48 }
 0x85e   :  { %2803 = vtanh.f32 %v845_v2  ;;  %v2688_v12 = vmul.f32 -1.442695, %v825_v31  ;;  %v2689_v5 = vmul.f32 -1.442695, %v845_v2 }
 0x860   :  { %2805 = vpow2.f32 %v2688_v12 }
 0x864   :  { %v2804_v27 = vpop.eup %2803 }
 0x865   :  { %893 = vrot.lane.b32.xlu2 %v2804_v27, %s2952_s3 }
 0x866   :  { %v2806_v39 = vpop.eup %2805 }
 0x867   :  { %v853_v32 = vadd.f32 1.0, %v2806_v39 }
 0x869   :  { %2807 = vrcp.f32 %v853_v32  ;;  %v866_v40 = vand.u32 2147483648, %v853_v32  ;;  %vm860_vm4 = vweird.f32 %v853_v32  ;;  %v864_v44 = vand.u32 2147483647, %v853_v32 }
 0x86b   :  { %v867_v28 = vor.u32 1.1754944e-38, %v866_v40  ;;  %vm865_vm6 = vcmp.eq.f32.partialorder %v864_v44, 8.507059e+37 }
 0x86f   :  { %v2808_v56 = vpop.eup %2807 }
 0x870   :  { %v856_v34 = vmul.f32 %v2808_v56, %v853_v32  ;;  %vm861_vm0 = vweird.f32 %v2808_v56 }
 0x871   :  { %vm862_vm5 = vmor %vm860_vm4, %vm861_vm0 }
 0x872   :  { %v857_v47 = vsub.f32 1.0, %v856_v34 }
 0x874   :  { %v858_v53 = vmul.f32 %v2808_v56, %v857_v47 }
 0x876   :  { %v859_v57 = vadd.f32 %v2808_v56, %v858_v53 }
 0x878   :  { %v863_v42 = vsel %vm862_vm5, %v2808_v56, %v859_v57 }
 0x879   :  { %v868_v55 = vsel %vm865_vm6, %v867_v28, %v863_v42 }
 0x87a   :  { %v891_v54 = vmul.f32 %v889_v51, %v868_v55 }
 0x8bf   :  { %v894_v49 = vpop.permute.xlu2 %893 }
 0x8c0   :  { %v896_v48 = vmul.f32 %v894_v49, %v868_v55 }
 0x8c2   :  { %898 = vrot.lane.b32.xlu1 %v896_v48, %s2952_s3 }
 0x934   :  { %v899_v58 = vpop.permute.xlu1 %898 }
 0x935   :  { %v901_v60 = vadd.f32 %v899_v58, %v891_v54 }
 0x937   :  { %2809 = vtanh.f32 %v901_v60  ;;  %909 = vrot.lane.b32.xlu0 %v901_v60, %s2952_s3 }
 0x938   :  { %2811 = vpow2.f32 %v2689_v5 }
 0x93d   :  { %v2810_v11 = vpop.eup %2809 }
 0x93e   :  { %904 = vrot.lane.b32.xlu2 %v2810_v11, %s2952_s3  ;;  %v2812_v8 = vpop.eup %2811 }
 0x93f   :  { %v854_v9 = vadd.f32 1.0, %v2812_v8  ;;  %v1066_v8 = vld [vmem:[%s4198_s2 + $0x70] sm:$0xff] }
 0x940   :  { %1085 = vmatpush.msra.mxu0 %v1066_v8  ;;  %1220 = vmatpush.msrb.mxu2 %v1066_v8 }
 0x941   :  { %2813 = vrcp.f32 %v854_v9  ;;  %v881_v22 = vand.u32 2147483648, %v854_v9  ;;  %vm875_vm8 = vweird.f32 %v854_v9  ;;  %v879_v2 = vand.u32 2147483647, %v854_v9 }
 0x943   :  { %v882_v62 = vor.u32 1.1754944e-38, %v881_v22  ;;  %vm880_vm10 = vcmp.eq.f32.partialorder %v879_v2, 8.507059e+37 }
 0x947   :  { %v2814_v18 = vpop.eup %2813 }
 0x948   :  { %v871_v19 = vmul.f32 %v2814_v18, %v854_v9  ;;  %vm876_vm7 = vweird.f32 %v2814_v18  ;;  %v1064_v9 = vld [vmem:[%s4198_s2 + $0x60] sm:$0xff] }
 0x949   :  { %vm877_vm9 = vmor %vm875_vm8, %vm876_vm7  ;;  %1086 = vmatpush.msra.mxu0 %v1064_v9  ;;  %1221 = vmatpush.msrb.mxu2 %v1064_v9 }
 0x94a   :  { %v872_v20 = vsub.f32 1.0, %v871_v19 }
 0x94b   :  { %1087 = vmatpush.msra.mxu0 %v1062_v13  ;;  %1222 = vmatpush.msrb.mxu2 %v1062_v13 }
 0x94c   :  { %v873_v4 = vmul.f32 %v2814_v18, %v872_v20 }
 0x94d   :  { %1088 = vmatpush.msra.mxu0 %v3437_v10  ;;  %1223 = vmatpush.msrb.mxu2 %v3437_v10 }
 0x94e   :  { %v874_v0 = vadd.f32 %v2814_v18, %v873_v4 }
 0x94f   :  { %1089 = vmatpush.msra.mxu0 %v3446_v14  ;;  %1224 = vmatpush.msrb.mxu2 %v3446_v14 }
 0x950   :  { %v878_v27 = vsel %vm877_vm9, %v2814_v18, %v874_v0 }
 0x951   :  { %v883_v31 = vsel %vm880_vm10, %v882_v62, %v878_v27  ;;  %1090 = vmatpush.msra.mxu0 %v3454_v15  ;;  %1225 = vmatpush.msrb.mxu2 %v3454_v15 }
 0x953   :  { %1091 = vmatpush.msra.mxu0 %v3463_v23  ;;  %1226 = vmatpush.msrb.mxu2 %v3463_v23 }
 0x955   :  { %1092 = vmatpush.msra.mxu0 %v3472_v25  ;;  %1227 = vmatpush.msrb.mxu2 %v3472_v25 }
 0x998   :  { %v905_v12 = vpop.permute.xlu2 %904 }
 0x999   :  { %v907_v39 = vmul.f32 %v905_v12, %v883_v31 }
 0x99b   :  { %913 = vst.msk [vmem:[#allocation5] sm:$0xff] %vm64_vm1, %v907_v39 }
 0x99c   :  { %914 = vst.msk [vmem:[#allocation2 + $0x20] sm:$0xff] %vm347_vm12, %v907_v39 }
 0x99d   :  { %915 = vst.msk [vmem:[#allocation2 + $0x18] sm:$0xff] %vm350_vm13, %v907_v39 }
 0x9a2   :  { %v916_v32 = vld [vmem:[#allocation5] sm:$0xff] }
 0x9a3   :  { %2690 = vmatmul.msk.f32.vlgmr.msra.gmra.mxu2 %vm64_vm1, %v916_v32  ;;  %2691 = vmatmul.msk.f32.vlgmr.msra.gmra.mxu3 %vm64_vm1, %v916_v32 }
 0x9a9   :  { %v910_v56 = vpop.permute.xlu0 %909 }
 0x9aa   :  { %912 = vst.msk [vmem:[#allocation6] sm:$0xff] %vm64_vm1, %v910_v56 }
 0x9b1   :  { %v1021_v34 = vld [vmem:[#allocation6] sm:$0xff] }
 0x9b2   :  { %1023 = vrot.lane.b32.xlu2 %v1021_v34, %s2952_s3 }
 0xa0c   :  { %v1024_v54 = vpop.permute.xlu2 %1023 }
 0xa26   :  { %v979_v47 = vpop.f32.mrf.mxu3  ;;  %v959_v40 = vpop.f32.mrf.mxu2 }
 0xa27   :  { %v980_v53 = vadd.f32 %v979_v47, %v938_v63  ;;  %v960_v44 = vadd.f32 %v959_v40, %v937_v45 }
 0xa29   :  { %2815 = vtanh.f32 %v980_v53  ;;  %v2692_v42 = vmul.f32 -1.442695, %v960_v44  ;;  %v2693_v7 = vmul.f32 -1.442695, %v980_v53 }
 0xa2b   :  { %2817 = vpow2.f32 %v2692_v42 }
 0xa2f   :  { %v2816_v57 = vpop.eup %2815 }
 0xa30   :  { %1028 = vrot.lane.b32.xlu1 %v2816_v57, %s2952_s3 }
 0xa31   :  { %v2818_v28 = vpop.eup %2817 }
 0xa32   :  { %v988_v49 = vadd.f32 1.0, %v2818_v28 }
 0xa34   :  { %2819 = vrcp.f32 %v988_v49  ;;  %v1001_v50 = vand.u32 2147483648, %v988_v49  ;;  %vm995_vm14 = vweird.f32 %v988_v49  ;;  %v999_v46 = vand.u32 2147483647, %v988_v49 }
 0xa36   :  { %v1002_v51 = vor.u32 1.1754944e-38, %v1001_v50  ;;  %vm1000_vm0 = vcmp.eq.f32.partialorder %v999_v46, 8.507059e+37 }
 0xa3a   :  { %v2820_v55 = vpop.eup %2819 }
 0xa3b   :  { %v991_v48 = vmul.f32 %v2820_v55, %v988_v49  ;;  %vm996_vm11 = vweird.f32 %v2820_v55 }
 0xa3c   :  { %vm997_vm15 = vmor %vm995_vm14, %vm996_vm11 }
 0xa3d   :  { %v992_v41 = vsub.f32 1.0, %v991_v48 }
 0xa3f   :  { %v993_v59 = vmul.f32 %v2820_v55, %v992_v41 }
 0xa41   :  { %v994_v63 = vadd.f32 %v2820_v55, %v993_v59 }
 0xa43   :  { %v998_v29 = vsel %vm997_vm15, %v2820_v55, %v994_v63 }
 0xa44   :  { %v1003_v61 = vsel %vm1000_vm0, %v1002_v51, %v998_v29 }
 0xa45   :  { %v1026_v58 = vmul.f32 %v1024_v54, %v1003_v61 }
 0xaa2   :  { %v1029_v43 = vpop.permute.xlu1 %1028 }
 0xaa3   :  { %v1031_v45 = vmul.f32 %v1029_v43, %v1003_v61 }
 0xaa5   :  { %1033 = vrot.lane.b32.xlu0 %v1031_v45, %s2952_s3 }
 0xb17   :  { %v1034_v60 = vpop.permute.xlu0 %1033 }
 0xb18   :  { %v1036_v11 = vadd.f32 %v1034_v60, %v1026_v58 }
 0xb1a   :  { %2821 = vtanh.f32 %v1036_v11  ;;  %1044 = vrot.lane.b32.xlu2 %v1036_v11, %s2952_s3 }
 0xb1b   :  { %2823 = vpow2.f32 %v2693_v7 }
 0xb20   :  { %v2822_v5 = vpop.eup %2821 }
 0xb21   :  { %1039 = vrot.lane.b32.xlu1 %v2822_v5, %s2952_s3  ;;  %v2824_v21 = vpop.eup %2823 }
 0xb22   :  { %v989_v10 = vadd.f32 1.0, %v2824_v21 }
 0xb24   :  { %2825 = vrcp.f32 %v989_v10  ;;  %v1016_v23 = vand.u32 2147483648, %v989_v10  ;;  %vm1010_vm5 = vweird.f32 %v989_v10  ;;  %v1014_v4 = vand.u32 2147483647, %v989_v10 }
 0xb26   :  { %v1017_v0 = vor.u32 1.1754944e-38, %v1016_v23  ;;  %vm1015_vm7 = vcmp.eq.f32.partialorder %v1014_v4, 8.507059e+37 }
 0xb2a   :  { %v2826_v26 = vpop.eup %2825 }
 0xb2b   :  { %v1006_v15 = vmul.f32 %v2826_v26, %v989_v10  ;;  %vm1011_vm4 = vweird.f32 %v2826_v26 }
 0xb2c   :  { %vm1012_vm6 = vmor %vm1010_vm5, %vm1011_vm4 }
 0xb2d   :  { %v1007_v18 = vsub.f32 1.0, %v1006_v15 }
 0xb2f   :  { %v1008_v19 = vmul.f32 %v2826_v26, %v1007_v18 }
 0xb31   :  { %v1009_v20 = vadd.f32 %v2826_v26, %v1008_v19  ;;  %v4214_v19 = vsel %vm3281_vm3, %v3279_v30, %v3277_v37 }
 0xb33   :  { %v1013_v25 = vsel %vm1012_vm6, %v2826_v26, %v1009_v20 }
 0xb34   :  { %v1018_v22 = vsel %vm1015_vm7, %v1017_v0, %v1013_v25 }
 0xb74   :  { %v1045_v24 = vpop.permute.xlu2 %1044 }
 0xb75   :  { %1047 = vst.msk [vmem:[#allocation6] sm:$0xff] %vm64_vm1, %v1045_v24 }
 0xb7c   :  { %v1156_v14 = vld [vmem:[#allocation6] sm:$0xff] }
 0xb7d   :  { %1158 = vrot.lane.b32.xlu1 %v1156_v14, %s2952_s3  ;;  %v4213_v14 = vsel %vm3225_vm2, %v3267_v17, %v3265_v16 }
 0xb93   :  { %v1040_v2 = vpop.permute.xlu1 %1039 }
 0xb94   :  { %v1042_v27 = vmul.f32 %v1040_v2, %v1018_v22 }
 0xb96   :  { %1048 = vst.msk [vmem:[#allocation5] sm:$0xff] %vm64_vm1, %v1042_v27 }
 0xb97   :  { %1049 = vst.msk [vmem:[#allocation2 + $0x28] sm:$0xff] %vm347_vm12, %v1042_v27 }
 0xb98   :  { %1050 = vst.msk [vmem:[#allocation2 + $0x10] sm:$0xff] %vm350_vm13, %v1042_v27 }
 0xb9d   :  { %v1051_v62 = vld [vmem:[#allocation5] sm:$0xff] }
 0xb9e   :  { %2694 = vmatmul.msk.f32.vlgmr.msra.gmra.mxu0 %vm64_vm1, %v1051_v62  ;;  %2695 = vmatmul.msk.f32.vlgmr.msra.gmra.mxu1 %vm64_vm1, %v1051_v62 }
 0xbef   :  { %v1159_v55 = vpop.permute.xlu1 %1158 }
 0xc1b   :  { %v1114_v31 = vpop.f32.mrf.mxu1  ;;  %v1094_v32 = vpop.f32.mrf.mxu0 }
 0xc1c   :  { %v1115_v12 = vadd.f32 %v1114_v31, %v1073_v6  ;;  %v1095_v56 = vadd.f32 %v1094_v32, %v1072_v35  ;;  %v1345_v32 = vld [vmem:[%s4200_s4 + $0x70] sm:$0xff] }
 0xc1d   :  { %1385 = vmatpush.msrb.mxu0 %v1345_v32 }
 0xc1e   :  { %2827 = vtanh.f32 %v1115_v12  ;;  %v2696_v34 = vmul.f32 -1.442695, %v1095_v56  ;;  %v2697_v50 = vmul.f32 -1.442695, %v1115_v12  ;;  %v1346_v56 = vld [vmem:[%s4200_s4 + $0x78] sm:$0xff] }
 0xc1f   :  { %1426 = vmatpush.msrb.mxu1 %v1346_v56 }
 0xc20   :  { %2829 = vpow2.f32 %v2696_v34  ;;  %v1343_v34 = vld [vmem:[%s4200_s4 + $0x60] sm:$0xff] }
 0xc21   :  { %1386 = vmatpush.msrb.mxu0 %v1343_v34 }
 0xc24   :  { %v2828_v39 = vpop.eup %2827 }
 0xc25   :  { %1163 = vrot.lane.b32.xlu0 %v2828_v39, %s2952_s3 }
 0xc26   :  { %v2830_v47 = vpop.eup %2829 }
 0xc27   :  { %v1123_v53 = vadd.f32 1.0, %v2830_v47  ;;  %v1344_v47 = vld [vmem:[%s4200_s4 + $0x68] sm:$0xff] }
 0xc28   :  { %1427 = vmatpush.msrb.mxu1 %v1344_v47 }
 0xc29   :  { %2831 = vrcp.f32 %v1123_v53  ;;  %v1136_v44 = vand.u32 2147483648, %v1123_v53  ;;  %vm1130_vm9 = vweird.f32 %v1123_v53  ;;  %v1134_v42 = vand.u32 2147483647, %v1123_v53 }
 0xc2b   :  { %v1137_v49 = vor.u32 1.1754944e-38, %v1136_v44  ;;  %vm1135_vm11 = vcmp.eq.f32.partialorder %v1134_v42, 8.507059e+37 }
 0xc2f   :  { %v2832_v57 = vpop.eup %2831 }
 0xc30   :  { %v1126_v40 = vmul.f32 %v2832_v57, %v1123_v53  ;;  %vm1131_vm8 = vweird.f32 %v2832_v57  ;;  %v1341_v53 = vld [vmem:[%s4200_s4 + $0x50] sm:$0xff] }
 0xc31   :  { %vm1132_vm10 = vmor %vm1130_vm9, %vm1131_vm8  ;;  %1387 = vmatpush.msrb.mxu0 %v1341_v53  ;;  %v1347_v53 = vld [vmem:[%s4202_s6] sm:$0x3] }
 0xc32   :  { %v1127_v36 = vsub.f32 1.0, %v1126_v40 }
 0xc34   :  { %v1128_v1 = vmul.f32 %v2832_v57, %v1127_v36 }
 0xc36   :  { %v1129_v6 = vadd.f32 %v2832_v57, %v1128_v1 }
 0xc38   :  { %v1133_v28 = vsel %vm1132_vm10, %v2832_v57, %v1129_v6  ;;  %v1342_v57 = vld [vmem:[%s4200_s4 + $0x58] sm:$0xff] }
 0xc39   :  { %v1138_v3 = vsel %vm1135_vm11, %v1137_v49, %v1133_v28  ;;  %1428 = vmatpush.msrb.mxu1 %v1342_v57  ;;  %v1349_v57 = vperm.slane %v1347_v53, 0 }
 0xc3a   :  { %v1161_v48 = vmul.f32 %v1159_v55, %v1138_v3  ;;  %v1338_v55 = vld [vmem:[%s4200_s4 + $0x38] sm:$0xff] }
 0xc97   :  { %v1164_v38 = vpop.permute.xlu0 %1163 }
 0xc98   :  { %v1166_v35 = vmul.f32 %v1164_v38, %v1138_v3  ;;  %v1339_v38 = vld [vmem:[%s4200_s4 + $0x40] sm:$0xff]  ;;  %v1340_v3 = vld [vmem:[%s4200_s4 + $0x48] sm:$0xff] }
 0xc99   :  { %1388 = vmatpush.msrb.mxu0 %v1339_v38  ;;  %1429 = vmatpush.msrb.mxu1 %v1340_v3 }
 0xc9a   :  { %1168 = vrot.lane.b32.xlu2 %v1166_v35, %s2952_s3  ;;  %v1337_v35 = vld [vmem:[%s4200_s4 + $0x30] sm:$0xff] }
 0xc9b   :  { %1389 = vmatpush.msrb.mxu0 %v1337_v35  ;;  %1430 = vmatpush.msrb.mxu1 %v1338_v55 }
 0xcf4   :  { %v1169_v41 = vpop.permute.xlu2 %1168 }
 0xcf5   :  { %v1171_v59 = vadd.f32 %v1169_v41, %v1161_v48  ;;  %v1335_v48 = vld [vmem:[%s4200_s4 + $0x20] sm:$0xff]  ;;  %v1336_v41 = vld [vmem:[%s4200_s4 + $0x28] sm:$0xff] }
 0xcf6   :  { %1390 = vmatpush.msrb.mxu0 %v1335_v48  ;;  %1431 = vmatpush.msrb.mxu1 %v1336_v41 }
 0xcf7   :  { %2833 = vtanh.f32 %v1171_v59  ;;  %1179 = vrot.lane.b32.xlu1 %v1171_v59, %s2952_s3  ;;  %v1333_v59 = vld [vmem:[%s4200_s4 + $0x10] sm:$0xff] }
 0xcf8   :  { %2835 = vpow2.f32 %v2697_v50  ;;  %v1331_v50 = vld [vmem:[%s4200_s4] sm:$0xff]  ;;  %1391 = vmatpush.msrb.mxu0 %v1333_v59 }
 0xcfa   :  { %1392 = vmatpush.msrb.mxu0 %v1331_v50 }
 0xcfd   :  { %v2834_v63 = vpop.eup %2833 }
 0xcfe   :  { %1174 = vrot.lane.b32.xlu0 %v2834_v63, %s2952_s3  ;;  %v2836_v46 = vpop.eup %2835  ;;  %v1334_v63 = vld [vmem:[%s4200_s4 + $0x18] sm:$0xff] }
 0xcff   :  { %v1124_v29 = vadd.f32 1.0, %v2836_v46  ;;  %v1332_v46 = vld [vmem:[%s4200_s4 + $0x8] sm:$0xff]  ;;  %1432 = vmatpush.msrb.mxu1 %v1334_v63 }
 0xd01   :  { %2837 = vrcp.f32 %v1124_v29  ;;  %v1151_v60 = vand.u32 2147483648, %v1124_v29  ;;  %vm1145_vm15 = vweird.f32 %v1124_v29  ;;  %v1149_v11 = vand.u32 2147483647, %v1124_v29  ;;  %1433 = vmatpush.msrb.mxu1 %v1332_v46 }
 0xd03   :  { %v1152_v8 = vor.u32 1.1754944e-38, %v1151_v60  ;;  %vm1150_vm4 = vcmp.eq.f32.partialorder %v1149_v11, 8.507059e+37 }
 0xd07   :  { %v2838_v51 = vpop.eup %2837 }
 0xd08   :  { %v1141_v43 = vmul.f32 %v2838_v51, %v1124_v29  ;;  %vm1146_vm14 = vweird.f32 %v2838_v51 }
 0xd09   :  { %vm1147_vm0 = vmor %vm1145_vm15, %vm1146_vm14 }
 0xd0a   :  { %v1142_v61 = vsub.f32 1.0, %v1141_v43 }
 0xd0c   :  { %v1143_v45 = vmul.f32 %v2838_v51, %v1142_v61 }
 0xd0e   :  { %v1144_v58 = vadd.f32 %v2838_v51, %v1143_v45 }
 0xd10   :  { %v1148_v5 = vsel %vm1147_vm0, %v2838_v51, %v1144_v58 }
 0xd11   :  { %v1153_v9 = vsel %vm1150_vm4, %v1152_v8, %v1148_v5 }
 0xd69   :  { %v1180_v54 = vpop.permute.xlu1 %1179 }
 0xd6a   :  { %1182 = vst.msk [vmem:[#allocation6] sm:$0xff] %vm64_vm1, %v1180_v54 }
 0xd70   :  { %v1175_v13 = vpop.permute.xlu0 %1174 }
 0xd71   :  { %v1177_v7 = vmul.f32 %v1175_v13, %v1153_v9  ;;  %v1291_v21 = vld [vmem:[#allocation6] sm:$0xff]  ;;  %v4215_v13 = vmov 0.0  }
 0xd72   :  { %1293 = vrot.lane.b32.xlu0 %v1291_v21, %s2952_s3  ;;  %v3619_v21 = vld [vmem:[%s4201_s5 + $0x70] sm:$0xff] }
 0xd73   :  { %1183 = vst.msk [vmem:[#allocation5] sm:$0xff] %vm64_vm1, %v1177_v7  ;;  %1509 = vmatpush.msra.mxu2 %v3619_v21  ;;  %2056 = vmatpush.msra.mxu0 %v3619_v21 }
 0xd74   :  { %1184 = vst.msk [vmem:[#allocation2 + $0x30] sm:$0xff] %vm347_vm12, %v1177_v7 }
 0xd75   :  { %1185 = vst.msk [vmem:[#allocation2 + $0x8] sm:$0xff] %vm350_vm13, %v1177_v7 }
 0xd7a   :  { %v1186_v10 = vld [vmem:[#allocation5] sm:$0xff] }
 0xd7b   :  { %2698 = vmatmul.msk.f32.vlgmr.msrb.gmra.mxu2 %vm64_vm1, %v1186_v10  ;;  %2699 = vmatmul.msk.f32.vlgmr.msrb.gmra.mxu3 %vm64_vm1, %v1186_v10  ;;  %v3624_v10 = vld [vmem:[%s4201_s5 + $0x78] sm:$0xff]  ;;  %v1329_v32 = vld [vmem:[#allocation2 + $0x30] sm:$0xff] }
 0xd7c   :  { %1529 = vmatpush.msra.mxu3 %v3624_v10  ;;  %2076 = vmatpush.msra.mxu1 %v3624_v10 }
 0xde4   :  { %v1294_v40 = vpop.permute.xlu0 %1293 }
 0xdfe   :  { %v1249_v24 = vpop.f32.mrf.mxu3  ;;  %v1229_v18 = vpop.f32.mrf.mxu2 }
 0xdff   :  { %v1250_v26 = vadd.f32 %v1249_v24, %v4213_v14  ;;  %v1230_v20 = vadd.f32 %v1229_v18, %v4214_v19  ;;  %v1324_v14 = vld [vmem:[#allocation2 + $0x8] sm:$0xff]  ;;  %v3648_v18 = vld [vmem:[%s4201_s5 + $0x50] sm:$0xff]  ;;  %v3653_v19 = vld [vmem:[%s4201_s5 + $0x58] sm:$0xff] }
 0xe01   :  { %2839 = vtanh.f32 %v1250_v26  ;;  %v2700_v23 = vmul.f32 -1.442695, %v1230_v20  ;;  %v2701_v42 = vmul.f32 -1.442695, %v1250_v26  ;;  %v3636_v26 = vld [vmem:[%s4201_s5 + $0x60] sm:$0xff] }
 0xe02   :  { %1510 = vmatpush.msra.mxu2 %v3636_v26  ;;  %v3660_v20 = vld [vmem:[%s4201_s5 + $0x40] sm:$0xff]  ;;  %2057 = vmatpush.msra.mxu0 %v3636_v26 }
 0xe03   :  { %2841 = vpow2.f32 %v2700_v23  ;;  %v3665_v23 = vld [vmem:[%s4201_s5 + $0x48] sm:$0xff] }
 0xe04   :  { %1511 = vmatpush.msra.mxu2 %v3648_v18  ;;  %2058 = vmatpush.msra.mxu0 %v3648_v18 }
 0xe06   :  { %1512 = vmatpush.msra.mxu2 %v3660_v20  ;;  %2059 = vmatpush.msra.mxu0 %v3660_v20 }
 0xe07   :  { %v2840_v15 = vpop.eup %2839 }
 0xe08   :  { %1298 = vrot.lane.b32.xlu2 %v2840_v15, %s2952_s3  ;;  %v3641_v15 = vld [vmem:[%s4201_s5 + $0x68] sm:$0xff] }
 0xe09   :  { %v2842_v4 = vpop.eup %2841  ;;  %1530 = vmatpush.msra.mxu3 %v3641_v15  ;;  %2077 = vmatpush.msra.mxu1 %v3641_v15 }
 0xe0a   :  { %v1258_v25 = vadd.f32 1.0, %v2842_v4  ;;  %v3674_v4 = vld [vmem:[%s4201_s5 + $0x30] sm:$0xff] }
 0xe0b   :  { %1531 = vmatpush.msra.mxu3 %v3653_v19  ;;  %2078 = vmatpush.msra.mxu1 %v3653_v19 }
 0xe0c   :  { %2843 = vrcp.f32 %v1258_v25  ;;  %v1271_v27 = vand.u32 2147483648, %v1258_v25  ;;  %vm1265_vm6 = vweird.f32 %v1258_v25  ;;  %v1269_v62 = vand.u32 2147483647, %v1258_v25  ;;  %1513 = vmatpush.msra.mxu2 %v3674_v4  ;;  %2060 = vmatpush.msra.mxu0 %v3674_v4 }
 0xe0d   :  { %1532 = vmatpush.msra.mxu3 %v3665_v23  ;;  %2079 = vmatpush.msra.mxu1 %v3665_v23 }
 0xe0e   :  { %v1272_v12 = vor.u32 1.1754944e-38, %v1271_v27  ;;  %vm1270_vm8 = vcmp.eq.f32.partialorder %v1269_v62, 8.507059e+37  ;;  %v3716_v27 = vld [vmem:[%s4201_s5] sm:$0xff]  ;;  %v3721_v62 = vld [vmem:[%s4201_s5 + $0x8] sm:$0xff] }
 0xe12   :  { %v2844_v0 = vpop.eup %2843 }
 0xe13   :  { %v1261_v22 = vmul.f32 %v2844_v0, %v1258_v25  ;;  %vm1266_vm5 = vweird.f32 %v2844_v0  ;;  %v3679_v25 = vld [vmem:[%s4201_s5 + $0x38] sm:$0xff] }
 0xe14   :  { %vm1267_vm7 = vmor %vm1265_vm6, %vm1266_vm5  ;;  %1533 = vmatpush.msra.mxu3 %v3679_v25  ;;  %2080 = vmatpush.msra.mxu1 %v3679_v25 }
 0xe15   :  { %v1262_v16 = vsub.f32 1.0, %v1261_v22  ;;  %v3692_v22 = vld [vmem:[%s4201_s5 + $0x20] sm:$0xff] }
 0xe16   :  { %1514 = vmatpush.msra.mxu2 %v3692_v22  ;;  %2061 = vmatpush.msra.mxu0 %v3692_v22 }
 0xe17   :  { %v1263_v17 = vmul.f32 %v2844_v0, %v1262_v16  ;;  %v3697_v16 = vld [vmem:[%s4201_s5 + $0x28] sm:$0xff] }
 0xe18   :  { %1534 = vmatpush.msra.mxu3 %v3697_v16  ;;  %2081 = vmatpush.msra.mxu1 %v3697_v16 }
 0xe19   :  { %v1264_v2 = vadd.f32 %v2844_v0, %v1263_v17  ;;  %v3704_v17 = vld [vmem:[%s4201_s5 + $0x10] sm:$0xff] }
 0xe1a   :  { %1515 = vmatpush.msra.mxu2 %v3704_v17  ;;  %2062 = vmatpush.msra.mxu0 %v3704_v17 }
 0xe1b   :  { %v1268_v31 = vsel %vm1267_vm7, %v2844_v0, %v1264_v2  ;;  %v1325_v0 = vld [vmem:[#allocation2 + $0x10] sm:$0xff]  ;;  %v3709_v2 = vld [vmem:[%s4201_s5 + $0x18] sm:$0xff] }
 0xe1c   :  { %v1273_v30 = vsel %vm1270_vm8, %v1272_v12, %v1268_v31  ;;  %1535 = vmatpush.msra.mxu3 %v3709_v2  ;;  %1516 = vmatpush.msra.mxu2 %v3716_v27  ;;  %v1326_v12 = vld [vmem:[#allocation2 + $0x18] sm:$0xff] }
 0xe1d   :  { %v1296_v36 = vmul.f32 %v1294_v40, %v1273_v30  ;;  %2082 = vmatpush.msra.mxu1 %v3709_v2  ;;  %2063 = vmatpush.msra.mxu0 %v3716_v27  ;;  %v1350_v40 = vperm.slane %v1347_v53, 1 }
 0xe1e   :  { %1536 = vmatpush.msra.mxu3 %v3721_v62  ;;  %1645 = vmatpush.msrb.mxu2 %v3619_v21 }
 0xe1f   :  { %2083 = vmatpush.msra.mxu1 %v3721_v62 }
 0xe20   :  { %1665 = vmatpush.msrb.mxu3 %v3624_v10  ;;  %1646 = vmatpush.msrb.mxu2 %v3636_v26 }
 0xe22   :  { %1666 = vmatpush.msrb.mxu3 %v3641_v15  ;;  %1647 = vmatpush.msrb.mxu2 %v3648_v18 }
 0xe24   :  { %1667 = vmatpush.msrb.mxu3 %v3653_v19  ;;  %1648 = vmatpush.msrb.mxu2 %v3660_v20 }
 0xe26   :  { %1668 = vmatpush.msrb.mxu3 %v3665_v23  ;;  %1649 = vmatpush.msrb.mxu2 %v3674_v4 }
 0xe28   :  { %1669 = vmatpush.msrb.mxu3 %v3679_v25  ;;  %1650 = vmatpush.msrb.mxu2 %v3692_v22 }
 0xe2a   :  { %1670 = vmatpush.msrb.mxu3 %v3697_v16  ;;  %1651 = vmatpush.msrb.mxu2 %v3704_v17 }
 0xe2c   :  { %1671 = vmatpush.msrb.mxu3 %v3709_v2  ;;  %1652 = vmatpush.msrb.mxu2 %v3716_v27 }
 0xe2e   :  { %1672 = vmatpush.msrb.mxu3 %v3721_v62 }
 0xe62   :  { %v1299_v37 = vpop.permute.xlu2 %1298 }
 0xe63   :  { %v1301_v39 = vmul.f32 %v1299_v37, %v1273_v30  ;;  %v1327_v30 = vld [vmem:[#allocation2 + $0x20] sm:$0xff] }
 0xe65   :  { %1303 = vrot.lane.b32.xlu1 %v1301_v39, %s2952_s3  ;;  %v1328_v39 = vld [vmem:[#allocation2 + $0x28] sm:$0xff] }
 0xed7   :  { %v1304_v1 = vpop.permute.xlu1 %1303 }
 0xed8   :  { %v1306_v6 = vadd.f32 %v1304_v1, %v1296_v36 }
 0xeda   :  { %2845 = vtanh.f32 %v1306_v6  ;;  %1314 = vrot.lane.b32.xlu0 %v1306_v6, %s2952_s3 }
 0xedb   :  { %2847 = vpow2.f32 %v2701_v42 }
 0xee0   :  { %v2846_v44 = vpop.eup %2845 }
 0xee1   :  { %1309 = vrot.lane.b32.xlu2 %v2846_v44, %s2952_s3  ;;  %v2848_v28 = vpop.eup %2847 }
 0xee2   :  { %v1259_v49 = vadd.f32 1.0, %v2848_v28 }
 0xee4   :  { %2849 = vrcp.f32 %v1259_v49  ;;  %v1286_v54 = vand.u32 2147483648, %v1259_v49  ;;  %vm1280_vm10 = vweird.f32 %v1259_v49  ;;  %v1284_v58 = vand.u32 2147483647, %v1259_v49 }
 0xee6   :  { %v1287_v11 = vor.u32 1.1754944e-38, %v1286_v54  ;;  %vm1285_vm14 = vcmp.eq.f32.partialorder %v1284_v58, 8.507059e+37 }
 0xeea   :  { %v2850_v29 = vpop.eup %2849 }
 0xeeb   :  { %v1276_v51 = vmul.f32 %v2850_v29, %v1259_v49  ;;  %vm1281_vm9 = vweird.f32 %v2850_v29 }
 0xeec   :  { %vm1282_vm11 = vmor %vm1280_vm10, %vm1281_vm9 }
 0xeed   :  { %v1277_v43 = vsub.f32 1.0, %v1276_v51 }
 0xeef   :  { %v1278_v61 = vmul.f32 %v2850_v29, %v1277_v43 }
 0xef1   :  { %v1279_v45 = vadd.f32 %v2850_v29, %v1278_v61 }
 0xef3   :  { %v1283_v60 = vsel %vm1282_vm11, %v2850_v29, %v1279_v45 }
 0xef4   :  { %v1288_v5 = vsel %vm1285_vm14, %v1287_v11, %v1283_v60 }
 0xf3b   :  { %v1310_v8 = vpop.permute.xlu2 %1309 }
 0xf3c   :  { %v1312_v9 = vmul.f32 %v1310_v8, %v1288_v5 }
 0xf3e   :  { %1318 = vst.msk [vmem:[#allocation5] sm:$0xff] %vm64_vm1, %v1312_v9 }
 0xf3f   :  { %1319 = vst.msk [vmem:[#allocation2 + $0x38] sm:$0xff] %vm347_vm12, %v1312_v9 }
 0xf40   :  { %1320 = vst.msk [vmem:[#allocation2] sm:$0xff] %vm350_vm13, %v1312_v9 }
 0xf41   :  { %1321 = vst.msk [vmem:[#allocation5] sm:$0xff] %vm64_vm1, %v4215_v13 }
 0xf46   :  { %v1330_v56 = vld [vmem:[#allocation2 + $0x38] sm:$0xff] }
 0xf47   :  { %v1323_v7 = vld [vmem:[#allocation2] sm:$0xff] }
 0xf48   :  { %2702 = vmatmul.msk.f32.vlgmr.msrb.gmra.mxu0 %vm64_vm1, %v1323_v7  ;;  %2710 = vmatmul.msk.f32.vlgmr.msrb.gmra.mxu1 %vm64_vm1, %v1323_v7  ;;  %v1475_v31 = vld [vmem:[#allocation5] sm:$0xff] }
 0xf49   :  { %2718 = vmatmul.msk.f32.vlgmr.msra.gmra.mxu2 %vm64_vm1, %v1475_v31  ;;  %2719 = vmatmul.msk.f32.vlgmr.msra.gmra.mxu3 %vm64_vm1, %v1475_v31 }
 0xf4a   :  { %1782 = vmatpush.msra.mxu2 %v3619_v21  ;;  %1802 = vmatpush.msra.mxu3 %v3624_v10 }
 0xf4c   :  { %v1315_v24 = vpop.permute.xlu0 %1314  ;;  %1783 = vmatpush.msra.mxu2 %v3636_v26  ;;  %1803 = vmatpush.msra.mxu3 %v3641_v15 }
 0xf4d   :  { %1317 = vst.msk [vmem:[#allocation6] sm:$0xff] %vm64_vm1, %v1315_v24 }
 0xf4e   :  { %1322 = vst.msk [vmem:[#allocation6] sm:$0xff] %vm64_vm1, %v4215_v13  ;;  %1784 = vmatpush.msra.mxu2 %v3648_v18  ;;  %1804 = vmatpush.msra.mxu3 %v3653_v19 }
 0xf50   :  { %2703 = vmatmul.msk.f32.gmra.mxu0 %vm64_vm1, %v1324_v14  ;;  %2711 = vmatmul.msk.f32.gmra.mxu1 %vm64_vm1, %v1324_v14 }
 0xf51   :  { %1785 = vmatpush.msra.mxu2 %v3660_v20  ;;  %1805 = vmatpush.msra.mxu3 %v3665_v23 }
 0xf53   :  { %1786 = vmatpush.msra.mxu2 %v3674_v4  ;;  %1806 = vmatpush.msra.mxu3 %v3679_v25 }
 0xf55   :  { %v1580_v37 = vld [vmem:[#allocation6] sm:$0xff]  ;;  %1787 = vmatpush.msra.mxu2 %v3692_v22  ;;  %1807 = vmatpush.msra.mxu3 %v3697_v16 }
 0xf56   :  { %1582 = vrot.lane.b32.xlu2 %v1580_v37, %s2952_s3 }
 0xf57   :  { %1788 = vmatpush.msra.mxu2 %v3704_v17  ;;  %1808 = vmatpush.msra.mxu3 %v3709_v2 }
 0xf58   :  { %2704 = vmatmul.msk.f32.gmra.mxu0 %vm64_vm1, %v1325_v0  ;;  %2712 = vmatmul.msk.f32.gmra.mxu1 %vm64_vm1, %v1325_v0 }
 0xf59   :  { %1789 = vmatpush.msra.mxu2 %v3716_v27  ;;  %1809 = vmatpush.msra.mxu3 %v3721_v62 }
 0xf60   :  { %2705 = vmatmul.msk.f32.gmra.mxu0 %vm64_vm1, %v1326_v12  ;;  %2713 = vmatmul.msk.f32.gmra.mxu1 %vm64_vm1, %v1326_v12 }
 0xf68   :  { %2706 = vmatmul.msk.f32.gmra.mxu0 %vm64_vm1, %v1327_v30  ;;  %2714 = vmatmul.msk.f32.gmra.mxu1 %vm64_vm1, %v1327_v30 }
 0xf70   :  { %2707 = vmatmul.msk.f32.gmra.mxu0 %vm64_vm1, %v1328_v39  ;;  %2715 = vmatmul.msk.f32.gmra.mxu1 %vm64_vm1, %v1328_v39 }
 0xf78   :  { %2708 = vmatmul.msk.f32.gmra.mxu0 %vm64_vm1, %v1329_v32  ;;  %2716 = vmatmul.msk.f32.gmra.mxu1 %vm64_vm1, %v1329_v32 }
 0xf80   :  { %2709 = vmatmul.msk.f32.gmra.mxu0 %vm64_vm1, %v1330_v56  ;;  %2717 = vmatmul.msk.f32.gmra.mxu1 %vm64_vm1, %v1330_v56 }
 0xfc5   :  { %v1394_v34 = vpop.f32.mrf.mxu0  ;;  %v1435_v47 = vpop.f32.mrf.mxu1 }
 0xfc6   :  { %v3855_v39 = vadd.f32 %v1394_v34, %v1349_v57  ;;  %v3857_v32 = vadd.f32 %v1435_v47, %v1350_v40 }
 0xfcd   :  { %v1397_v36 = vpop.f32.mrf.mxu0  ;;  %v1438_v1 = vpop.f32.mrf.mxu1 }
 0xfce   :  { %v3783_v6 = vadd.f32 %v1397_v36, %v1349_v57  ;;  %v3785_v44 = vadd.f32 %v1438_v1, %v1350_v40  ;;  %v1538_v36 = vpop.f32.mrf.mxu3 }
 0xfd5   :  { %v1400_v42 = vpop.f32.mrf.mxu0  ;;  %v1441_v28 = vpop.f32.mrf.mxu1 }
 0xfd6   :  { %v3787_v49 = vadd.f32 %v1400_v42, %v1349_v57  ;;  %v3789_v38 = vadd.f32 %v1441_v28, %v1350_v40  ;;  %v1518_v28 = vpop.f32.mrf.mxu2 }
 0xfdd   :  { %v1403_v3 = vpop.f32.mrf.mxu0  ;;  %v1444_v35 = vpop.f32.mrf.mxu1 }
 0xfde   :  { %v3791_v55 = vadd.f32 %v1403_v3, %v1349_v57  ;;  %v3793_v48 = vadd.f32 %v1444_v35, %v1350_v40 }
 0xfe5   :  { %v1406_v41 = vpop.f32.mrf.mxu0  ;;  %v1447_v59 = vpop.f32.mrf.mxu1 }
 0xfe6   :  { %v3795_v63 = vadd.f32 %v1406_v41, %v1349_v57  ;;  %v3797_v50 = vadd.f32 %v1447_v59, %v1350_v40 }
 0xfe8   :  { %v1906_v46 = vsel %vm3281_vm3, %v3791_v55, %v3795_v63  ;;  %v1907_v29 = vsel %vm3225_vm2, %v3793_v48, %v3797_v50  ;;  %v2043_v51 = vsel %vm3281_vm3, %v3795_v63, %v3791_v55  ;;  %v2044_v43 = vsel %vm3225_vm2, %v3797_v50, %v3793_v48 }
 0xfed   :  { %v1409_v61 = vpop.f32.mrf.mxu0  ;;  %v1450_v45 = vpop.f32.mrf.mxu1 }
 0xfee   :  { %v3815_v54 = vadd.f32 %v1409_v61, %v1349_v57  ;;  %v3817_v58 = vadd.f32 %v1450_v45, %v1350_v40 }
 0xff0   :  { %v1769_v60 = vsel %vm3281_vm3, %v3787_v49, %v3815_v54  ;;  %v1770_v11 = vsel %vm3225_vm2, %v3789_v38, %v3817_v58  ;;  %v2178_v5 = vsel %vm3281_vm3, %v3815_v54, %v3787_v49  ;;  %v2179_v8 = vsel %vm3225_vm2, %v3817_v58, %v3789_v38 }
 0xff5   :  { %v1412_v9 = vpop.f32.mrf.mxu0  ;;  %v1453_v13 = vpop.f32.mrf.mxu1 }
 0xff6   :  { %v3835_v7 = vadd.f32 %v1412_v9, %v1349_v57  ;;  %v3837_v24 = vadd.f32 %v1453_v13, %v1350_v40 }
 0xff8   :  { %v1632_v14 = vsel %vm3281_vm3, %v3783_v6, %v3835_v7  ;;  %v1633_v0 = vsel %vm3225_vm2, %v3785_v44, %v3837_v24  ;;  %v2313_v31 = vsel %vm3281_vm3, %v3835_v7, %v3783_v6  ;;  %v2314_v12 = vsel %vm3225_vm2, %v3837_v24, %v3785_v44 }
 0xffd   :  { %v1415_v37 = vpop.f32.mrf.mxu0  ;;  %v1456_v30 = vpop.f32.mrf.mxu1 }
 0xffe   :  { %v3859_v56 = vadd.f32 %v1415_v37, %v1349_v57  ;;  %v3861_v53 = vadd.f32 %v1456_v30, %v1350_v40 }
0x1000   :  { %v1497_v1 = vsel %vm3225_vm2, %v3857_v32, %v3861_v53  ;;  %v1496_v40 = vsel %vm3281_vm3, %v3855_v39, %v3859_v56 }
0x1001   :  { %v1539_v47 = vadd.f32 %v1538_v36, %v1497_v1  ;;  %v1519_v3 = vadd.f32 %v1518_v28, %v1496_v40 }
0x1003   :  { %2851 = vtanh.f32 %v1539_v47  ;;  %v2720_v35 = vmul.f32 -1.442695, %v1519_v3  ;;  %v1583_v3 = vpop.permute.xlu2 %1582 }
0x1005   :  { %2853 = vpow2.f32 %v2720_v35 }
0x1009   :  { %v2852_v57 = vpop.eup %2851 }
0x100a   :  { %1587 = vrot.lane.b32.xlu1 %v2852_v57, %s2952_s3 }
0x100b   :  { %v2854_v41 = vpop.eup %2853 }
0x100c   :  { %v1547_v59 = vadd.f32 1.0, %v2854_v41 }
0x100e   :  { %2855 = vrcp.f32 %v1547_v59  ;;  %v1560_v30 = vand.u32 2147483648, %v1547_v59  ;;  %vm1554_vm0 = vweird.f32 %v1547_v59  ;;  %v1558_v36 = vand.u32 2147483647, %v1547_v59 }
0x1010   :  { %v1561_v57 = vor.u32 1.1754944e-38, %v1560_v30  ;;  %vm1559_vm5 = vcmp.eq.f32.partialorder %v1558_v36, 8.507059e+37 }
0x1014   :  { %v2856_v61 = vpop.eup %2855 }
0x1015   :  { %v1550_v45 = vmul.f32 %v2856_v61, %v1547_v59  ;;  %vm1555_vm15 = vweird.f32 %v2856_v61  ;;  %v2721_v59 = vmul.f32 -1.442695, %v1539_v47 }
0x1016   :  { %vm1556_vm4 = vmor %vm1554_vm0, %vm1555_vm15 }
0x1017   :  { %v1551_v9 = vsub.f32 1.0, %v1550_v45 }
0x1019   :  { %v1552_v13 = vmul.f32 %v2856_v61, %v1551_v9 }
0x101b   :  { %v1553_v37 = vadd.f32 %v2856_v61, %v1552_v13 }
0x101d   :  { %v1557_v1 = vsel %vm1556_vm4, %v2856_v61, %v1553_v37 }
0x101e   :  { %v1562_v42 = vsel %vm1559_vm5, %v1561_v57, %v1557_v1 }
0x101f   :  { %v1585_v35 = vmul.f32 %v1583_v3, %v1562_v42 }
0x107c   :  { %v1588_v40 = vpop.permute.xlu1 %1587 }
0x107d   :  { %v1590_v28 = vmul.f32 %v1588_v40, %v1562_v42 }
0x107f   :  { %1592 = vrot.lane.b32.xlu0 %v1590_v28, %s2952_s3 }
0x10f1   :  { %v1593_v41 = vpop.permute.xlu0 %1592 }
0x10f2   :  { %v1595_v34 = vadd.f32 %v1593_v41, %v1585_v35 }
0x10f4   :  { %2857 = vtanh.f32 %v1595_v34  ;;  %1603 = vrot.lane.b32.xlu2 %v1595_v34, %s2952_s3 }
0x10f5   :  { %2859 = vpow2.f32 %v2721_v59 }
0x10fa   :  { %v2858_v45 = vpop.eup %2857 }
0x10fb   :  { %1598 = vrot.lane.b32.xlu1 %v2858_v45, %s2952_s3  ;;  %v2860_v61 = vpop.eup %2859 }
0x10fc   :  { %v1548_v9 = vadd.f32 1.0, %v2860_v61 }
0x10fe   :  { %2861 = vrcp.f32 %v1548_v9  ;;  %v1575_v34 = vand.u32 2147483648, %v1548_v9  ;;  %vm1569_vm7 = vweird.f32 %v1548_v9  ;;  %v1573_v40 = vand.u32 2147483647, %v1548_v9 }
0x1100   :  { %v1576_v28 = vor.u32 1.1754944e-38, %v1575_v34  ;;  %vm1574_vm9 = vcmp.eq.f32.partialorder %v1573_v40, 8.507059e+37 }
0x1104   :  { %v2862_v30 = vpop.eup %2861 }
0x1105   :  { %v1565_v42 = vmul.f32 %v2862_v30, %v1548_v9  ;;  %vm1570_vm6 = vweird.f32 %v2862_v30 }
0x1106   :  { %vm1571_vm8 = vmor %vm1569_vm7, %vm1570_vm6 }
0x1107   :  { %v1566_v36 = vsub.f32 1.0, %v1565_v42 }
0x1109   :  { %v1567_v1 = vmul.f32 %v2862_v30, %v1566_v36 }
0x110b   :  { %v1568_v57 = vadd.f32 %v2862_v30, %v1567_v1 }
0x110d   :  { %v1572_v47 = vsel %vm1571_vm8, %v2862_v30, %v1568_v57 }
0x110e   :  { %v1577_v3 = vsel %vm1574_vm9, %v1576_v28, %v1572_v47 }
0x114e   :  { %v1604_v13 = vpop.permute.xlu2 %1603 }
0x114f   :  { %1606 = vst.msk [vmem:[#allocation6] sm:$0xff] %vm64_vm1, %v1604_v13 }
0x1156   :  { %v1716_v37 = vld [vmem:[#allocation6] sm:$0xff] }
0x1157   :  { %1718 = vrot.lane.b32.xlu1 %v1716_v37, %s2952_s3 }
0x116d   :  { %v1599_v35 = vpop.permute.xlu1 %1598 }
0x116e   :  { %v1601_v41 = vmul.f32 %v1599_v35, %v1577_v3 }
0x1170   :  { %1607 = vst.msk [vmem:[#allocation5] sm:$0xff] %vm64_vm1, %v1601_v41 }
0x1171   :  { %1608 = vst.msk [vmem:[#allocation3] sm:$0xff] %vm347_vm12, %v1601_v41 }
0x1172   :  { %1610 = vst.msk [vmem:[#allocation3 + $0x38] sm:$0xff] %vm350_vm13, %v1601_v41 }
0x1177   :  { %v1611_v45 = vld [vmem:[#allocation5] sm:$0xff] }
0x1178   :  { %2722 = vmatmul.msk.f32.vlgmr.msrb.gmra.mxu2 %vm64_vm1, %v1611_v45  ;;  %2723 = vmatmul.msk.f32.vlgmr.msrb.gmra.mxu3 %vm64_vm1, %v1611_v45 }
0x1179   :  { %1919 = vmatpush.msrb.mxu2 %v3619_v21  ;;  %1939 = vmatpush.msrb.mxu3 %v3624_v10 }
0x117b   :  { %1920 = vmatpush.msrb.mxu2 %v3636_v26  ;;  %1940 = vmatpush.msrb.mxu3 %v3641_v15 }
0x117d   :  { %1921 = vmatpush.msrb.mxu2 %v3648_v18  ;;  %1941 = vmatpush.msrb.mxu3 %v3653_v19 }
0x117f   :  { %1922 = vmatpush.msrb.mxu2 %v3660_v20  ;;  %1942 = vmatpush.msrb.mxu3 %v3665_v23 }
0x1181   :  { %1923 = vmatpush.msrb.mxu2 %v3674_v4  ;;  %1943 = vmatpush.msrb.mxu3 %v3679_v25 }
0x1183   :  { %1924 = vmatpush.msrb.mxu2 %v3692_v22  ;;  %1944 = vmatpush.msrb.mxu3 %v3697_v16 }
0x1185   :  { %1925 = vmatpush.msrb.mxu2 %v3704_v17  ;;  %1945 = vmatpush.msrb.mxu3 %v3709_v2 }
0x1187   :  { %1926 = vmatpush.msrb.mxu2 %v3716_v27  ;;  %1946 = vmatpush.msrb.mxu3 %v3721_v62 }
0x11c9   :  { %v1719_v1 = vpop.permute.xlu1 %1718 }
0x11fb   :  { %v1674_v59 = vpop.f32.mrf.mxu3  ;;  %v1654_v4 = vpop.f32.mrf.mxu2 }
0x11fc   :  { %v1675_v20 = vadd.f32 %v1674_v59, %v1633_v0  ;;  %v1655_v25 = vadd.f32 %v1654_v4, %v1632_v14 }
0x11fe   :  { %2863 = vtanh.f32 %v1675_v20  ;;  %v2724_v22 = vmul.f32 -1.442695, %v1655_v25  ;;  %v2725_v28 = vmul.f32 -1.442695, %v1675_v20 }
0x1200   :  { %2865 = vpow2.f32 %v2724_v22 }
0x1204   :  { %v2864_v23 = vpop.eup %2863 }
0x1205   :  { %1723 = vrot.lane.b32.xlu0 %v2864_v23, %s2952_s3 }
0x1206   :  { %v2866_v16 = vpop.eup %2865 }
0x1207   :  { %v1683_v17 = vadd.f32 1.0, %v2866_v16 }
0x1209   :  { %2867 = vrcp.f32 %v1683_v17  ;;  %v1696_v9 = vand.u32 2147483648, %v1683_v17  ;;  %vm1690_vm11 = vweird.f32 %v1683_v17  ;;  %v1694_v13 = vand.u32 2147483647, %v1683_v17 }
0x120b   :  { %v1697_v30 = vor.u32 1.1754944e-38, %v1696_v9  ;;  %vm1695_vm15 = vcmp.eq.f32.partialorder %v1694_v13, 8.507059e+37 }
0x120f   :  { %v2868_v2 = vpop.eup %2867 }
0x1210   :  { %v1686_v27 = vmul.f32 %v2868_v2, %v1683_v17  ;;  %vm1691_vm10 = vweird.f32 %v2868_v2 }
0x1211   :  { %vm1692_vm14 = vmor %vm1690_vm11, %vm1691_vm10 }
0x1212   :  { %v1687_v62 = vsub.f32 1.0, %v1686_v27 }
0x1214   :  { %v1688_v0 = vmul.f32 %v2868_v2, %v1687_v62 }
0x1216   :  { %v1689_v61 = vadd.f32 %v2868_v2, %v1688_v0 }
0x1218   :  { %v1693_v37 = vsel %vm1692_vm14, %v2868_v2, %v1689_v61 }
0x1219   :  { %v1698_v14 = vsel %vm1695_vm15, %v1697_v30, %v1693_v37 }
0x121a   :  { %v1721_v57 = vmul.f32 %v1719_v1, %v1698_v14 }
0x1277   :  { %v1724_v42 = vpop.permute.xlu0 %1723 }
0x1278   :  { %v1726_v36 = vmul.f32 %v1724_v42, %v1698_v14 }
0x127a   :  { %1728 = vrot.lane.b32.xlu2 %v1726_v36, %s2952_s3 }
0x12d4   :  { %v1729_v34 = vpop.permute.xlu2 %1728 }
0x12d5   :  { %v1731_v40 = vadd.f32 %v1729_v34, %v1721_v57 }
0x12d7   :  { %2869 = vtanh.f32 %v1731_v40  ;;  %1739 = vrot.lane.b32.xlu1 %v1731_v40, %s2952_s3 }
0x12d8   :  { %2871 = vpow2.f32 %v2725_v28 }
0x12dd   :  { %v2870_v47 = vpop.eup %2869 }
0x12de   :  { %1734 = vrot.lane.b32.xlu0 %v2870_v47, %s2952_s3  ;;  %v2872_v3 = vpop.eup %2871 }
0x12df   :  { %v1684_v35 = vadd.f32 1.0, %v2872_v3 }
0x12e1   :  { %2873 = vrcp.f32 %v1684_v35  ;;  %v1711_v22 = vand.u32 2147483648, %v1684_v35  ;;  %vm1705_vm4 = vweird.f32 %v1684_v35  ;;  %v1709_v16 = vand.u32 2147483647, %v1684_v35 }
0x12e3   :  { %v1712_v2 = vor.u32 1.1754944e-38, %v1711_v22  ;;  %vm1710_vm6 = vcmp.eq.f32.partialorder %v1709_v16, 8.507059e+37 }
0x12e7   :  { %v2874_v41 = vpop.eup %2873 }
0x12e8   :  { %v1701_v45 = vmul.f32 %v2874_v41, %v1684_v35  ;;  %vm1706_vm0 = vweird.f32 %v2874_v41 }
0x12e9   :  { %vm1707_vm5 = vmor %vm1705_vm4, %vm1706_vm0 }
0x12ea   :  { %v1702_v59 = vsub.f32 1.0, %v1701_v45 }
0x12ec   :  { %v1703_v23 = vmul.f32 %v2874_v41, %v1702_v59 }
0x12ee   :  { %v1704_v25 = vadd.f32 %v2874_v41, %v1703_v23 }
0x12f0   :  { %v1708_v17 = vsel %vm1707_vm5, %v2874_v41, %v1704_v25 }
0x12f1   :  { %v1713_v20 = vsel %vm1710_vm6, %v1712_v2, %v1708_v17 }
0x1349   :  { %v1740_v4 = vpop.permute.xlu1 %1739 }
0x134a   :  { %1742 = vst.msk [vmem:[#allocation6] sm:$0xff] %vm64_vm1, %v1740_v4 }
0x1350   :  { %v1735_v27 = vpop.permute.xlu0 %1734 }
0x1351   :  { %v1737_v62 = vmul.f32 %v1735_v27, %v1713_v20  ;;  %v1853_v0 = vld [vmem:[#allocation6] sm:$0xff] }
0x1352   :  { %1855 = vrot.lane.b32.xlu0 %v1853_v0, %s2952_s3 }
0x1353   :  { %1743 = vst.msk [vmem:[#allocation5] sm:$0xff] %vm64_vm1, %v1737_v62 }
0x1354   :  { %1745 = vst.msk [vmem:[#allocation3 + $0x8] sm:$0xff] %vm347_vm12, %v1737_v62 }
0x1355   :  { %1747 = vst.msk [vmem:[#allocation3 + $0x30] sm:$0xff] %vm350_vm13, %v1737_v62 }
0x135a   :  { %v1748_v61 = vld [vmem:[#allocation5] sm:$0xff] }
0x135b   :  { %2726 = vmatmul.msk.f32.vlgmr.msra.gmra.mxu2 %vm64_vm1, %v1748_v61  ;;  %2727 = vmatmul.msk.f32.vlgmr.msra.gmra.mxu3 %vm64_vm1, %v1748_v61 }
0x135c   :  { %2191 = vmatpush.msra.mxu2 %v3619_v21  ;;  %2211 = vmatpush.msra.mxu3 %v3624_v10 }
0x135e   :  { %2192 = vmatpush.msra.mxu2 %v3636_v26  ;;  %2212 = vmatpush.msra.mxu3 %v3641_v15 }
0x1360   :  { %2193 = vmatpush.msra.mxu2 %v3648_v18  ;;  %2213 = vmatpush.msra.mxu3 %v3653_v19 }
0x13c4   :  { %v1856_v28 = vpop.permute.xlu0 %1855 }
0x13de   :  { %v1811_v9 = vpop.f32.mrf.mxu3  ;;  %v1791_v21 = vpop.f32.mrf.mxu2 }
0x13df   :  { %v1812_v13 = vadd.f32 %v1811_v9, %v1770_v11  ;;  %v1792_v10 = vadd.f32 %v1791_v21, %v1769_v60 }
0x13e1   :  { %2875 = vtanh.f32 %v1812_v13  ;;  %v2728_v26 = vmul.f32 -1.442695, %v1792_v10  ;;  %v2729_v59 = vmul.f32 -1.442695, %v1812_v13 }
0x13e3   :  { %2877 = vpow2.f32 %v2728_v26 }
0x13e7   :  { %v2876_v37 = vpop.eup %2875 }
0x13e8   :  { %1860 = vrot.lane.b32.xlu2 %v2876_v37, %s2952_s3 }
0x13e9   :  { %v2878_v15 = vpop.eup %2877 }
0x13ea   :  { %v1820_v18 = vadd.f32 1.0, %v2878_v15 }
0x13ec   :  { %2879 = vrcp.f32 %v1820_v18  ;;  %v1833_v36 = vand.u32 2147483648, %v1820_v18  ;;  %vm1827_vm8 = vweird.f32 %v1820_v18  ;;  %v1831_v1 = vand.u32 2147483647, %v1820_v18 }
0x13ee   :  { %v1834_v34 = vor.u32 1.1754944e-38, %v1833_v36  ;;  %vm1832_vm10 = vcmp.eq.f32.partialorder %v1831_v1, 8.507059e+37 }
0x13f2   :  { %v2880_v19 = vpop.eup %2879 }
0x13f3   :  { %v1823_v30 = vmul.f32 %v2880_v19, %v1820_v18  ;;  %vm1828_vm7 = vweird.f32 %v2880_v19 }
0x13f4   :  { %vm1829_vm9 = vmor %vm1827_vm8, %vm1828_vm7 }
0x13f5   :  { %v1824_v42 = vsub.f32 1.0, %v1823_v30 }
0x13f7   :  { %v1825_v11 = vmul.f32 %v2880_v19, %v1824_v42 }
0x13f9   :  { %v1826_v14 = vadd.f32 %v2880_v19, %v1825_v11 }
0x13fb   :  { %v1830_v57 = vsel %vm1829_vm9, %v2880_v19, %v1826_v14 }
0x13fc   :  { %v1835_v60 = vsel %vm1832_vm10, %v1834_v34, %v1830_v57 }
0x13fd   :  { %v1858_v3 = vmul.f32 %v1856_v28, %v1835_v60 }
0x1442   :  { %v1861_v40 = vpop.permute.xlu2 %1860 }
0x1443   :  { %v1863_v47 = vmul.f32 %v1861_v40, %v1835_v60 }
0x1445   :  { %1865 = vrot.lane.b32.xlu1 %v1863_v47, %s2952_s3 }
0x14b7   :  { %v1866_v35 = vpop.permute.xlu1 %1865 }
0x14b8   :  { %v1868_v41 = vadd.f32 %v1866_v35, %v1858_v3 }
0x14ba   :  { %2881 = vtanh.f32 %v1868_v41  ;;  %1876 = vrot.lane.b32.xlu0 %v1868_v41, %s2952_s3 }
0x14bb   :  { %2883 = vpow2.f32 %v2729_v59 }
0x14c0   :  { %v2882_v45 = vpop.eup %2881 }
0x14c1   :  { %1871 = vrot.lane.b32.xlu2 %v2882_v45, %s2952_s3  ;;  %v2884_v23 = vpop.eup %2883 }
0x14c2   :  { %v1821_v4 = vadd.f32 1.0, %v2884_v23 }
0x14c4   :  { %2885 = vrcp.f32 %v1821_v4  ;;  %v1848_v20 = vand.u32 2147483648, %v1821_v4  ;;  %vm1842_vm14 = vweird.f32 %v1821_v4  ;;  %v1846_v27 = vand.u32 2147483647, %v1821_v4 }
0x14c6   :  { %v1849_v0 = vor.u32 1.1754944e-38, %v1848_v20  ;;  %vm1847_vm0 = vcmp.eq.f32.partialorder %v1846_v27, 8.507059e+37 }
0x14ca   :  { %v2886_v25 = vpop.eup %2885 }
0x14cb   :  { %v1838_v22 = vmul.f32 %v2886_v25, %v1821_v4  ;;  %vm1843_vm11 = vweird.f32 %v2886_v25 }
0x14cc   :  { %vm1844_vm15 = vmor %vm1842_vm14, %vm1843_vm11 }
0x14cd   :  { %v1839_v16 = vsub.f32 1.0, %v1838_v22 }
0x14cf   :  { %v1840_v17 = vmul.f32 %v2886_v25, %v1839_v16 }
0x14d1   :  { %v1841_v2 = vadd.f32 %v2886_v25, %v1840_v17 }
0x14d3   :  { %v1845_v62 = vsel %vm1844_vm15, %v2886_v25, %v1841_v2 }
0x14d4   :  { %v1850_v61 = vsel %vm1847_vm0, %v1849_v0, %v1845_v62 }
0x151b   :  { %v1872_v9 = vpop.permute.xlu2 %1871 }
0x151c   :  { %v1874_v13 = vmul.f32 %v1872_v9, %v1850_v61 }
0x151e   :  { %1880 = vst.msk [vmem:[#allocation5] sm:$0xff] %vm64_vm1, %v1874_v13 }
0x151f   :  { %1882 = vst.msk [vmem:[#allocation3 + $0x10] sm:$0xff] %vm347_vm12, %v1874_v13 }
0x1520   :  { %1884 = vst.msk [vmem:[#allocation3 + $0x28] sm:$0xff] %vm350_vm13, %v1874_v13 }
0x1525   :  { %v1885_v37 = vld [vmem:[#allocation5] sm:$0xff] }
0x1526   :  { %2730 = vmatmul.msk.f32.vlgmr.msrb.gmra.mxu2 %vm64_vm1, %v1885_v37  ;;  %2731 = vmatmul.msk.f32.vlgmr.msrb.gmra.mxu3 %vm64_vm1, %v1885_v37 }
0x152c   :  { %v1877_v21 = vpop.permute.xlu0 %1876 }
0x152d   :  { %1879 = vst.msk [vmem:[#allocation6] sm:$0xff] %vm64_vm1, %v1877_v21 }
0x1534   :  { %v1990_v10 = vld [vmem:[#allocation6] sm:$0xff] }
0x1535   :  { %1992 = vrot.lane.b32.xlu2 %v1990_v10, %s2952_s3 }
0x158f   :  { %v1993_v41 = vpop.permute.xlu2 %1992 }
0x15a9   :  { %v1948_v26 = vpop.f32.mrf.mxu3  ;;  %v1928_v19 = vpop.f32.mrf.mxu2 }
0x15aa   :  { %v1949_v15 = vadd.f32 %v1948_v26, %v1907_v29  ;;  %v1929_v30 = vadd.f32 %v1928_v19, %v1906_v46 }
0x15ac   :  { %2887 = vtanh.f32 %v1949_v15  ;;  %v2732_v42 = vmul.f32 -1.442695, %v1929_v30  ;;  %v2733_v25 = vmul.f32 -1.442695, %v1949_v15 }
0x15ae   :  { %2889 = vpow2.f32 %v2732_v42 }
0x15b2   :  { %v2888_v18 = vpop.eup %2887 }
0x15b3   :  { %1997 = vrot.lane.b32.xlu1 %v2888_v18, %s2952_s3 }
0x15b4   :  { %v2890_v11 = vpop.eup %2889 }
0x15b5   :  { %v1957_v14 = vadd.f32 1.0, %v2890_v11 }
0x15b7   :  { %2891 = vrcp.f32 %v1957_v14  ;;  %v1970_v40 = vand.u32 2147483648, %v1957_v14  ;;  %vm1964_vm5 = vweird.f32 %v1957_v14  ;;  %v1968_v60 = vand.u32 2147483647, %v1957_v14 }
0x15b9   :  { %v1971_v28 = vor.u32 1.1754944e-38, %v1970_v40  ;;  %vm1969_vm7 = vcmp.eq.f32.partialorder %v1968_v60, 8.507059e+37 }
0x15bd   :  { %v2892_v36 = vpop.eup %2891 }
0x15be   :  { %v1960_v1 = vmul.f32 %v2892_v36, %v1957_v14  ;;  %vm1965_vm4 = vweird.f32 %v2892_v36 }
0x15bf   :  { %vm1966_vm6 = vmor %vm1964_vm5, %vm1965_vm4 }
0x15c0   :  { %v1961_v57 = vsub.f32 1.0, %v1960_v1 }
0x15c2   :  { %v1962_v29 = vmul.f32 %v2892_v36, %v1961_v57 }
0x15c4   :  { %v1963_v34 = vadd.f32 %v2892_v36, %v1962_v29 }
0x15c6   :  { %v1967_v47 = vsel %vm1966_vm6, %v2892_v36, %v1963_v34 }
0x15c7   :  { %v1972_v46 = vsel %vm1969_vm7, %v1971_v28, %v1967_v47 }
0x15c8   :  { %v1995_v45 = vmul.f32 %v1993_v41, %v1972_v46 }
0x1625   :  { %v1998_v3 = vpop.permute.xlu1 %1997 }
0x1626   :  { %v2000_v35 = vmul.f32 %v1998_v3, %v1972_v46 }
0x1628   :  { %2002 = vrot.lane.b32.xlu0 %v2000_v35, %s2952_s3 }
0x169a   :  { %v2003_v59 = vpop.permute.xlu0 %2002 }
0x169b   :  { %v2005_v23 = vadd.f32 %v2003_v59, %v1995_v45 }
0x169d   :  { %2893 = vtanh.f32 %v2005_v23  ;;  %2013 = vrot.lane.b32.xlu2 %v2005_v23, %s2952_s3 }
0x169e   :  { %2895 = vpow2.f32 %v2733_v25  ;;  %v3992_v25 = vld [vmem:[%s4201_s5 + $0x40] sm:$0xff] }
0x169f   :  { %2194 = vmatpush.msra.mxu2 %v3992_v25 }
0x16a3   :  { %v2894_v4 = vpop.eup %2893 }
0x16a4   :  { %2008 = vrot.lane.b32.xlu1 %v2894_v4, %s2952_s3  ;;  %v2896_v22 = vpop.eup %2895 }
0x16a5   :  { %v1958_v16 = vadd.f32 1.0, %v2896_v22  ;;  %v3997_v22 = vld [vmem:[%s4201_s5 + $0x48] sm:$0xff] }
0x16a6   :  { %2214 = vmatpush.msra.mxu3 %v3997_v22 }
0x16a7   :  { %2897 = vrcp.f32 %v1958_v16  ;;  %v1985_v9 = vand.u32 2147483648, %v1958_v16  ;;  %vm1979_vm9 = vweird.f32 %v1958_v16  ;;  %v1983_v13 = vand.u32 2147483647, %v1958_v16 }
0x16a9   :  { %v1986_v21 = vor.u32 1.1754944e-38, %v1985_v9  ;;  %vm1984_vm11 = vcmp.eq.f32.partialorder %v1983_v13, 8.507059e+37 }
0x16ad   :  { %v2898_v20 = vpop.eup %2897 }
0x16ae   :  { %v1975_v27 = vmul.f32 %v2898_v20, %v1958_v16  ;;  %vm1980_vm8 = vweird.f32 %v2898_v20  ;;  %v4004_v16 = vld [vmem:[%s4201_s5 + $0x30] sm:$0xff] }
0x16af   :  { %vm1981_vm10 = vmor %vm1979_vm9, %vm1980_vm8  ;;  %2195 = vmatpush.msra.mxu2 %v4004_v16 }
0x16b0   :  { %v1976_v62 = vsub.f32 1.0, %v1975_v27  ;;  %v4026_v27 = vld [vmem:[%s4201_s5 + $0x10] sm:$0xff] }
0x16b2   :  { %v1977_v0 = vmul.f32 %v2898_v20, %v1976_v62  ;;  %v4031_v62 = vld [vmem:[%s4201_s5 + $0x18] sm:$0xff] }
0x16b4   :  { %v1978_v61 = vadd.f32 %v2898_v20, %v1977_v0  ;;  %v4038_v0 = vld [vmem:[%s4201_s5] sm:$0xff] }
0x16b6   :  { %v1982_v37 = vsel %vm1981_vm10, %v2898_v20, %v1978_v61  ;;  %v4021_v20 = vld [vmem:[%s4201_s5 + $0x28] sm:$0xff] }
0x16b7   :  { %v1987_v10 = vsel %vm1984_vm11, %v1986_v21, %v1982_v37  ;;  %v4043_v61 = vld [vmem:[%s4201_s5 + $0x8] sm:$0xff] }
0x16f7   :  { %v2014_v17 = vpop.permute.xlu2 %2013 }
0x16f8   :  { %2016 = vst.msk [vmem:[#allocation6] sm:$0xff] %vm64_vm1, %v2014_v17  ;;  %v4009_v17 = vld [vmem:[%s4201_s5 + $0x38] sm:$0xff] }
0x16f9   :  { %2215 = vmatpush.msra.mxu3 %v4009_v17 }
0x16fb   :  { %2216 = vmatpush.msra.mxu3 %v4021_v20 }
0x16fd   :  { %2217 = vmatpush.msra.mxu3 %v4031_v62 }
0x16ff   :  { %v2127_v2 = vld [vmem:[#allocation6] sm:$0xff]  ;;  %2218 = vmatpush.msra.mxu3 %v4043_v61 }
0x1700   :  { %2129 = vrot.lane.b32.xlu1 %v2127_v2, %s2952_s3  ;;  %v4014_v2 = vld [vmem:[%s4201_s5 + $0x20] sm:$0xff] }
0x1701   :  { %2196 = vmatpush.msra.mxu2 %v4014_v2 }
0x1703   :  { %2197 = vmatpush.msra.mxu2 %v4026_v27 }
0x1705   :  { %2198 = vmatpush.msra.mxu2 %v4038_v0 }
0x1716   :  { %v2009_v26 = vpop.permute.xlu1 %2008 }
0x1717   :  { %v2011_v15 = vmul.f32 %v2009_v26, %v1987_v10 }
0x1719   :  { %2017 = vst.msk [vmem:[#allocation5] sm:$0xff] %vm64_vm1, %v2011_v15 }
0x171a   :  { %2019 = vst.msk [vmem:[#allocation3 + $0x18] sm:$0xff] %vm347_vm12, %v2011_v15 }
0x171b   :  { %2021 = vst.msk [vmem:[#allocation3 + $0x20] sm:$0xff] %vm350_vm13, %v2011_v15 }
0x1720   :  { %v2022_v18 = vld [vmem:[#allocation5] sm:$0xff] }
0x1721   :  { %2734 = vmatmul.msk.f32.vlgmr.msra.gmra.mxu0 %vm64_vm1, %v2022_v18  ;;  %2735 = vmatmul.msk.f32.vlgmr.msra.gmra.mxu1 %vm64_vm1, %v2022_v18 }
0x1772   :  { %v2130_v3 = vpop.permute.xlu1 %2129 }
0x179e   :  { %v2085_v19 = vpop.f32.mrf.mxu1  ;;  %v2065_v11 = vpop.f32.mrf.mxu0 }
0x179f   :  { %v2086_v30 = vadd.f32 %v2085_v19, %v2044_v43  ;;  %v2066_v14 = vadd.f32 %v2065_v11, %v2043_v51 }
0x17a1   :  { %2899 = vtanh.f32 %v2086_v30  ;;  %v2736_v36 = vmul.f32 -1.442695, %v2066_v14  ;;  %v2737_v59 = vmul.f32 -1.442695, %v2086_v30 }
0x17a3   :  { %2901 = vpow2.f32 %v2736_v36 }
0x17a7   :  { %v2900_v42 = vpop.eup %2899 }
0x17a8   :  { %2134 = vrot.lane.b32.xlu0 %v2900_v42, %s2952_s3 }
0x17a9   :  { %v2902_v1 = vpop.eup %2901 }
0x17aa   :  { %v2094_v57 = vadd.f32 1.0, %v2902_v1 }
0x17ac   :  { %2903 = vrcp.f32 %v2094_v57  ;;  %v2107_v40 = vand.u32 2147483648, %v2094_v57  ;;  %vm2101_vm15 = vweird.f32 %v2094_v57  ;;  %v2105_v60 = vand.u32 2147483647, %v2094_v57 }
0x17ae   :  { %v2108_v28 = vor.u32 1.1754944e-38, %v2107_v40  ;;  %vm2106_vm4 = vcmp.eq.f32.partialorder %v2105_v60, 8.507059e+37 }
0x17b2   :  { %v2904_v29 = vpop.eup %2903 }
0x17b3   :  { %v2097_v34 = vmul.f32 %v2904_v29, %v2094_v57  ;;  %vm2102_vm14 = vweird.f32 %v2904_v29 }
0x17b4   :  { %vm2103_vm0 = vmor %vm2101_vm15, %vm2102_vm14 }
0x17b5   :  { %v2098_v48 = vsub.f32 1.0, %v2097_v34 }
0x17b7   :  { %v2099_v50 = vmul.f32 %v2904_v29, %v2098_v48 }
0x17b9   :  { %v2100_v43 = vadd.f32 %v2904_v29, %v2099_v50 }
0x17bb   :  { %v2104_v47 = vsel %vm2103_vm0, %v2904_v29, %v2100_v43 }
0x17bc   :  { %v2109_v63 = vsel %vm2106_vm4, %v2108_v28, %v2104_v47 }
0x17bd   :  { %v2132_v46 = vmul.f32 %v2130_v3, %v2109_v63 }
0x181a   :  { %v2135_v55 = vpop.permute.xlu0 %2134 }
0x181b   :  { %v2137_v51 = vmul.f32 %v2135_v55, %v2109_v63 }
0x181d   :  { %2139 = vrot.lane.b32.xlu2 %v2137_v51, %s2952_s3 }
0x1877   :  { %v2140_v35 = vpop.permute.xlu2 %2139 }
0x1878   :  { %v2142_v41 = vadd.f32 %v2140_v35, %v2132_v46  ;;  %v2307_v46 = vld [vmem:[%s4201_s5 + $0x70] sm:$0xff]  ;;  %v2308_v35 = vld [vmem:[%s4201_s5 + $0x78] sm:$0xff] }
0x1879   :  { %2326 = vmatpush.msrb.mxu0 %v2307_v46  ;;  %2346 = vmatpush.msrb.mxu1 %v2308_v35 }
0x187a   :  { %2905 = vtanh.f32 %v2142_v41  ;;  %2150 = vrot.lane.b32.xlu1 %v2142_v41, %s2952_s3  ;;  %v2305_v41 = vld [vmem:[%s4201_s5 + $0x60] sm:$0xff]  ;;  %2461 = vmatpush.msrb.mxu2 %v2307_v46 }
0x187b   :  { %2907 = vpow2.f32 %v2737_v59  ;;  %v2303_v59 = vld [vmem:[%s4201_s5 + $0x50] sm:$0xff]  ;;  %2481 = vmatpush.msrb.mxu3 %v2308_v35  ;;  %2327 = vmatpush.msrb.mxu0 %v2305_v41 }
0x187c   :  { %2462 = vmatpush.msrb.mxu2 %v2305_v41 }
0x187d   :  { %2328 = vmatpush.msrb.mxu0 %v2303_v59 }
0x187e   :  { %2463 = vmatpush.msrb.mxu2 %v2303_v59 }
0x187f   :  { %2329 = vmatpush.msrb.mxu0 %v3992_v25 }
0x1880   :  { %v2906_v45 = vpop.eup %2905  ;;  %2464 = vmatpush.msrb.mxu2 %v3992_v25 }
0x1881   :  { %2145 = vrot.lane.b32.xlu0 %v2906_v45, %s2952_s3  ;;  %v2908_v23 = vpop.eup %2907  ;;  %v2306_v45 = vld [vmem:[%s4201_s5 + $0x68] sm:$0xff]  ;;  %2330 = vmatpush.msrb.mxu0 %v4004_v16 }
0x1882   :  { %v2095_v4 = vadd.f32 1.0, %v2908_v23  ;;  %v2304_v23 = vld [vmem:[%s4201_s5 + $0x58] sm:$0xff]  ;;  %2347 = vmatpush.msrb.mxu1 %v2306_v45  ;;  %2482 = vmatpush.msrb.mxu3 %v2306_v45 }
0x1883   :  { %2465 = vmatpush.msrb.mxu2 %v4004_v16  ;;  %2331 = vmatpush.msrb.mxu0 %v4014_v2 }
0x1884   :  { %2909 = vrcp.f32 %v2095_v4  ;;  %v2122_v15 = vand.u32 2147483648, %v2095_v4  ;;  %vm2116_vm6 = vweird.f32 %v2095_v4  ;;  %v2120_v18 = vand.u32 2147483647, %v2095_v4  ;;  %2348 = vmatpush.msrb.mxu1 %v2304_v23  ;;  %2483 = vmatpush.msrb.mxu3 %v2304_v23 }
0x1885   :  { %2466 = vmatpush.msrb.mxu2 %v4014_v2  ;;  %2332 = vmatpush.msrb.mxu0 %v4026_v27 }
0x1886   :  { %v2123_v30 = vor.u32 1.1754944e-38, %v2122_v15  ;;  %vm2121_vm8 = vcmp.eq.f32.partialorder %v2120_v18, 8.507059e+37  ;;  %2349 = vmatpush.msrb.mxu1 %v3997_v22  ;;  %2484 = vmatpush.msrb.mxu3 %v3997_v22 }
0x1887   :  { %2467 = vmatpush.msrb.mxu2 %v4026_v27  ;;  %2333 = vmatpush.msrb.mxu0 %v4038_v0 }
0x1888   :  { %2350 = vmatpush.msrb.mxu1 %v4009_v17  ;;  %2485 = vmatpush.msrb.mxu3 %v4009_v17 }
0x1889   :  { %2468 = vmatpush.msrb.mxu2 %v4038_v0 }
0x188a   :  { %v2910_v9 = vpop.eup %2909  ;;  %2351 = vmatpush.msrb.mxu1 %v4021_v20  ;;  %2486 = vmatpush.msrb.mxu3 %v4021_v20 }
0x188b   :  { %v2112_v13 = vmul.f32 %v2910_v9, %v2095_v4  ;;  %vm2117_vm5 = vweird.f32 %v2910_v9 }
0x188c   :  { %vm2118_vm7 = vmor %vm2116_vm6, %vm2117_vm5  ;;  %2352 = vmatpush.msrb.mxu1 %v4031_v62  ;;  %2487 = vmatpush.msrb.mxu3 %v4031_v62 }
0x188d   :  { %v2113_v37 = vsub.f32 1.0, %v2112_v13 }
0x188e   :  { %2353 = vmatpush.msrb.mxu1 %v4043_v61  ;;  %2488 = vmatpush.msrb.mxu3 %v4043_v61 }
0x188f   :  { %v2114_v21 = vmul.f32 %v2910_v9, %v2113_v37 }
0x1891   :  { %v2115_v26 = vadd.f32 %v2910_v9, %v2114_v21 }
0x1893   :  { %v2119_v19 = vsel %vm2118_vm7, %v2910_v9, %v2115_v26 }
0x1894   :  { %v2124_v42 = vsel %vm2121_vm8, %v2123_v30, %v2119_v19 }
0x18ec   :  { %v2151_v10 = vpop.permute.xlu1 %2150 }
0x18ed   :  { %2153 = vst.msk [vmem:[#allocation6] sm:$0xff] %vm64_vm1, %v2151_v10 }
0x18f3   :  { %v2146_v11 = vpop.permute.xlu0 %2145 }
0x18f4   :  { %v2148_v14 = vmul.f32 %v2146_v11, %v2124_v42  ;;  %v2262_v36 = vld [vmem:[#allocation6] sm:$0xff] }
0x18f5   :  { %2264 = vrot.lane.b32.xlu0 %v2262_v36, %s2952_s3 }
0x18f6   :  { %2154 = vst.msk [vmem:[#allocation5] sm:$0xff] %vm64_vm1, %v2148_v14 }
0x18f7   :  { %2155 = vst.msk [vmem:[#allocation3 + $0x20] sm:$0xff] %vm347_vm12, %v2148_v14 }
0x18f8   :  { %2156 = vst.msk [vmem:[#allocation3 + $0x18] sm:$0xff] %vm350_vm13, %v2148_v14 }
0x18fd   :  { %v2157_v1 = vld [vmem:[#allocation5] sm:$0xff] }
0x18fe   :  { %2738 = vmatmul.msk.f32.vlgmr.msra.gmra.mxu2 %vm64_vm1, %v2157_v1  ;;  %2739 = vmatmul.msk.f32.vlgmr.msra.gmra.mxu3 %vm64_vm1, %v2157_v1 }
0x1967   :  { %v2265_v4 = vpop.permute.xlu0 %2264 }
0x1981   :  { %v2220_v57 = vpop.f32.mrf.mxu3  ;;  %v2200_v48 = vpop.f32.mrf.mxu2 }
0x1982   :  { %v4061_v29 = vadd.f32 %v2220_v57, %v2179_v8  ;;  %v2201_v50 = vadd.f32 %v2200_v48, %v2178_v5 }
0x1984   :  { %2911 = vtanh.f32 %v4061_v29  ;;  %v2740_v43 = vmul.f32 -1.442695, %v2201_v50  ;;  %v2741_v2 = vmul.f32 -1.442695, %v4061_v29 }
0x1986   :  { %2913 = vpow2.f32 %v2740_v43 }
0x198a   :  { %v2912_v34 = vpop.eup %2911 }
0x198b   :  { %2269 = vrot.lane.b32.xlu2 %v2912_v34, %s2952_s3 }
0x198c   :  { %v2914_v40 = vpop.eup %2913 }
0x198d   :  { %v2229_v60 = vadd.f32 1.0, %v2914_v40 }
0x198f   :  { %2915 = vrcp.f32 %v2229_v60  ;;  %v2242_v55 = vand.u32 2147483648, %v2229_v60  ;;  %vm2236_vm10 = vweird.f32 %v2229_v60  ;;  %v2240_v63 = vand.u32 2147483647, %v2229_v60 }
0x1991   :  { %v2243_v3 = vor.u32 1.1754944e-38, %v2242_v55  ;;  %vm2241_vm14 = vcmp.eq.f32.partialorder %v2240_v63, 8.507059e+37 }
0x1995   :  { %v2916_v38 = vpop.eup %2915 }
0x1996   :  { %v2232_v58 = vmul.f32 %v2916_v38, %v2229_v60  ;;  %vm2237_vm9 = vweird.f32 %v2916_v38 }
0x1997   :  { %vm2238_vm11 = vmor %vm2236_vm10, %vm2237_vm9 }
0x1998   :  { %v2233_v8 = vsub.f32 1.0, %v2232_v58 }
0x199a   :  { %v2234_v47 = vmul.f32 %v2916_v38, %v2233_v8 }
0x199c   :  { %v2235_v28 = vadd.f32 %v2916_v38, %v2234_v47 }
0x199e   :  { %v2239_v51 = vsel %vm2238_vm11, %v2916_v38, %v2235_v28 }
0x199f   :  { %v2244_v54 = vsel %vm2241_vm14, %v2243_v3, %v2239_v51 }
0x19a0   :  { %v2267_v25 = vmul.f32 %v2265_v4, %v2244_v54 }
0x19e5   :  { %v2270_v49 = vpop.permute.xlu2 %2269 }
0x19e6   :  { %v2272_v5 = vmul.f32 %v2270_v49, %v2244_v54 }
0x19e8   :  { %2274 = vrot.lane.b32.xlu1 %v2272_v5, %s2952_s3 }
0x1a5a   :  { %v2275_v22 = vpop.permute.xlu1 %2274 }
0x1a5b   :  { %v2277_v16 = vadd.f32 %v2275_v22, %v2267_v25 }
0x1a5d   :  { %2917 = vtanh.f32 %v2277_v16  ;;  %2285 = vrot.lane.b32.xlu0 %v2277_v16, %s2952_s3 }
0x1a5e   :  { %2919 = vpow2.f32 %v2741_v2 }
0x1a63   :  { %v2918_v17 = vpop.eup %2917 }
0x1a64   :  { %2280 = vrot.lane.b32.xlu2 %v2918_v17, %s2952_s3  ;;  %v2920_v20 = vpop.eup %2919 }
0x1a65   :  { %v2230_v27 = vadd.f32 1.0, %v2920_v20 }
0x1a67   :  { %2921 = vrcp.f32 %v2230_v27  ;;  %v2257_v37 = vand.u32 2147483648, %v2230_v27  ;;  %vm2251_vm0 = vweird.f32 %v2230_v27  ;;  %v2255_v21 = vand.u32 2147483647, %v2230_v27 }
0x1a69   :  { %v2258_v26 = vor.u32 1.1754944e-38, %v2257_v37  ;;  %vm2256_vm5 = vcmp.eq.f32.partialorder %v2255_v21, 8.507059e+37  ;;  %v4217_v37 = vsel %vm3281_vm3, %v3859_v56, %v3855_v39 }
0x1a6d   :  { %v2922_v62 = vpop.eup %2921 }
0x1a6e   :  { %v2247_v0 = vmul.f32 %v2922_v62, %v2230_v27  ;;  %vm2252_vm15 = vweird.f32 %v2922_v62 }
0x1a6f   :  { %vm2253_vm4 = vmor %vm2251_vm0, %vm2252_vm15 }
0x1a70   :  { %v2248_v9 = vsub.f32 1.0, %v2247_v0  ;;  %v4216_v0 = vsel %vm3225_vm2, %v3861_v53, %v3857_v32 }
0x1a72   :  { %v2249_v61 = vmul.f32 %v2922_v62, %v2248_v9 }
0x1a74   :  { %v2250_v13 = vadd.f32 %v2922_v62, %v2249_v61 }
0x1a76   :  { %v2254_v10 = vsel %vm2253_vm4, %v2922_v62, %v2250_v13 }
0x1a77   :  { %v2259_v15 = vsel %vm2256_vm5, %v2258_v26, %v2254_v10 }
0x1abe   :  { %v2281_v18 = vpop.permute.xlu2 %2280 }
0x1abf   :  { %v2283_v19 = vmul.f32 %v2281_v18, %v2259_v15 }
0x1ac1   :  { %2289 = vst.msk [vmem:[#allocation5] sm:$0xff] %vm64_vm1, %v2283_v19 }
0x1ac2   :  { %2290 = vst.msk [vmem:[#allocation3 + $0x28] sm:$0xff] %vm347_vm12, %v2283_v19 }
0x1ac3   :  { %2291 = vst.msk [vmem:[#allocation3 + $0x10] sm:$0xff] %vm350_vm13, %v2283_v19 }
0x1ac8   :  { %v2292_v30 = vld [vmem:[#allocation5] sm:$0xff] }
0x1ac9   :  { %2742 = vmatmul.msk.f32.vlgmr.msrb.gmra.mxu0 %vm64_vm1, %v2292_v30  ;;  %2743 = vmatmul.msk.f32.vlgmr.msrb.gmra.mxu1 %vm64_vm1, %v2292_v30 }
0x1acf   :  { %v2286_v42 = vpop.permute.xlu0 %2285 }
0x1ad0   :  { %2288 = vst.msk [vmem:[#allocation6] sm:$0xff] %vm64_vm1, %v2286_v42 }
0x1ad7   :  { %v2397_v11 = vld [vmem:[#allocation6] sm:$0xff] }
0x1ad8   :  { %2399 = vrot.lane.b32.xlu2 %v2397_v11, %s2952_s3 }
0x1b32   :  { %v2400_v47 = vpop.permute.xlu2 %2399 }
0x1b46   :  { %v2355_v14 = vpop.f32.mrf.mxu1  ;;  %v2335_v57 = vpop.f32.mrf.mxu0 }
0x1b47   :  { %v2356_v36 = vadd.f32 %v2355_v14, %v2314_v12  ;;  %v2336_v29 = vadd.f32 %v2335_v57, %v2313_v31 }
0x1b49   :  { %2923 = vtanh.f32 %v2356_v36  ;;  %v2744_v34 = vmul.f32 -1.442695, %v2336_v29  ;;  %v2745_v3 = vmul.f32 -1.442695, %v2356_v36 }
0x1b4b   :  { %2925 = vpow2.f32 %v2744_v34 }
0x1b4f   :  { %v2924_v1 = vpop.eup %2923 }
0x1b50   :  { %2404 = vrot.lane.b32.xlu1 %v2924_v1, %s2952_s3 }
0x1b51   :  { %v2926_v48 = vpop.eup %2925 }
0x1b52   :  { %v2364_v50 = vadd.f32 1.0, %v2926_v48 }
0x1b54   :  { %2927 = vrcp.f32 %v2364_v50  ;;  %v2377_v60 = vand.u32 2147483648, %v2364_v50  ;;  %vm2371_vm7 = vweird.f32 %v2364_v50  ;;  %v2375_v38 = vand.u32 2147483647, %v2364_v50 }
0x1b56   :  { %v2378_v8 = vor.u32 1.1754944e-38, %v2377_v60  ;;  %vm2376_vm9 = vcmp.eq.f32.partialorder %v2375_v38, 8.507059e+37 }
0x1b5a   :  { %v2928_v43 = vpop.eup %2927 }
0x1b5b   :  { %v2367_v40 = vmul.f32 %v2928_v43, %v2364_v50  ;;  %vm2372_vm6 = vweird.f32 %v2928_v43 }
0x1b5c   :  { %vm2373_vm8 = vmor %vm2371_vm7, %vm2372_vm6 }
0x1b5d   :  { %v2368_v44 = vsub.f32 1.0, %v2367_v40 }
0x1b5f   :  { %v2369_v24 = vmul.f32 %v2928_v43, %v2368_v44 }
0x1b61   :  { %v2370_v12 = vadd.f32 %v2928_v43, %v2369_v24 }
0x1b63   :  { %v2374_v58 = vsel %vm2373_vm8, %v2928_v43, %v2370_v12 }
0x1b64   :  { %v2379_v7 = vsel %vm2376_vm9, %v2378_v8, %v2374_v58  ;;  %v2601_v8 = vld [vmem:[%s4203_s8 + $0x38] sm:$0xff] }
0x1b65   :  { %v2402_v28 = vmul.f32 %v2400_v47, %v2379_v7  ;;  %2617 = vmatpush.msra.mxu1 %v2601_v8 }
0x1bc2   :  { %v2405_v6 = vpop.permute.xlu1 %2404 }
0x1bc3   :  { %v2407_v31 = vmul.f32 %v2405_v6, %v2379_v7  ;;  %v2600_v6 = vld [vmem:[%s4203_s8 + $0x30] sm:$0xff] }
0x1bc4   :  { %2618 = vmatpush.msra.mxu1 %v2600_v6 }
0x1bc5   :  { %2409 = vrot.lane.b32.xlu0 %v2407_v31, %s2952_s3  ;;  %v2599_v31 = vld [vmem:[%s4203_s8 + $0x28] sm:$0xff] }
0x1bc6   :  { %2619 = vmatpush.msra.mxu1 %v2599_v31 }
0x1c37   :  { %v2410_v55 = vpop.permute.xlu0 %2409 }
0x1c38   :  { %v2412_v63 = vadd.f32 %v2410_v55, %v2402_v28  ;;  %v2598_v28 = vld [vmem:[%s4203_s8 + $0x20] sm:$0xff] }
0x1c39   :  { %2620 = vmatpush.msra.mxu1 %v2598_v28 }
0x1c3a   :  { %2929 = vtanh.f32 %v2412_v63  ;;  %2420 = vrot.lane.b32.xlu2 %v2412_v63, %s2952_s3 }
0x1c3b   :  { %2931 = vpow2.f32 %v2745_v3  ;;  %v2597_v3 = vld [vmem:[%s4203_s8 + $0x18] sm:$0xff] }
0x1c3c   :  { %2621 = vmatpush.msra.mxu1 %v2597_v3 }
0x1c40   :  { %v2930_v51 = vpop.eup %2929 }
0x1c41   :  { %2415 = vrot.lane.b32.xlu1 %v2930_v51, %s2952_s3  ;;  %v2932_v49 = vpop.eup %2931 }
0x1c42   :  { %v2365_v54 = vadd.f32 1.0, %v2932_v49  ;;  %v2596_v49 = vld [vmem:[%s4203_s8 + $0x10] sm:$0xff] }
0x1c43   :  { %2622 = vmatpush.msra.mxu1 %v2596_v49 }
0x1c44   :  { %2933 = vrcp.f32 %v2365_v54  ;;  %v2392_v4 = vand.u32 2147483648, %v2365_v54  ;;  %vm2386_vm11 = vweird.f32 %v2365_v54  ;;  %v2390_v25 = vand.u32 2147483647, %v2365_v54 }
0x1c46   :  { %v2393_v16 = vor.u32 1.1754944e-38, %v2392_v4  ;;  %vm2391_vm15 = vcmp.eq.f32.partialorder %v2390_v25, 8.507059e+37  ;;  %v2562_v25 = vld [vmem:[%s4204_s7] sm:$0xff] }
0x1c4a   :  { %v2934_v35 = vpop.eup %2933 }
0x1c4b   :  { %v2382_v41 = vmul.f32 %v2934_v35, %v2365_v54  ;;  %vm2387_vm10 = vweird.f32 %v2934_v35  ;;  %v2595_v54 = vld [vmem:[%s4203_s8 + $0x8] sm:$0xff] }
0x1c4c   :  { %vm2388_vm14 = vmor %vm2386_vm11, %vm2387_vm10  ;;  %2623 = vmatpush.msra.mxu1 %v2595_v54 }
0x1c4d   :  { %v2383_v45 = vsub.f32 1.0, %v2382_v41  ;;  %v2568_v41 = vld [vmem:[#allocation3 + $0x28] sm:$0xff] }
0x1c4f   :  { %v2384_v59 = vmul.f32 %v2934_v35, %v2383_v45  ;;  %v2567_v45 = vld [vmem:[#allocation3 + $0x20] sm:$0xff] }
0x1c51   :  { %v2385_v23 = vadd.f32 %v2934_v35, %v2384_v59  ;;  %v2566_v59 = vld [vmem:[#allocation3 + $0x18] sm:$0xff] }
0x1c53   :  { %v2389_v22 = vsel %vm2388_vm14, %v2934_v35, %v2385_v23  ;;  %v2565_v23 = vld [vmem:[#allocation3 + $0x10] sm:$0xff] }
0x1c54   :  { %v2394_v17 = vsel %vm2391_vm15, %v2393_v16, %v2389_v22  ;;  %v2594_v16 = vld [vmem:[%s4203_s8] sm:$0xff] }
0x1c55   :  { %2624 = vmatpush.msra.mxu1 %v2594_v16 }
0x1c94   :  { %v2421_v5 = vpop.permute.xlu2 %2420 }
0x1c95   :  { %2423 = vst.msk [vmem:[#allocation6] sm:$0xff] %vm64_vm1, %v2421_v5 }
0x1c9c   :  { %v2532_v46 = vld [vmem:[#allocation6] sm:$0xff] }
0x1c9d   :  { %2534 = vrot.lane.b32.xlu1 %v2532_v46, %s2952_s3 }
0x1cb3   :  { %v2416_v2 = vpop.permute.xlu1 %2415 }
0x1cb4   :  { %v2418_v20 = vmul.f32 %v2416_v2, %v2394_v17  ;;  %v2754_v2 = vld [vmem:[%s4205_s9] ss:$0 sm:$0xff] }
0x1cb6   :  { %2424 = vst.msk [vmem:[#allocation5] sm:$0xff] %vm64_vm1, %v2418_v20 }
0x1cb7   :  { %2425 = vst.msk [vmem:[#allocation3 + $0x30] sm:$0xff] %vm347_vm12, %v2418_v20 }
0x1cb8   :  { %2426 = vst.msk [vmem:[#allocation3 + $0x8] sm:$0xff] %vm350_vm13, %v2418_v20 }
0x1cbd   :  { %v2427_v27 = vld [vmem:[#allocation5] sm:$0xff] }
0x1cbe   :  { %2746 = vmatmul.msk.f32.vlgmr.msrb.gmra.mxu2 %vm64_vm1, %v2427_v27  ;;  %2747 = vmatmul.msk.f32.vlgmr.msrb.gmra.mxu3 %vm64_vm1, %v2427_v27  ;;  %v2569_v35 = vld [vmem:[#allocation3 + $0x30] sm:$0xff] }
0x1cbf   :  { %v2564_v4 = vld [vmem:[#allocation3 + $0x8] sm:$0xff] }
0x1d0f   :  { %v2535_v36 = vpop.permute.xlu1 %2534 }
0x1d41   :  { %v2490_v62 = vpop.f32.mrf.mxu3  ;;  %v2470_v13 = vpop.f32.mrf.mxu2 }
0x1d42   :  { %v2491_v9 = vadd.f32 %v2490_v62, %v4216_v0  ;;  %v2471_v21 = vadd.f32 %v2470_v13, %v4217_v37 }
0x1d44   :  { %2935 = vtanh.f32 %v2491_v9  ;;  %v2748_v10 = vmul.f32 -1.442695, %v2471_v21  ;;  %v2749_v48 = vmul.f32 -1.442695, %v2491_v9 }
0x1d46   :  { %2937 = vpow2.f32 %v2748_v10 }
0x1d4a   :  { %v2936_v61 = vpop.eup %2935 }
0x1d4b   :  { %2539 = vrot.lane.b32.xlu0 %v2936_v61, %s2952_s3 }
0x1d4c   :  { %v2938_v26 = vpop.eup %2937 }
0x1d4d   :  { %v2499_v15 = vadd.f32 1.0, %v2938_v26 }
0x1d4f   :  { %2939 = vrcp.f32 %v2499_v15  ;;  %v2512_v30 = vand.u32 2147483648, %v2499_v15  ;;  %vm2506_vm0 = vweird.f32 %v2499_v15  ;;  %v2510_v42 = vand.u32 2147483647, %v2499_v15 }
0x1d51   :  { %v2513_v11 = vor.u32 1.1754944e-38, %v2512_v30  ;;  %vm2511_vm5 = vcmp.eq.f32.partialorder %v2510_v42, 8.507059e+37 }
0x1d55   :  { %v2940_v52 = vpop.eup %2939 }
0x1d56   :  { %v2502_v18 = vmul.f32 %v2940_v52, %v2499_v15  ;;  %vm2507_vm2 = vweird.f32 %v2940_v52 }
0x1d57   :  { %vm2508_vm4 = vmor %vm2506_vm0, %vm2507_vm2 }
0x1d58   :  { %v2503_v32 = vsub.f32 1.0, %v2502_v18 }
0x1d5a   :  { %v2504_v53 = vmul.f32 %v2940_v52, %v2503_v32 }
0x1d5c   :  { %v2505_v19 = vadd.f32 %v2940_v52, %v2504_v53 }
0x1d5e   :  { %v2509_v33 = vsel %vm2508_vm4, %v2940_v52, %v2505_v19 }
0x1d5f   :  { %v2514_v56 = vsel %vm2511_vm5, %v2513_v11, %v2509_v33 }
0x1d60   :  { %v2537_v1 = vmul.f32 %v2535_v36, %v2514_v56 }
0x1dbd   :  { %v2540_v39 = vpop.permute.xlu0 %2539 }
0x1dbe   :  { %v2542_v14 = vmul.f32 %v2540_v39, %v2514_v56 }
0x1dc0   :  { %2544 = vrot.lane.b32.xlu2 %v2542_v14, %s2952_s3 }
0x1e1a   :  { %v2545_v57 = vpop.permute.xlu2 %2544 }
0x1e1b   :  { %v2547_v29 = vadd.f32 %v2545_v57, %v2537_v1 }
0x1e1d   :  { %2941 = vtanh.f32 %v2547_v29 }
0x1e1e   :  { %2943 = vpow2.f32 %v2749_v48 }
0x1e23   :  { %v2942_v34 = vpop.eup %2941 }
0x1e24   :  { %2550 = vrot.lane.b32.xlu0 %v2942_v34, %s2952_s3  ;;  %v2944_v50 = vpop.eup %2943 }
0x1e25   :  { %v2500_v43 = vadd.f32 1.0, %v2944_v50 }
0x1e27   :  { %2945 = vrcp.f32 %v2500_v43  ;;  %v2527_v38 = vand.u32 2147483648, %v2500_v43  ;;  %vm2521_vm6 = vweird.f32 %v2500_v43  ;;  %v2525_v58 = vand.u32 2147483647, %v2500_v43 }
0x1e29   :  { %v2528_v47 = vor.u32 1.1754944e-38, %v2527_v38  ;;  %vm2526_vm8 = vcmp.eq.f32.partialorder %v2525_v58, 8.507059e+37 }
0x1e2c   :  { %2555 = vrot.lane.b32.xlu0 %v2547_v29, %s2952_s3 }
0x1e2d   :  { %v2946_v40 = vpop.eup %2945 }
0x1e2e   :  { %v2517_v44 = vmul.f32 %v2946_v40, %v2500_v43  ;;  %vm2522_vm3 = vweird.f32 %v2946_v40 }
0x1e2f   :  { %vm2523_vm7 = vmor %vm2521_vm6, %vm2522_vm3 }
0x1e30   :  { %v2518_v24 = vsub.f32 1.0, %v2517_v44 }
0x1e32   :  { %v2519_v12 = vmul.f32 %v2946_v40, %v2518_v24 }
0x1e34   :  { %v2520_v60 = vadd.f32 %v2946_v40, %v2519_v12 }
0x1e36   :  { %v2524_v7 = vsel %vm2523_vm7, %v2946_v40, %v2520_v60 }
0x1e37   :  { %v2529_v55 = vsel %vm2526_vm8, %v2528_v47, %v2524_v7 }
0x1e96   :  { %v2551_v63 = vpop.permute.xlu0 %2550 }
0x1e97   :  { %v2553_v51 = vmul.f32 %v2551_v63, %v2529_v55 }
0x1e99   :  { %2559 = vst.msk [vmem:[#allocation5] sm:$0xff] %vm64_vm1, %v2553_v51 }
0x1e9a   :  { %2560 = vst.msk [vmem:[#allocation3 + $0x38] sm:$0xff] %vm347_vm12, %v2553_v51  ;;  %vm2629_vm12 = vcmask 48128  }
0x1e9b   :  { %2561 = vst.msk [vmem:[#allocation3] sm:$0xff] %vm350_vm13, %v2553_v51 }
0x1e9e   :  { %v2556_v5 = vpop.permute.xlu0 %2555 }
0x1e9f   :  { %2558 = vst.msk [vmem:[#allocation6] sm:$0xff] %vm64_vm1, %v2556_v5 }
0x1ea1   :  { %v2570_v46 = vld [vmem:[#allocation3 + $0x38] sm:$0xff] }
0x1ea2   :  { %2582 = vmatpush.msra.mxu0 %v2570_v46  ;;  %v2563_v22 = vld [vmem:[#allocation3] sm:$0xff] }
0x1ea4   :  { %2583 = vmatpush.msra.mxu0 %v2569_v35 }
0x1ea6   :  { %2584 = vmatpush.msra.mxu0 %v2568_v41 }
0x1ea8   :  { %2585 = vmatpush.msra.mxu0 %v2567_v45 }
0x1eaa   :  { %2586 = vmatpush.msra.mxu0 %v2566_v59 }
0x1eac   :  { %2587 = vmatpush.msra.mxu0 %v2565_v23 }
0x1eae   :  { %2588 = vmatpush.msra.mxu0 %v2564_v4 }
0x1eb0   :  { %2589 = vmatpush.msra.mxu0 %v2563_v22 }
0x1eb1   :  { %2750 = vmatmul.msk.f32.vlgmr.msra.gmra.mxu0 %vm64_vm1, %v2562_v25 }
0x1f2e   :  { %v2591_v17 = vpop.f32.mrf.mxu0 }
0x1f2f   :  { %2751 = vmatmul.msk.f32.vlgmr.msra.gmra.mxu1 %vm64_vm1, %v2591_v17 }
0x1fac   :  { %v2626_v20 = vpop.f32.mrf.mxu1 }
0x1fad   :  { %v2627_v27 = vadd.f32 %v2754_v2, %v2626_v20 }
0x1faf   :  { %v2630_v62 = vsel %vm2629_vm12, %v2627_v27, -inf }
0x1fb0   :  { %2631 = vmax.xlane.f32.xlu1 %v2630_v62 }
0x2023   :  { %v2632_v0 = vpop.xlane.xlu1 %2631 }
0x2024   :  { %v2633_v9 = vsub.f32 %v2627_v27, %v2632_v0 }
0x2026   :  { %v2634_v61 = vmul.f32 1.442695, %v2633_v9 }
0x2028   :  { %2947 = vpow2.f32 %v2634_v61 }
0x202e   :  { %v2948_v13 = vpop.eup %2947 }
0x202f   :  { %v2636_v37 = vsel %vm2629_vm12, %v2948_v13, 0.0 }
0x2030   :  { %2637 = vadd.xlane.f32.xlu2 %v2636_v37 }
0x20a3   :  { %v2638_v21 = vpop.xlane.xlu2 %2637 }
0x20a4   :  { %2949 = vlog2.f32 %v2638_v21 }
0x20aa   :  { %v2950_v10 = vpop.eup %2949 }
0x20ab   :  { %v2640_v26 = vmul.f32 0.6931472, %v2950_v10 }
0x20ad   :  { %v2641_v15 = vsub.f32 %v2633_v9, %v2640_v26 }
0x20af   :  { %2642 = vst.msk [vmem:[%s4206_s10] sm:$0xff] %vm2629_vm12, %v2641_v15 }

</bundles_post_ra>
